<compile_context>
chip_gen: v7x
topology: tpu7x:2x2x1
jax: 0.10.0
libtpu: 0.0.40
codegen_flags: <defaults>
</compile_context>

<pallas_src>
import jax
import jax.numpy as jnp
from jax.experimental import pallas as pl
from jax.experimental.pallas import tpu as pltpu

# ----------------------- small, TPU-tile-friendly config -----------------------
B = 2
N = 16                     # sequence length (tokens)
INPUT_DIM = 64             # input_dim
POS_DIM = 64               # pos_encoding_dim
COMBINED = INPUT_DIM + POS_DIM   # 128
D = 128                    # output_dim
NUM_LAYERS = 2             # num_layers
NUM_HEADS = 4              # num_heads
HEAD_DIM = D // NUM_HEADS  # 32
MLP_RATIO = 4
HIDDEN = D * MLP_RATIO     # 512
MAX_H = 64                 # max_height (small synthetic table)
MAX_W = 64                 # max_width
EPS = 1e-5                 # nn.LayerNorm default eps

# ---- packed (K, D) vector-slab row layout (biases + LN gamma/beta) ----
_ROW_PROJ_B = 0
_ROW_PROJ_LN_G = 1
_ROW_PROJ_LN_B = 2
_ROW_NORM_G = 3
_ROW_NORM_B = 4
_LAYER_ROWS = 6            # per layer: ln1_g, ln1_b, bo, ln2_g, ln2_b, b2
_NUM_VEC_ROWS = 5 + _LAYER_ROWS * NUM_LAYERS


# ----------------------------- in-kernel helpers --------------------------------
def _gelu(x):
    # tanh-approx GELU: tanh lowers to the EUP slot (otherwise idle), instead of a
    # 12-op VALU erf polynomial.
    c = 0.7978845608028654  # sqrt(2/pi)
    return 0.5 * x * (1.0 + jnp.tanh(c * (x + 0.044715 * x * x * x)))


def _layernorm(x, g, b):
    mu = jnp.mean(x, axis=-1, keepdims=True)
    var = jnp.mean((x - mu) ** 2, axis=-1, keepdims=True)
    return (x - mu) * jax.lax.rsqrt(var + EPS) * g + b


# --------------------------- single fused forward kernel ------------------------
# TODO(synk): EncoderLayer definition not provided; assumed standard pre-norm block:
#             x = x + MHA(LN(x)); x = x + MLP(LN(x)), MLP = Linear->GELU->Linear.
# TODO(synk): PositionalEmbedding assumed to be learned row/col nn.Embedding tables
#             (dim//2 each) gathered by integer (y, x) coords and concatenated.
def _fused_encoder_kernel(xc_ref, projw_ref, vec_ref,
                          wqkv_ref, bqkv_ref, wo_ref,
                          w1_ref, b1_ref, w2_ref, o_ref):
    xc = xc_ref[0]                                                   # (N, COMBINED)

    # ----- input projection: Linear -> LayerNorm -> GELU (Dropout = identity, eval) -----
    h = jnp.dot(xc, projw_ref[...], preferred_element_type=jnp.float32)
    h = h + vec_ref[_ROW_PROJ_B:_ROW_PROJ_B + 1, :]
    h = _layernorm(h, vec_ref[_ROW_PROJ_LN_G:_ROW_PROJ_LN_G + 1, :],
                   vec_ref[_ROW_PROJ_LN_B:_ROW_PROJ_LN_B + 1, :])
    x = _gelu(h)                                                     # (N, D)

    scale = 1.0 / (HEAD_DIM ** 0.5)

    # ----- encoder layers, statically unrolled, weights resident in VMEM -----
    for li in range(NUM_LAYERS):
        base = 5 + _LAYER_ROWS * li
        ln1_g = vec_ref[base + 0:base + 1, :]
        ln1_b = vec_ref[base + 1:base + 2, :]
        bo    = vec_ref[base + 2:base + 3, :]
        ln2_g = vec_ref[base + 3:base + 4, :]
        ln2_b = vec_ref[base + 4:base + 5, :]
        b2    = vec_ref[base + 5:base + 6, :]

        # --- multi-head self attention (pre-norm) ---
        hn = _layernorm(x, ln1_g, ln1_b)
        qkv = jnp.dot(hn, wqkv_ref[li], preferred_element_type=jnp.float32)
        qkv = qkv + bqkv_ref[li]                                     # (N, 3D)

        heads = []
        for hd in range(NUM_HEADS):                                  # static unroll
            lo = hd * HEAD_DIM
            qh = qkv[:, lo:lo + HEAD_DIM]
            kh = qkv[:, D + lo:D + lo + HEAD_DIM]
            vh = qkv[:, 2 * D + lo:2 * D + lo + HEAD_DIM]
            s = jax.lax.dot_general(qh, kh, (((1,), (1,)), ((), ())),
                                    preferred_element_type=jnp.float32) * scale  # (N, N)
            s = s - jnp.max(s, axis=-1, keepdims=True)
            p = jnp.exp(s)
            p = p * pl.reciprocal(jnp.sum(p, axis=-1, keepdims=True), approx=True)
            heads.append(jnp.dot(p, vh, preferred_element_type=jnp.float32))

        attn = jnp.concatenate(heads, axis=-1)                       # (N, D)
        attn = jnp.dot(attn, wo_ref[li], preferred_element_type=jnp.float32) + bo
        x = x + attn

        # --- MLP (pre-norm) ---
        h2 = _layernorm(x, ln2_g, ln2_b)
        m = jnp.dot(h2, w1_ref[li], preferred_element_type=jnp.float32) + b1_ref[li]
        m = _gelu(m)
        m = jnp.dot(m, w2_ref[li], preferred_element_type=jnp.float32) + b2
        x = x + m

    # ----- final LayerNorm -----
    o_ref[0] = _layernorm(x, vec_ref[_ROW_NORM_G:_ROW_NORM_G + 1, :],
                          vec_ref[_ROW_NORM_B:_ROW_NORM_B + 1, :])


def _fused_forward(x_comb, params):
    Bv = x_comb.shape[0]
    rep2 = lambda shape: pl.BlockSpec(shape, lambda b: (0,) * len(shape))
    return pl.pallas_call(
        _fused_encoder_kernel,
        out_shape=jax.ShapeDtypeStruct((Bv, N, D), jnp.float32),
        grid=(Bv,),
        in_specs=[
            pl.BlockSpec((1, N, COMBINED), lambda b: (b, 0, 0)),     # per-batch tokens
            rep2(params['proj_w'].shape),                            # (COMBINED, D)
            rep2(params['vec_slab'].shape),                          # (K, D) packed vectors
            rep2(params['wqkv'].shape),                              # (L, D, 3D)
            rep2(params['bqkv'].shape),                              # (L, 1, 3D)
            rep2(params['wo'].shape),                                # (L, D, D)
            rep2(params['w1'].shape),                                # (L, D, HIDDEN)
            rep2(params['b1'].shape),                                # (L, 1, HIDDEN)
            rep2(params['w2'].shape),                                # (L, HIDDEN, D)
        ],
        out_specs=pl.BlockSpec((1, N, D), lambda b: (b, 0, 0)),
        compiler_params=pltpu.CompilerParams(dimension_semantics=("parallel",)),
    )(x_comb, params['proj_w'], params['vec_slab'], params['wqkv'], params['bqkv'],
      params['wo'], params['w1'], params['b1'], params['w2'])


# ------------------------------- parameter init ----------------------------------
def init_params(key):
    keys = jax.random.split(key, 3 + NUM_LAYERS)
    nrm = lambda k, shape, s=0.02: jax.random.normal(k, shape, jnp.float32) * s

    vec = jnp.zeros((_NUM_VEC_ROWS, D), jnp.float32)
    vec = vec.at[_ROW_PROJ_LN_G].set(1.0)
    vec = vec.at[_ROW_NORM_G].set(1.0)

    wqkv, bqkv, wo, w1, b1, w2 = [], [], [], [], [], []
    for li in range(NUM_LAYERS):
        lk = jax.random.split(keys[3 + li], 6)
        base = 5 + _LAYER_ROWS * li
        vec = vec.at[base + 0].set(1.0)      # ln1_g
        vec = vec.at[base + 3].set(1.0)      # ln2_g
        wq, wk, wv = nrm(lk[0], (D, D)), nrm(lk[1], (D, D)), nrm(lk[2], (D, D))
        wqkv.append(jnp.concatenate([wq, wk, wv], axis=1))           # (D, 3D)
        bqkv.append(jnp.zeros((1, 3 * D), jnp.float32))
        wo.append(nrm(lk[3], (D, D)))
        w1.append(nrm(lk[4], (D, HIDDEN)))
        b1.append(jnp.zeros((1, HIDDEN), jnp.float32))
        w2.append(nrm(lk[5], (HIDDEN, D)))

    return {
        'row_embed': jax.random.normal(keys[0], (MAX_H, POS_DIM // 2), jnp.float32),
        'col_embed': jax.random.normal(keys[1], (MAX_W, POS_DIM // 2), jnp.float32),
        'proj_w': nrm(keys[2], (COMBINED, D)),
        'vec_slab': vec,
        'wqkv': jnp.stack(wqkv),             # (L, D, 3D)
        'bqkv': jnp.stack(bqkv),             # (L, 1, 3D)
        'wo': jnp.stack(wo),                 # (L, D, D)
        'w1': jnp.stack(w1),                 # (L, D, HIDDEN)
        'b1': jnp.stack(b1),                 # (L, 1, HIDDEN)
        'w2': jnp.stack(w2),                 # (L, HIDDEN, D)
    }


# --------------------------------- forward pass -----------------------------------
def transformer_encoder(features, coordinates, params):
    # Positional-embedding gather + concat kept as XLA glue (two tiny 16 KB takes).
    row = jnp.take(params['row_embed'], coordinates[..., 0], axis=0)   # (B, N, POS/2)
    col = jnp.take(params['col_embed'], coordinates[..., 1], axis=0)   # (B, N, POS/2)
    x = jnp.concatenate([features, row, col], axis=-1)                 # (B, N, COMBINED)
    return _fused_forward(x, params)                                   # (B, N, D)


if __name__ == "__main__":
    key = jax.random.PRNGKey(0)
    kf, kc, kp = jax.random.split(key, 3)
    features = jax.random.normal(kf, (B, N, INPUT_DIM), jnp.float32)
    coordinates = jax.random.randint(kc, (B, N, 2), 0, MAX_H, dtype=jnp.int32)
    params = init_params(kp)

    out = transformer_encoder(features, coordinates, params)
    out = jax.block_until_ready(out)

    assert out.shape == (B, N, D), out.shape
    assert bool(jnp.all(jnp.isfinite(out)))
    print("KERNEL_OK")
</pallas_src>

<mosaic_0001>
module attributes {stable_mosaic.version = 11 : i64} {
  func.func @_fused_encoder_kernel(%arg0: i32, %arg1: memref<1x16x128xf32, #tpu.memory_space<vmem>>, %arg2: memref<128x128xf32, #tpu.memory_space<vmem>>, %arg3: memref<17x128xf32, #tpu.memory_space<vmem>>, %arg4: memref<2x128x384xf32, #tpu.memory_space<vmem>>, %arg5: memref<2x1x384xf32, #tpu.memory_space<vmem>>, %arg6: memref<2x128x128xf32, #tpu.memory_space<vmem>>, %arg7: memref<2x128x512xf32, #tpu.memory_space<vmem>>, %arg8: memref<2x1x512xf32, #tpu.memory_space<vmem>>, %arg9: memref<2x512x128xf32, #tpu.memory_space<vmem>>, %arg10: memref<1x16x128xf32, #tpu.memory_space<vmem>>) attributes {dimension_semantics = [#tpu.dimension_semantics<parallel>], iteration_bounds = array<i64: 2>, scalar_prefetch = 0 : i64, scratch_operands = 0 : i64, tpu.core_type = #tpu.core_type<tc>, window_params = [{transform_indices = @transform_0, window_bounds = array<i64: 1, 16, 128>}, {pipeline_mode = #tpu.pipeline_mode<synchronous>, transform_indices = @transform_1, window_bounds = array<i64: 128, 128>}, {pipeline_mode = #tpu.pipeline_mode<synchronous>, transform_indices = @transform_2, window_bounds = array<i64: 17, 128>}, {pipeline_mode = #tpu.pipeline_mode<synchronous>, transform_indices = @transform_3, window_bounds = array<i64: 2, 128, 384>}, {pipeline_mode = #tpu.pipeline_mode<synchronous>, transform_indices = @transform_4, window_bounds = array<i64: 2, 1, 384>}, {pipeline_mode = #tpu.pipeline_mode<synchronous>, transform_indices = @transform_5, window_bounds = array<i64: 2, 128, 128>}, {pipeline_mode = #tpu.pipeline_mode<synchronous>, transform_indices = @transform_6, window_bounds = array<i64: 2, 128, 512>}, {pipeline_mode = #tpu.pipeline_mode<synchronous>, transform_indices = @transform_7, window_bounds = array<i64: 2, 1, 512>}, {pipeline_mode = #tpu.pipeline_mode<synchronous>, transform_indices = @transform_8, window_bounds = array<i64: 2, 512, 128>}, {transform_indices = @transform_9, window_bounds = array<i64: 1, 16, 128>}]} {
    %c0 = arith.constant 0 : index
    %c0_0 = arith.constant 0 : index
    %c0_1 = arith.constant 0 : index
    %0 = vector.load %arg1[%c0, %c0_0, %c0_1] : memref<1x16x128xf32, #tpu.memory_space<vmem>>, vector<1x16x128xf32>
    %1 = vector.shape_cast %0 : vector<1x16x128xf32> to vector<16x128xf32>
    %c0_2 = arith.constant 0 : index
    %c0_3 = arith.constant 0 : index
    %2 = vector.load %arg2[%c0_2, %c0_3] : memref<128x128xf32, #tpu.memory_space<vmem>>, vector<128x128xf32>
    %cst = arith.constant dense<0.000000e+00> : vector<16x128xf32>
    %3 = tpu.matmul %1, %2, %cst {dimension_numbers = #tpu.dot_dimension_numbers<[1], [0], [0], [1], [0, 0, 1, 1], [], []>} : vector<16x128xf32>, vector<128x128xf32>, vector<16x128xf32> -> vector<16x128xf32>
    %c0_4 = arith.constant 0 : index
    %c0_5 = arith.constant 0 : index
    %4 = vector.load %arg3[%c0_4, %c0_5] : memref<17x128xf32, #tpu.memory_space<vmem>>, vector<1x128xf32>
    %5 = vector.broadcast %4 : vector<1x128xf32> to vector<16x128xf32>
    %6 = arith.addf %3, %5 : vector<16x128xf32>
    %c1 = arith.constant 1 : index
    %c0_6 = arith.constant 0 : index
    %7 = vector.load %arg3[%c1, %c0_6] : memref<17x128xf32, #tpu.memory_space<vmem>>, vector<1x128xf32>
    %c2 = arith.constant 2 : index
    %c0_7 = arith.constant 0 : index
    %8 = vector.load %arg3[%c2, %c0_7] : memref<17x128xf32, #tpu.memory_space<vmem>>, vector<1x128xf32>
    %cst_8 = arith.constant dense<0.000000e+00> : vector<16xf32>
    %9 = vector.multi_reduction <add>, %6, %cst_8 [1] : vector<16x128xf32> to vector<16xf32>
    %10 = vector.shape_cast %9 : vector<16xf32> to vector<16x1xf32>
    %cst_9 = arith.constant 1.280000e+02 : f32
    %11 = vector.broadcast %cst_9 : f32 to vector<16x1xf32>
    %12 = arith.divf %10, %11 : vector<16x1xf32>
    %13 = vector.broadcast %12 : vector<16x1xf32> to vector<16x128xf32>
    %14 = arith.subf %6, %13 : vector<16x128xf32>
    %15 = arith.mulf %14, %14 : vector<16x128xf32>
    %cst_10 = arith.constant dense<0.000000e+00> : vector<16xf32>
    %16 = vector.multi_reduction <add>, %15, %cst_10 [1] : vector<16x128xf32> to vector<16xf32>
    %17 = vector.shape_cast %16 : vector<16xf32> to vector<16x1xf32>
    %cst_11 = arith.constant 1.280000e+02 : f32
    %18 = vector.broadcast %cst_11 : f32 to vector<16x1xf32>
    %19 = arith.divf %17, %18 : vector<16x1xf32>
    %20 = vector.broadcast %12 : vector<16x1xf32> to vector<16x128xf32>
    %21 = arith.subf %6, %20 : vector<16x128xf32>
    %cst_12 = arith.constant 9.99999974E-6 : f32
    %22 = vector.broadcast %cst_12 : f32 to vector<16x1xf32>
    %23 = arith.addf %19, %22 : vector<16x1xf32>
    %24 = math.rsqrt %23 : vector<16x1xf32>
    %25 = vector.broadcast %24 : vector<16x1xf32> to vector<16x128xf32>
    %26 = arith.mulf %21, %25 : vector<16x128xf32>
    %27 = vector.broadcast %7 : vector<1x128xf32> to vector<16x128xf32>
    %28 = arith.mulf %26, %27 : vector<16x128xf32>
    %29 = vector.broadcast %8 : vector<1x128xf32> to vector<16x128xf32>
    %30 = arith.addf %28, %29 : vector<16x128xf32>
    %cst_13 = arith.constant 5.000000e-01 : f32
    %31 = vector.broadcast %cst_13 : f32 to vector<16x128xf32>
    %32 = arith.mulf %31, %30 : vector<16x128xf32>
    %cst_14 = arith.constant 4.471500e-02 : f32
    %33 = vector.broadcast %cst_14 : f32 to vector<16x128xf32>
    %34 = arith.mulf %33, %30 : vector<16x128xf32>
    %35 = arith.mulf %34, %30 : vector<16x128xf32>
    %36 = arith.mulf %35, %30 : vector<16x128xf32>
    %37 = arith.addf %30, %36 : vector<16x128xf32>
    %cst_15 = arith.constant 0.797884583 : f32
    %38 = vector.broadcast %cst_15 : f32 to vector<16x128xf32>
    %39 = arith.mulf %38, %37 : vector<16x128xf32>
    %40 = math.tanh %39 : vector<16x128xf32>
    %cst_16 = arith.constant 1.000000e+00 : f32
    %41 = vector.broadcast %cst_16 : f32 to vector<16x128xf32>
    %42 = arith.addf %41, %40 : vector<16x128xf32>
    %43 = arith.mulf %32, %42 : vector<16x128xf32>
    %c5 = arith.constant 5 : index
    %c0_17 = arith.constant 0 : index
    %44 = vector.load %arg3[%c5, %c0_17] : memref<17x128xf32, #tpu.memory_space<vmem>>, vector<1x128xf32>
    %c6 = arith.constant 6 : index
    %c0_18 = arith.constant 0 : index
    %45 = vector.load %arg3[%c6, %c0_18] : memref<17x128xf32, #tpu.memory_space<vmem>>, vector<1x128xf32>
    %c7 = arith.constant 7 : index
    %c0_19 = arith.constant 0 : index
    %46 = vector.load %arg3[%c7, %c0_19] : memref<17x128xf32, #tpu.memory_space<vmem>>, vector<1x128xf32>
    %c8 = arith.constant 8 : index
    %c0_20 = arith.constant 0 : index
    %47 = vector.load %arg3[%c8, %c0_20] : memref<17x128xf32, #tpu.memory_space<vmem>>, vector<1x128xf32>
    %c9 = arith.constant 9 : index
    %c0_21 = arith.constant 0 : index
    %48 = vector.load %arg3[%c9, %c0_21] : memref<17x128xf32, #tpu.memory_space<vmem>>, vector<1x128xf32>
    %c10 = arith.constant 10 : index
    %c0_22 = arith.constant 0 : index
    %49 = vector.load %arg3[%c10, %c0_22] : memref<17x128xf32, #tpu.memory_space<vmem>>, vector<1x128xf32>
    %cst_23 = arith.constant dense<0.000000e+00> : vector<16xf32>
    %50 = vector.multi_reduction <add>, %43, %cst_23 [1] : vector<16x128xf32> to vector<16xf32>
    %51 = vector.shape_cast %50 : vector<16xf32> to vector<16x1xf32>
    %cst_24 = arith.constant 1.280000e+02 : f32
    %52 = vector.broadcast %cst_24 : f32 to vector<16x1xf32>
    %53 = arith.divf %51, %52 : vector<16x1xf32>
    %54 = vector.broadcast %53 : vector<16x1xf32> to vector<16x128xf32>
    %55 = arith.subf %43, %54 : vector<16x128xf32>
    %56 = arith.mulf %55, %55 : vector<16x128xf32>
    %cst_25 = arith.constant dense<0.000000e+00> : vector<16xf32>
    %57 = vector.multi_reduction <add>, %56, %cst_25 [1] : vector<16x128xf32> to vector<16xf32>
    %58 = vector.shape_cast %57 : vector<16xf32> to vector<16x1xf32>
    %cst_26 = arith.constant 1.280000e+02 : f32
    %59 = vector.broadcast %cst_26 : f32 to vector<16x1xf32>
    %60 = arith.divf %58, %59 : vector<16x1xf32>
    %61 = vector.broadcast %53 : vector<16x1xf32> to vector<16x128xf32>
    %62 = arith.subf %43, %61 : vector<16x128xf32>
    %cst_27 = arith.constant 9.99999974E-6 : f32
    %63 = vector.broadcast %cst_27 : f32 to vector<16x1xf32>
    %64 = arith.addf %60, %63 : vector<16x1xf32>
    %65 = math.rsqrt %64 : vector<16x1xf32>
    %66 = vector.broadcast %65 : vector<16x1xf32> to vector<16x128xf32>
    %67 = arith.mulf %62, %66 : vector<16x128xf32>
    %68 = vector.broadcast %44 : vector<1x128xf32> to vector<16x128xf32>
    %69 = arith.mulf %67, %68 : vector<16x128xf32>
    %70 = vector.broadcast %45 : vector<1x128xf32> to vector<16x128xf32>
    %71 = arith.addf %69, %70 : vector<16x128xf32>
    %c0_28 = arith.constant 0 : index
    %c0_29 = arith.constant 0 : index
    %c0_30 = arith.constant 0 : index
    %72 = vector.load %arg4[%c0_28, %c0_29, %c0_30] : memref<2x128x384xf32, #tpu.memory_space<vmem>>, vector<1x128x384xf32>
    %73 = vector.shape_cast %72 : vector<1x128x384xf32> to vector<128x384xf32>
    %cst_31 = arith.constant dense<0.000000e+00> : vector<16x384xf32>
    %74 = tpu.matmul %71, %73, %cst_31 {dimension_numbers = #tpu.dot_dimension_numbers<[1], [0], [0], [1], [0, 0, 1, 1], [], []>} : vector<16x128xf32>, vector<128x384xf32>, vector<16x384xf32> -> vector<16x384xf32>
    %c0_32 = arith.constant 0 : index
    %c0_33 = arith.constant 0 : index
    %c0_34 = arith.constant 0 : index
    %75 = vector.load %arg5[%c0_32, %c0_33, %c0_34] : memref<2x1x384xf32, #tpu.memory_space<vmem>>, vector<1x1x384xf32>
    %76 = vector.shape_cast %75 : vector<1x1x384xf32> to vector<1x384xf32>
    %77 = vector.broadcast %76 : vector<1x384xf32> to vector<16x384xf32>
    %78 = arith.addf %74, %77 : vector<16x384xf32>
    %79 = vector.extract_strided_slice %78 {offsets = [0, 0], sizes = [16, 32], strides = [1, 1]} : vector<16x384xf32> to vector<16x32xf32>
    %80 = vector.extract_strided_slice %78 {offsets = [0, 128], sizes = [16, 32], strides = [1, 1]} : vector<16x384xf32> to vector<16x32xf32>
    %81 = vector.extract_strided_slice %78 {offsets = [0, 256], sizes = [16, 32], strides = [1, 1]} : vector<16x384xf32> to vector<16x32xf32>
    %cst_35 = arith.constant dense<0.000000e+00> : vector<16x16xf32>
    %82 = tpu.matmul %79, %80, %cst_35 {dimension_numbers = #tpu.dot_dimension_numbers<[1], [1], [0], [0], [0, 0, 1, 0], [], []>} : vector<16x32xf32>, vector<16x32xf32>, vector<16x16xf32> -> vector<16x16xf32>
    %cst_36 = arith.constant 0.176776692 : f32
    %83 = vector.broadcast %cst_36 : f32 to vector<16x16xf32>
    %84 = arith.mulf %82, %83 : vector<16x16xf32>
    %cst_37 = arith.constant dense<0xFF800000> : vector<16xf32>
    %85 = vector.multi_reduction <maximumf>, %84, %cst_37 [1] : vector<16x16xf32> to vector<16xf32>
    %86 = vector.shape_cast %85 : vector<16xf32> to vector<16x1xf32>
    %87 = vector.broadcast %86 : vector<16x1xf32> to vector<16x16xf32>
    %88 = arith.subf %84, %87 : vector<16x16xf32>
    %89 = math.exp %88 : vector<16x16xf32>
    %cst_38 = arith.constant dense<0.000000e+00> : vector<16xf32>
    %90 = vector.multi_reduction <add>, %89, %cst_38 [1] : vector<16x16xf32> to vector<16xf32>
    %91 = vector.shape_cast %90 : vector<16xf32> to vector<16x1xf32>
    %92 = tpu.reciprocal %91 {approx = true} : vector<16x1xf32> -> vector<16x1xf32>
    %93 = vector.broadcast %92 : vector<16x1xf32> to vector<16x16xf32>
    %94 = arith.mulf %89, %93 : vector<16x16xf32>
    %cst_39 = arith.constant dense<0.000000e+00> : vector<16x32xf32>
    %95 = tpu.matmul %94, %81, %cst_39 {dimension_numbers = #tpu.dot_dimension_numbers<[1], [0], [0], [1], [0, 0, 1, 1], [], []>} : vector<16x16xf32>, vector<16x32xf32>, vector<16x32xf32> -> vector<16x32xf32>
    %96 = vector.extract_strided_slice %78 {offsets = [0, 32], sizes = [16, 32], strides = [1, 1]} : vector<16x384xf32> to vector<16x32xf32>
    %97 = vector.extract_strided_slice %78 {offsets = [0, 160], sizes = [16, 32], strides = [1, 1]} : vector<16x384xf32> to vector<16x32xf32>
    %98 = vector.extract_strided_slice %78 {offsets = [0, 288], sizes = [16, 32], strides = [1, 1]} : vector<16x384xf32> to vector<16x32xf32>
    %cst_40 = arith.constant dense<0.000000e+00> : vector<16x16xf32>
    %99 = tpu.matmul %96, %97, %cst_40 {dimension_numbers = #tpu.dot_dimension_numbers<[1], [1], [0], [0], [0, 0, 1, 0], [], []>} : vector<16x32xf32>, vector<16x32xf32>, vector<16x16xf32> -> vector<16x16xf32>
    %cst_41 = arith.constant 0.176776692 : f32
    %100 = vector.broadcast %cst_41 : f32 to vector<16x16xf32>
    %101 = arith.mulf %99, %100 : vector<16x16xf32>
    %cst_42 = arith.constant dense<0xFF800000> : vector<16xf32>
    %102 = vector.multi_reduction <maximumf>, %101, %cst_42 [1] : vector<16x16xf32> to vector<16xf32>
    %103 = vector.shape_cast %102 : vector<16xf32> to vector<16x1xf32>
    %104 = vector.broadcast %103 : vector<16x1xf32> to vector<16x16xf32>
    %105 = arith.subf %101, %104 : vector<16x16xf32>
    %106 = math.exp %105 : vector<16x16xf32>
    %cst_43 = arith.constant dense<0.000000e+00> : vector<16xf32>
    %107 = vector.multi_reduction <add>, %106, %cst_43 [1] : vector<16x16xf32> to vector<16xf32>
    %108 = vector.shape_cast %107 : vector<16xf32> to vector<16x1xf32>
    %109 = tpu.reciprocal %108 {approx = true} : vector<16x1xf32> -> vector<16x1xf32>
    %110 = vector.broadcast %109 : vector<16x1xf32> to vector<16x16xf32>
    %111 = arith.mulf %106, %110 : vector<16x16xf32>
    %cst_44 = arith.constant dense<0.000000e+00> : vector<16x32xf32>
    %112 = tpu.matmul %111, %98, %cst_44 {dimension_numbers = #tpu.dot_dimension_numbers<[1], [0], [0], [1], [0, 0, 1, 1], [], []>} : vector<16x16xf32>, vector<16x32xf32>, vector<16x32xf32> -> vector<16x32xf32>
    %113 = vector.extract_strided_slice %78 {offsets = [0, 64], sizes = [16, 32], strides = [1, 1]} : vector<16x384xf32> to vector<16x32xf32>
    %114 = vector.extract_strided_slice %78 {offsets = [0, 192], sizes = [16, 32], strides = [1, 1]} : vector<16x384xf32> to vector<16x32xf32>
    %115 = vector.extract_strided_slice %78 {offsets = [0, 320], sizes = [16, 32], strides = [1, 1]} : vector<16x384xf32> to vector<16x32xf32>
    %cst_45 = arith.constant dense<0.000000e+00> : vector<16x16xf32>
    %116 = tpu.matmul %113, %114, %cst_45 {dimension_numbers = #tpu.dot_dimension_numbers<[1], [1], [0], [0], [0, 0, 1, 0], [], []>} : vector<16x32xf32>, vector<16x32xf32>, vector<16x16xf32> -> vector<16x16xf32>
    %cst_46 = arith.constant 0.176776692 : f32
    %117 = vector.broadcast %cst_46 : f32 to vector<16x16xf32>
    %118 = arith.mulf %116, %117 : vector<16x16xf32>
    %cst_47 = arith.constant dense<0xFF800000> : vector<16xf32>
    %119 = vector.multi_reduction <maximumf>, %118, %cst_47 [1] : vector<16x16xf32> to vector<16xf32>
    %120 = vector.shape_cast %119 : vector<16xf32> to vector<16x1xf32>
    %121 = vector.broadcast %120 : vector<16x1xf32> to vector<16x16xf32>
    %122 = arith.subf %118, %121 : vector<16x16xf32>
    %123 = math.exp %122 : vector<16x16xf32>
    %cst_48 = arith.constant dense<0.000000e+00> : vector<16xf32>
    %124 = vector.multi_reduction <add>, %123, %cst_48 [1] : vector<16x16xf32> to vector<16xf32>
    %125 = vector.shape_cast %124 : vector<16xf32> to vector<16x1xf32>
    %126 = tpu.reciprocal %125 {approx = true} : vector<16x1xf32> -> vector<16x1xf32>
    %127 = vector.broadcast %126 : vector<16x1xf32> to vector<16x16xf32>
    %128 = arith.mulf %123, %127 : vector<16x16xf32>
    %cst_49 = arith.constant dense<0.000000e+00> : vector<16x32xf32>
    %129 = tpu.matmul %128, %115, %cst_49 {dimension_numbers = #tpu.dot_dimension_numbers<[1], [0], [0], [1], [0, 0, 1, 1], [], []>} : vector<16x16xf32>, vector<16x32xf32>, vector<16x32xf32> -> vector<16x32xf32>
    %130 = vector.extract_strided_slice %78 {offsets = [0, 96], sizes = [16, 32], strides = [1, 1]} : vector<16x384xf32> to vector<16x32xf32>
    %131 = vector.extract_strided_slice %78 {offsets = [0, 224], sizes = [16, 32], strides = [1, 1]} : vector<16x384xf32> to vector<16x32xf32>
    %132 = vector.extract_strided_slice %78 {offsets = [0, 352], sizes = [16, 32], strides = [1, 1]} : vector<16x384xf32> to vector<16x32xf32>
    %cst_50 = arith.constant dense<0.000000e+00> : vector<16x16xf32>
    %133 = tpu.matmul %130, %131, %cst_50 {dimension_numbers = #tpu.dot_dimension_numbers<[1], [1], [0], [0], [0, 0, 1, 0], [], []>} : vector<16x32xf32>, vector<16x32xf32>, vector<16x16xf32> -> vector<16x16xf32>
    %cst_51 = arith.constant 0.176776692 : f32
    %134 = vector.broadcast %cst_51 : f32 to vector<16x16xf32>
    %135 = arith.mulf %133, %134 : vector<16x16xf32>
    %cst_52 = arith.constant dense<0xFF800000> : vector<16xf32>
    %136 = vector.multi_reduction <maximumf>, %135, %cst_52 [1] : vector<16x16xf32> to vector<16xf32>
    %137 = vector.shape_cast %136 : vector<16xf32> to vector<16x1xf32>
    %138 = vector.broadcast %137 : vector<16x1xf32> to vector<16x16xf32>
    %139 = arith.subf %135, %138 : vector<16x16xf32>
    %140 = math.exp %139 : vector<16x16xf32>
    %cst_53 = arith.constant dense<0.000000e+00> : vector<16xf32>
    %141 = vector.multi_reduction <add>, %140, %cst_53 [1] : vector<16x16xf32> to vector<16xf32>
    %142 = vector.shape_cast %141 : vector<16xf32> to vector<16x1xf32>
    %143 = tpu.reciprocal %142 {approx = true} : vector<16x1xf32> -> vector<16x1xf32>
    %144 = vector.broadcast %143 : vector<16x1xf32> to vector<16x16xf32>
    %145 = arith.mulf %140, %144 : vector<16x16xf32>
    %cst_54 = arith.constant dense<0.000000e+00> : vector<16x32xf32>
    %146 = tpu.matmul %145, %132, %cst_54 {dimension_numbers = #tpu.dot_dimension_numbers<[1], [0], [0], [1], [0, 0, 1, 1], [], []>} : vector<16x16xf32>, vector<16x32xf32>, vector<16x32xf32> -> vector<16x32xf32>
    %147 = tpu.concatenate %95, %112, %129, %146 in 1 : vector<16x32xf32>, vector<16x32xf32>, vector<16x32xf32>, vector<16x32xf32> -> vector<16x128xf32>
    %c0_55 = arith.constant 0 : index
    %c0_56 = arith.constant 0 : index
    %c0_57 = arith.constant 0 : index
    %148 = vector.load %arg6[%c0_55, %c0_56, %c0_57] : memref<2x128x128xf32, #tpu.memory_space<vmem>>, vector<1x128x128xf32>
    %149 = vector.shape_cast %148 : vector<1x128x128xf32> to vector<128x128xf32>
    %cst_58 = arith.constant dense<0.000000e+00> : vector<16x128xf32>
    %150 = tpu.matmul %147, %149, %cst_58 {dimension_numbers = #tpu.dot_dimension_numbers<[1], [0], [0], [1], [0, 0, 1, 1], [], []>} : vector<16x128xf32>, vector<128x128xf32>, vector<16x128xf32> -> vector<16x128xf32>
    %151 = vector.broadcast %46 : vector<1x128xf32> to vector<16x128xf32>
    %152 = arith.addf %150, %151 : vector<16x128xf32>
    %153 = arith.addf %43, %152 : vector<16x128xf32>
    %cst_59 = arith.constant dense<0.000000e+00> : vector<16xf32>
    %154 = vector.multi_reduction <add>, %153, %cst_59 [1] : vector<16x128xf32> to vector<16xf32>
    %155 = vector.shape_cast %154 : vector<16xf32> to vector<16x1xf32>
    %cst_60 = arith.constant 1.280000e+02 : f32
    %156 = vector.broadcast %cst_60 : f32 to vector<16x1xf32>
    %157 = arith.divf %155, %156 : vector<16x1xf32>
    %158 = vector.broadcast %157 : vector<16x1xf32> to vector<16x128xf32>
    %159 = arith.subf %153, %158 : vector<16x128xf32>
    %160 = arith.mulf %159, %159 : vector<16x128xf32>
    %cst_61 = arith.constant dense<0.000000e+00> : vector<16xf32>
    %161 = vector.multi_reduction <add>, %160, %cst_61 [1] : vector<16x128xf32> to vector<16xf32>
    %162 = vector.shape_cast %161 : vector<16xf32> to vector<16x1xf32>
    %cst_62 = arith.constant 1.280000e+02 : f32
    %163 = vector.broadcast %cst_62 : f32 to vector<16x1xf32>
    %164 = arith.divf %162, %163 : vector<16x1xf32>
    %165 = vector.broadcast %157 : vector<16x1xf32> to vector<16x128xf32>
    %166 = arith.subf %153, %165 : vector<16x128xf32>
    %cst_63 = arith.constant 9.99999974E-6 : f32
    %167 = vector.broadcast %cst_63 : f32 to vector<16x1xf32>
    %168 = arith.addf %164, %167 : vector<16x1xf32>
    %169 = math.rsqrt %168 : vector<16x1xf32>
    %170 = vector.broadcast %169 : vector<16x1xf32> to vector<16x128xf32>
    %171 = arith.mulf %166, %170 : vector<16x128xf32>
    %172 = vector.broadcast %47 : vector<1x128xf32> to vector<16x128xf32>
    %173 = arith.mulf %171, %172 : vector<16x128xf32>
    %174 = vector.broadcast %48 : vector<1x128xf32> to vector<16x128xf32>
    %175 = arith.addf %173, %174 : vector<16x128xf32>
    %c0_64 = arith.constant 0 : index
    %c0_65 = arith.constant 0 : index
    %c0_66 = arith.constant 0 : index
    %176 = vector.load %arg7[%c0_64, %c0_65, %c0_66] : memref<2x128x512xf32, #tpu.memory_space<vmem>>, vector<1x128x512xf32>
    %177 = vector.shape_cast %176 : vector<1x128x512xf32> to vector<128x512xf32>
    %cst_67 = arith.constant dense<0.000000e+00> : vector<16x512xf32>
    %178 = tpu.matmul %175, %177, %cst_67 {dimension_numbers = #tpu.dot_dimension_numbers<[1], [0], [0], [1], [0, 0, 1, 1], [], []>} : vector<16x128xf32>, vector<128x512xf32>, vector<16x512xf32> -> vector<16x512xf32>
    %c0_68 = arith.constant 0 : index
    %c0_69 = arith.constant 0 : index
    %c0_70 = arith.constant 0 : index
    %179 = vector.load %arg8[%c0_68, %c0_69, %c0_70] : memref<2x1x512xf32, #tpu.memory_space<vmem>>, vector<1x1x512xf32>
    %180 = vector.shape_cast %179 : vector<1x1x512xf32> to vector<1x512xf32>
    %181 = vector.broadcast %180 : vector<1x512xf32> to vector<16x512xf32>
    %182 = arith.addf %178, %181 : vector<16x512xf32>
    %cst_71 = arith.constant 5.000000e-01 : f32
    %183 = vector.broadcast %cst_71 : f32 to vector<16x512xf32>
    %184 = arith.mulf %183, %182 : vector<16x512xf32>
    %cst_72 = arith.constant 4.471500e-02 : f32
    %185 = vector.broadcast %cst_72 : f32 to vector<16x512xf32>
    %186 = arith.mulf %185, %182 : vector<16x512xf32>
    %187 = arith.mulf %186, %182 : vector<16x512xf32>
    %188 = arith.mulf %187, %182 : vector<16x512xf32>
    %189 = arith.addf %182, %188 : vector<16x512xf32>
    %cst_73 = arith.constant 0.797884583 : f32
    %190 = vector.broadcast %cst_73 : f32 to vector<16x512xf32>
    %191 = arith.mulf %190, %189 : vector<16x512xf32>
    %192 = math.tanh %191 : vector<16x512xf32>
    %cst_74 = arith.constant 1.000000e+00 : f32
    %193 = vector.broadcast %cst_74 : f32 to vector<16x512xf32>
    %194 = arith.addf %193, %192 : vector<16x512xf32>
    %195 = arith.mulf %184, %194 : vector<16x512xf32>
    %c0_75 = arith.constant 0 : index
    %c0_76 = arith.constant 0 : index
    %c0_77 = arith.constant 0 : index
    %196 = vector.load %arg9[%c0_75, %c0_76, %c0_77] : memref<2x512x128xf32, #tpu.memory_space<vmem>>, vector<1x512x128xf32>
    %197 = vector.shape_cast %196 : vector<1x512x128xf32> to vector<512x128xf32>
    %cst_78 = arith.constant dense<0.000000e+00> : vector<16x128xf32>
    %198 = tpu.matmul %195, %197, %cst_78 {dimension_numbers = #tpu.dot_dimension_numbers<[1], [0], [0], [1], [0, 0, 1, 1], [], []>} : vector<16x512xf32>, vector<512x128xf32>, vector<16x128xf32> -> vector<16x128xf32>
    %199 = vector.broadcast %49 : vector<1x128xf32> to vector<16x128xf32>
    %200 = arith.addf %198, %199 : vector<16x128xf32>
    %201 = arith.addf %153, %200 : vector<16x128xf32>
    %c11 = arith.constant 11 : index
    %c0_79 = arith.constant 0 : index
    %202 = vector.load %arg3[%c11, %c0_79] : memref<17x128xf32, #tpu.memory_space<vmem>>, vector<1x128xf32>
    %c12 = arith.constant 12 : index
    %c0_80 = arith.constant 0 : index
    %203 = vector.load %arg3[%c12, %c0_80] : memref<17x128xf32, #tpu.memory_space<vmem>>, vector<1x128xf32>
    %c13 = arith.constant 13 : index
    %c0_81 = arith.constant 0 : index
    %204 = vector.load %arg3[%c13, %c0_81] : memref<17x128xf32, #tpu.memory_space<vmem>>, vector<1x128xf32>
    %c14 = arith.constant 14 : index
    %c0_82 = arith.constant 0 : index
    %205 = vector.load %arg3[%c14, %c0_82] : memref<17x128xf32, #tpu.memory_space<vmem>>, vector<1x128xf32>
    %c15 = arith.constant 15 : index
    %c0_83 = arith.constant 0 : index
    %206 = vector.load %arg3[%c15, %c0_83] : memref<17x128xf32, #tpu.memory_space<vmem>>, vector<1x128xf32>
    %c16 = arith.constant 16 : index
    %c0_84 = arith.constant 0 : index
    %207 = vector.load %arg3[%c16, %c0_84] : memref<17x128xf32, #tpu.memory_space<vmem>>, vector<1x128xf32>
    %cst_85 = arith.constant dense<0.000000e+00> : vector<16xf32>
    %208 = vector.multi_reduction <add>, %201, %cst_85 [1] : vector<16x128xf32> to vector<16xf32>
    %209 = vector.shape_cast %208 : vector<16xf32> to vector<16x1xf32>
    %cst_86 = arith.constant 1.280000e+02 : f32
    %210 = vector.broadcast %cst_86 : f32 to vector<16x1xf32>
    %211 = arith.divf %209, %210 : vector<16x1xf32>
    %212 = vector.broadcast %211 : vector<16x1xf32> to vector<16x128xf32>
    %213 = arith.subf %201, %212 : vector<16x128xf32>
    %214 = arith.mulf %213, %213 : vector<16x128xf32>
    %cst_87 = arith.constant dense<0.000000e+00> : vector<16xf32>
    %215 = vector.multi_reduction <add>, %214, %cst_87 [1] : vector<16x128xf32> to vector<16xf32>
    %216 = vector.shape_cast %215 : vector<16xf32> to vector<16x1xf32>
    %cst_88 = arith.constant 1.280000e+02 : f32
    %217 = vector.broadcast %cst_88 : f32 to vector<16x1xf32>
    %218 = arith.divf %216, %217 : vector<16x1xf32>
    %219 = vector.broadcast %211 : vector<16x1xf32> to vector<16x128xf32>
    %220 = arith.subf %201, %219 : vector<16x128xf32>
    %cst_89 = arith.constant 9.99999974E-6 : f32
    %221 = vector.broadcast %cst_89 : f32 to vector<16x1xf32>
    %222 = arith.addf %218, %221 : vector<16x1xf32>
    %223 = math.rsqrt %222 : vector<16x1xf32>
    %224 = vector.broadcast %223 : vector<16x1xf32> to vector<16x128xf32>
    %225 = arith.mulf %220, %224 : vector<16x128xf32>
    %226 = vector.broadcast %202 : vector<1x128xf32> to vector<16x128xf32>
    %227 = arith.mulf %225, %226 : vector<16x128xf32>
    %228 = vector.broadcast %203 : vector<1x128xf32> to vector<16x128xf32>
    %229 = arith.addf %227, %228 : vector<16x128xf32>
    %c1_90 = arith.constant 1 : index
    %c0_91 = arith.constant 0 : index
    %c0_92 = arith.constant 0 : index
    %230 = vector.load %arg4[%c1_90, %c0_91, %c0_92] : memref<2x128x384xf32, #tpu.memory_space<vmem>>, vector<1x128x384xf32>
    %231 = vector.shape_cast %230 : vector<1x128x384xf32> to vector<128x384xf32>
    %cst_93 = arith.constant dense<0.000000e+00> : vector<16x384xf32>
    %232 = tpu.matmul %229, %231, %cst_93 {dimension_numbers = #tpu.dot_dimension_numbers<[1], [0], [0], [1], [0, 0, 1, 1], [], []>} : vector<16x128xf32>, vector<128x384xf32>, vector<16x384xf32> -> vector<16x384xf32>
    %c1_94 = arith.constant 1 : index
    %c0_95 = arith.constant 0 : index
    %c0_96 = arith.constant 0 : index
    %233 = vector.load %arg5[%c1_94, %c0_95, %c0_96] : memref<2x1x384xf32, #tpu.memory_space<vmem>>, vector<1x1x384xf32>
    %234 = vector.shape_cast %233 : vector<1x1x384xf32> to vector<1x384xf32>
    %235 = vector.broadcast %234 : vector<1x384xf32> to vector<16x384xf32>
    %236 = arith.addf %232, %235 : vector<16x384xf32>
    %237 = vector.extract_strided_slice %236 {offsets = [0, 0], sizes = [16, 32], strides = [1, 1]} : vector<16x384xf32> to vector<16x32xf32>
    %238 = vector.extract_strided_slice %236 {offsets = [0, 128], sizes = [16, 32], strides = [1, 1]} : vector<16x384xf32> to vector<16x32xf32>
    %239 = vector.extract_strided_slice %236 {offsets = [0, 256], sizes = [16, 32], strides = [1, 1]} : vector<16x384xf32> to vector<16x32xf32>
    %cst_97 = arith.constant dense<0.000000e+00> : vector<16x16xf32>
    %240 = tpu.matmul %237, %238, %cst_97 {dimension_numbers = #tpu.dot_dimension_numbers<[1], [1], [0], [0], [0, 0, 1, 0], [], []>} : vector<16x32xf32>, vector<16x32xf32>, vector<16x16xf32> -> vector<16x16xf32>
    %cst_98 = arith.constant 0.176776692 : f32
    %241 = vector.broadcast %cst_98 : f32 to vector<16x16xf32>
    %242 = arith.mulf %240, %241 : vector<16x16xf32>
    %cst_99 = arith.constant dense<0xFF800000> : vector<16xf32>
    %243 = vector.multi_reduction <maximumf>, %242, %cst_99 [1] : vector<16x16xf32> to vector<16xf32>
    %244 = vector.shape_cast %243 : vector<16xf32> to vector<16x1xf32>
    %245 = vector.broadcast %244 : vector<16x1xf32> to vector<16x16xf32>
    %246 = arith.subf %242, %245 : vector<16x16xf32>
    %247 = math.exp %246 : vector<16x16xf32>
    %cst_100 = arith.constant dense<0.000000e+00> : vector<16xf32>
    %248 = vector.multi_reduction <add>, %247, %cst_100 [1] : vector<16x16xf32> to vector<16xf32>
    %249 = vector.shape_cast %248 : vector<16xf32> to vector<16x1xf32>
    %250 = tpu.reciprocal %249 {approx = true} : vector<16x1xf32> -> vector<16x1xf32>
    %251 = vector.broadcast %250 : vector<16x1xf32> to vector<16x16xf32>
    %252 = arith.mulf %247, %251 : vector<16x16xf32>
    %cst_101 = arith.constant dense<0.000000e+00> : vector<16x32xf32>
    %253 = tpu.matmul %252, %239, %cst_101 {dimension_numbers = #tpu.dot_dimension_numbers<[1], [0], [0], [1], [0, 0, 1, 1], [], []>} : vector<16x16xf32>, vector<16x32xf32>, vector<16x32xf32> -> vector<16x32xf32>
    %254 = vector.extract_strided_slice %236 {offsets = [0, 32], sizes = [16, 32], strides = [1, 1]} : vector<16x384xf32> to vector<16x32xf32>
    %255 = vector.extract_strided_slice %236 {offsets = [0, 160], sizes = [16, 32], strides = [1, 1]} : vector<16x384xf32> to vector<16x32xf32>
    %256 = vector.extract_strided_slice %236 {offsets = [0, 288], sizes = [16, 32], strides = [1, 1]} : vector<16x384xf32> to vector<16x32xf32>
    %cst_102 = arith.constant dense<0.000000e+00> : vector<16x16xf32>
    %257 = tpu.matmul %254, %255, %cst_102 {dimension_numbers = #tpu.dot_dimension_numbers<[1], [1], [0], [0], [0, 0, 1, 0], [], []>} : vector<16x32xf32>, vector<16x32xf32>, vector<16x16xf32> -> vector<16x16xf32>
    %cst_103 = arith.constant 0.176776692 : f32
    %258 = vector.broadcast %cst_103 : f32 to vector<16x16xf32>
    %259 = arith.mulf %257, %258 : vector<16x16xf32>
    %cst_104 = arith.constant dense<0xFF800000> : vector<16xf32>
    %260 = vector.multi_reduction <maximumf>, %259, %cst_104 [1] : vector<16x16xf32> to vector<16xf32>
    %261 = vector.shape_cast %260 : vector<16xf32> to vector<16x1xf32>
    %262 = vector.broadcast %261 : vector<16x1xf32> to vector<16x16xf32>
    %263 = arith.subf %259, %262 : vector<16x16xf32>
    %264 = math.exp %263 : vector<16x16xf32>
    %cst_105 = arith.constant dense<0.000000e+00> : vector<16xf32>
    %265 = vector.multi_reduction <add>, %264, %cst_105 [1] : vector<16x16xf32> to vector<16xf32>
    %266 = vector.shape_cast %265 : vector<16xf32> to vector<16x1xf32>
    %267 = tpu.reciprocal %266 {approx = true} : vector<16x1xf32> -> vector<16x1xf32>
    %268 = vector.broadcast %267 : vector<16x1xf32> to vector<16x16xf32>
    %269 = arith.mulf %264, %268 : vector<16x16xf32>
    %cst_106 = arith.constant dense<0.000000e+00> : vector<16x32xf32>
    %270 = tpu.matmul %269, %256, %cst_106 {dimension_numbers = #tpu.dot_dimension_numbers<[1], [0], [0], [1], [0, 0, 1, 1], [], []>} : vector<16x16xf32>, vector<16x32xf32>, vector<16x32xf32> -> vector<16x32xf32>
    %271 = vector.extract_strided_slice %236 {offsets = [0, 64], sizes = [16, 32], strides = [1, 1]} : vector<16x384xf32> to vector<16x32xf32>
    %272 = vector.extract_strided_slice %236 {offsets = [0, 192], sizes = [16, 32], strides = [1, 1]} : vector<16x384xf32> to vector<16x32xf32>
    %273 = vector.extract_strided_slice %236 {offsets = [0, 320], sizes = [16, 32], strides = [1, 1]} : vector<16x384xf32> to vector<16x32xf32>
    %cst_107 = arith.constant dense<0.000000e+00> : vector<16x16xf32>
    %274 = tpu.matmul %271, %272, %cst_107 {dimension_numbers = #tpu.dot_dimension_numbers<[1], [1], [0], [0], [0, 0, 1, 0], [], []>} : vector<16x32xf32>, vector<16x32xf32>, vector<16x16xf32> -> vector<16x16xf32>
    %cst_108 = arith.constant 0.176776692 : f32
    %275 = vector.broadcast %cst_108 : f32 to vector<16x16xf32>
    %276 = arith.mulf %274, %275 : vector<16x16xf32>
    %cst_109 = arith.constant dense<0xFF800000> : vector<16xf32>
    %277 = vector.multi_reduction <maximumf>, %276, %cst_109 [1] : vector<16x16xf32> to vector<16xf32>
    %278 = vector.shape_cast %277 : vector<16xf32> to vector<16x1xf32>
    %279 = vector.broadcast %278 : vector<16x1xf32> to vector<16x16xf32>
    %280 = arith.subf %276, %279 : vector<16x16xf32>
    %281 = math.exp %280 : vector<16x16xf32>
    %cst_110 = arith.constant dense<0.000000e+00> : vector<16xf32>
    %282 = vector.multi_reduction <add>, %281, %cst_110 [1] : vector<16x16xf32> to vector<16xf32>
    %283 = vector.shape_cast %282 : vector<16xf32> to vector<16x1xf32>
    %284 = tpu.reciprocal %283 {approx = true} : vector<16x1xf32> -> vector<16x1xf32>
    %285 = vector.broadcast %284 : vector<16x1xf32> to vector<16x16xf32>
    %286 = arith.mulf %281, %285 : vector<16x16xf32>
    %cst_111 = arith.constant dense<0.000000e+00> : vector<16x32xf32>
    %287 = tpu.matmul %286, %273, %cst_111 {dimension_numbers = #tpu.dot_dimension_numbers<[1], [0], [0], [1], [0, 0, 1, 1], [], []>} : vector<16x16xf32>, vector<16x32xf32>, vector<16x32xf32> -> vector<16x32xf32>
    %288 = vector.extract_strided_slice %236 {offsets = [0, 96], sizes = [16, 32], strides = [1, 1]} : vector<16x384xf32> to vector<16x32xf32>
    %289 = vector.extract_strided_slice %236 {offsets = [0, 224], sizes = [16, 32], strides = [1, 1]} : vector<16x384xf32> to vector<16x32xf32>
    %290 = vector.extract_strided_slice %236 {offsets = [0, 352], sizes = [16, 32], strides = [1, 1]} : vector<16x384xf32> to vector<16x32xf32>
    %cst_112 = arith.constant dense<0.000000e+00> : vector<16x16xf32>
    %291 = tpu.matmul %288, %289, %cst_112 {dimension_numbers = #tpu.dot_dimension_numbers<[1], [1], [0], [0], [0, 0, 1, 0], [], []>} : vector<16x32xf32>, vector<16x32xf32>, vector<16x16xf32> -> vector<16x16xf32>
    %cst_113 = arith.constant 0.176776692 : f32
    %292 = vector.broadcast %cst_113 : f32 to vector<16x16xf32>
    %293 = arith.mulf %291, %292 : vector<16x16xf32>
    %cst_114 = arith.constant dense<0xFF800000> : vector<16xf32>
    %294 = vector.multi_reduction <maximumf>, %293, %cst_114 [1] : vector<16x16xf32> to vector<16xf32>
    %295 = vector.shape_cast %294 : vector<16xf32> to vector<16x1xf32>
    %296 = vector.broadcast %295 : vector<16x1xf32> to vector<16x16xf32>
    %297 = arith.subf %293, %296 : vector<16x16xf32>
    %298 = math.exp %297 : vector<16x16xf32>
    %cst_115 = arith.constant dense<0.000000e+00> : vector<16xf32>
    %299 = vector.multi_reduction <add>, %298, %cst_115 [1] : vector<16x16xf32> to vector<16xf32>
    %300 = vector.shape_cast %299 : vector<16xf32> to vector<16x1xf32>
    %301 = tpu.reciprocal %300 {approx = true} : vector<16x1xf32> -> vector<16x1xf32>
    %302 = vector.broadcast %301 : vector<16x1xf32> to vector<16x16xf32>
    %303 = arith.mulf %298, %302 : vector<16x16xf32>
    %cst_116 = arith.constant dense<0.000000e+00> : vector<16x32xf32>
    %304 = tpu.matmul %303, %290, %cst_116 {dimension_numbers = #tpu.dot_dimension_numbers<[1], [0], [0], [1], [0, 0, 1, 1], [], []>} : vector<16x16xf32>, vector<16x32xf32>, vector<16x32xf32> -> vector<16x32xf32>
    %305 = tpu.concatenate %253, %270, %287, %304 in 1 : vector<16x32xf32>, vector<16x32xf32>, vector<16x32xf32>, vector<16x32xf32> -> vector<16x128xf32>
    %c1_117 = arith.constant 1 : index
    %c0_118 = arith.constant 0 : index
    %c0_119 = arith.constant 0 : index
    %306 = vector.load %arg6[%c1_117, %c0_118, %c0_119] : memref<2x128x128xf32, #tpu.memory_space<vmem>>, vector<1x128x128xf32>
    %307 = vector.shape_cast %306 : vector<1x128x128xf32> to vector<128x128xf32>
    %cst_120 = arith.constant dense<0.000000e+00> : vector<16x128xf32>
    %308 = tpu.matmul %305, %307, %cst_120 {dimension_numbers = #tpu.dot_dimension_numbers<[1], [0], [0], [1], [0, 0, 1, 1], [], []>} : vector<16x128xf32>, vector<128x128xf32>, vector<16x128xf32> -> vector<16x128xf32>
    %309 = vector.broadcast %204 : vector<1x128xf32> to vector<16x128xf32>
    %310 = arith.addf %308, %309 : vector<16x128xf32>
    %311 = arith.addf %201, %310 : vector<16x128xf32>
    %cst_121 = arith.constant dense<0.000000e+00> : vector<16xf32>
    %312 = vector.multi_reduction <add>, %311, %cst_121 [1] : vector<16x128xf32> to vector<16xf32>
    %313 = vector.shape_cast %312 : vector<16xf32> to vector<16x1xf32>
    %cst_122 = arith.constant 1.280000e+02 : f32
    %314 = vector.broadcast %cst_122 : f32 to vector<16x1xf32>
    %315 = arith.divf %313, %314 : vector<16x1xf32>
    %316 = vector.broadcast %315 : vector<16x1xf32> to vector<16x128xf32>
    %317 = arith.subf %311, %316 : vector<16x128xf32>
    %318 = arith.mulf %317, %317 : vector<16x128xf32>
    %cst_123 = arith.constant dense<0.000000e+00> : vector<16xf32>
    %319 = vector.multi_reduction <add>, %318, %cst_123 [1] : vector<16x128xf32> to vector<16xf32>
    %320 = vector.shape_cast %319 : vector<16xf32> to vector<16x1xf32>
    %cst_124 = arith.constant 1.280000e+02 : f32
    %321 = vector.broadcast %cst_124 : f32 to vector<16x1xf32>
    %322 = arith.divf %320, %321 : vector<16x1xf32>
    %323 = vector.broadcast %315 : vector<16x1xf32> to vector<16x128xf32>
    %324 = arith.subf %311, %323 : vector<16x128xf32>
    %cst_125 = arith.constant 9.99999974E-6 : f32
    %325 = vector.broadcast %cst_125 : f32 to vector<16x1xf32>
    %326 = arith.addf %322, %325 : vector<16x1xf32>
    %327 = math.rsqrt %326 : vector<16x1xf32>
    %328 = vector.broadcast %327 : vector<16x1xf32> to vector<16x128xf32>
    %329 = arith.mulf %324, %328 : vector<16x128xf32>
    %330 = vector.broadcast %205 : vector<1x128xf32> to vector<16x128xf32>
    %331 = arith.mulf %329, %330 : vector<16x128xf32>
    %332 = vector.broadcast %206 : vector<1x128xf32> to vector<16x128xf32>
    %333 = arith.addf %331, %332 : vector<16x128xf32>
    %c1_126 = arith.constant 1 : index
    %c0_127 = arith.constant 0 : index
    %c0_128 = arith.constant 0 : index
    %334 = vector.load %arg7[%c1_126, %c0_127, %c0_128] : memref<2x128x512xf32, #tpu.memory_space<vmem>>, vector<1x128x512xf32>
    %335 = vector.shape_cast %334 : vector<1x128x512xf32> to vector<128x512xf32>
    %cst_129 = arith.constant dense<0.000000e+00> : vector<16x512xf32>
    %336 = tpu.matmul %333, %335, %cst_129 {dimension_numbers = #tpu.dot_dimension_numbers<[1], [0], [0], [1], [0, 0, 1, 1], [], []>} : vector<16x128xf32>, vector<128x512xf32>, vector<16x512xf32> -> vector<16x512xf32>
    %c1_130 = arith.constant 1 : index
    %c0_131 = arith.constant 0 : index
    %c0_132 = arith.constant 0 : index
    %337 = vector.load %arg8[%c1_130, %c0_131, %c0_132] : memref<2x1x512xf32, #tpu.memory_space<vmem>>, vector<1x1x512xf32>
    %338 = vector.shape_cast %337 : vector<1x1x512xf32> to vector<1x512xf32>
    %339 = vector.broadcast %338 : vector<1x512xf32> to vector<16x512xf32>
    %340 = arith.addf %336, %339 : vector<16x512xf32>
    %cst_133 = arith.constant 5.000000e-01 : f32
    %341 = vector.broadcast %cst_133 : f32 to vector<16x512xf32>
    %342 = arith.mulf %341, %340 : vector<16x512xf32>
    %cst_134 = arith.constant 4.471500e-02 : f32
    %343 = vector.broadcast %cst_134 : f32 to vector<16x512xf32>
    %344 = arith.mulf %343, %340 : vector<16x512xf32>
    %345 = arith.mulf %344, %340 : vector<16x512xf32>
    %346 = arith.mulf %345, %340 : vector<16x512xf32>
    %347 = arith.addf %340, %346 : vector<16x512xf32>
    %cst_135 = arith.constant 0.797884583 : f32
    %348 = vector.broadcast %cst_135 : f32 to vector<16x512xf32>
    %349 = arith.mulf %348, %347 : vector<16x512xf32>
    %350 = math.tanh %349 : vector<16x512xf32>
    %cst_136 = arith.constant 1.000000e+00 : f32
    %351 = vector.broadcast %cst_136 : f32 to vector<16x512xf32>
    %352 = arith.addf %351, %350 : vector<16x512xf32>
    %353 = arith.mulf %342, %352 : vector<16x512xf32>
    %c1_137 = arith.constant 1 : index
    %c0_138 = arith.constant 0 : index
    %c0_139 = arith.constant 0 : index
    %354 = vector.load %arg9[%c1_137, %c0_138, %c0_139] : memref<2x512x128xf32, #tpu.memory_space<vmem>>, vector<1x512x128xf32>
    %355 = vector.shape_cast %354 : vector<1x512x128xf32> to vector<512x128xf32>
    %cst_140 = arith.constant dense<0.000000e+00> : vector<16x128xf32>
    %356 = tpu.matmul %353, %355, %cst_140 {dimension_numbers = #tpu.dot_dimension_numbers<[1], [0], [0], [1], [0, 0, 1, 1], [], []>} : vector<16x512xf32>, vector<512x128xf32>, vector<16x128xf32> -> vector<16x128xf32>
    %357 = vector.broadcast %207 : vector<1x128xf32> to vector<16x128xf32>
    %358 = arith.addf %356, %357 : vector<16x128xf32>
    %359 = arith.addf %311, %358 : vector<16x128xf32>
    %c3 = arith.constant 3 : index
    %c0_141 = arith.constant 0 : index
    %360 = vector.load %arg3[%c3, %c0_141] : memref<17x128xf32, #tpu.memory_space<vmem>>, vector<1x128xf32>
    %c4 = arith.constant 4 : index
    %c0_142 = arith.constant 0 : index
    %361 = vector.load %arg3[%c4, %c0_142] : memref<17x128xf32, #tpu.memory_space<vmem>>, vector<1x128xf32>
    %cst_143 = arith.constant dense<0.000000e+00> : vector<16xf32>
    %362 = vector.multi_reduction <add>, %359, %cst_143 [1] : vector<16x128xf32> to vector<16xf32>
    %363 = vector.shape_cast %362 : vector<16xf32> to vector<16x1xf32>
    %cst_144 = arith.constant 1.280000e+02 : f32
    %364 = vector.broadcast %cst_144 : f32 to vector<16x1xf32>
    %365 = arith.divf %363, %364 : vector<16x1xf32>
    %366 = vector.broadcast %365 : vector<16x1xf32> to vector<16x128xf32>
    %367 = arith.subf %359, %366 : vector<16x128xf32>
    %368 = arith.mulf %367, %367 : vector<16x128xf32>
    %cst_145 = arith.constant dense<0.000000e+00> : vector<16xf32>
    %369 = vector.multi_reduction <add>, %368, %cst_145 [1] : vector<16x128xf32> to vector<16xf32>
    %370 = vector.shape_cast %369 : vector<16xf32> to vector<16x1xf32>
    %cst_146 = arith.constant 1.280000e+02 : f32
    %371 = vector.broadcast %cst_146 : f32 to vector<16x1xf32>
    %372 = arith.divf %370, %371 : vector<16x1xf32>
    %373 = vector.broadcast %365 : vector<16x1xf32> to vector<16x128xf32>
    %374 = arith.subf %359, %373 : vector<16x128xf32>
    %cst_147 = arith.constant 9.99999974E-6 : f32
    %375 = vector.broadcast %cst_147 : f32 to vector<16x1xf32>
    %376 = arith.addf %372, %375 : vector<16x1xf32>
    %377 = math.rsqrt %376 : vector<16x1xf32>
    %378 = vector.broadcast %377 : vector<16x1xf32> to vector<16x128xf32>
    %379 = arith.mulf %374, %378 : vector<16x128xf32>
    %380 = vector.broadcast %360 : vector<1x128xf32> to vector<16x128xf32>
    %381 = arith.mulf %379, %380 : vector<16x128xf32>
    %382 = vector.broadcast %361 : vector<1x128xf32> to vector<16x128xf32>
    %383 = arith.addf %381, %382 : vector<16x128xf32>
    %c0_148 = arith.constant 0 : index
    %c0_149 = arith.constant 0 : index
    %c0_150 = arith.constant 0 : index
    %384 = vector.load %arg10[%c0_148, %c0_149, %c0_150] : memref<1x16x128xf32, #tpu.memory_space<vmem>>, vector<1x16x128xf32>
    %385 = vector.shape_cast %384 : vector<1x16x128xf32> to vector<16x128xf32>
    %386 = vector.shape_cast %383 : vector<16x128xf32> to vector<1x16x128xf32>
    tpu.vector_store %arg10[%c0_148, %c0_149, %c0_150], %386 {strides = array<i32>} : memref<1x16x128xf32, #tpu.memory_space<vmem>>, vector<1x16x128xf32>,
    return
  }
  func.func @transform_0(%arg0: i32) -> (i32, i32, i32) {
    %c0_i32 = arith.constant 0 : i32
    %c0_i32_0 = arith.constant 0 : i32
    %c0_i32_1 = arith.constant 0 : i32
    return %arg0, %c0_i32, %c0_i32_0 : i32, i32, i32
  }
  func.func @transform_1(%arg0: i32) -> (i32, i32) {
    %c0_i32 = arith.constant 0 : i32
    %c0_i32_0 = arith.constant 0 : i32
    %c0_i32_1 = arith.constant 0 : i32
    return %c0_i32, %c0_i32_0 : i32, i32
  }
  func.func @transform_2(%arg0: i32) -> (i32, i32) {
    %c0_i32 = arith.constant 0 : i32
    %c0_i32_0 = arith.constant 0 : i32
    %c0_i32_1 = arith.constant 0 : i32
    return %c0_i32, %c0_i32_0 : i32, i32
  }
  func.func @transform_3(%arg0: i32) -> (i32, i32, i32) {
    %c0_i32 = arith.constant 0 : i32
    %c0_i32_0 = arith.constant 0 : i32
    %c0_i32_1 = arith.constant 0 : i32
    %c0_i32_2 = arith.constant 0 : i32
    return %c0_i32, %c0_i32_0, %c0_i32_1 : i32, i32, i32
  }
  func.func @transform_4(%arg0: i32) -> (i32, i32, i32) {
    %c0_i32 = arith.constant 0 : i32
    %c0_i32_0 = arith.constant 0 : i32
    %c0_i32_1 = arith.constant 0 : i32
    %c0_i32_2 = arith.constant 0 : i32
    return %c0_i32, %c0_i32_0, %c0_i32_1 : i32, i32, i32
  }
  func.func @transform_5(%arg0: i32) -> (i32, i32, i32) {
    %c0_i32 = arith.constant 0 : i32
    %c0_i32_0 = arith.constant 0 : i32
    %c0_i32_1 = arith.constant 0 : i32
    %c0_i32_2 = arith.constant 0 : i32
    return %c0_i32, %c0_i32_0, %c0_i32_1 : i32, i32, i32
  }
  func.func @transform_6(%arg0: i32) -> (i32, i32, i32) {
    %c0_i32 = arith.constant 0 : i32
    %c0_i32_0 = arith.constant 0 : i32
    %c0_i32_1 = arith.constant 0 : i32
    %c0_i32_2 = arith.constant 0 : i32
    return %c0_i32, %c0_i32_0, %c0_i32_1 : i32, i32, i32
  }
  func.func @transform_7(%arg0: i32) -> (i32, i32, i32) {
    %c0_i32 = arith.constant 0 : i32
    %c0_i32_0 = arith.constant 0 : i32
    %c0_i32_1 = arith.constant 0 : i32
    %c0_i32_2 = arith.constant 0 : i32
    return %c0_i32, %c0_i32_0, %c0_i32_1 : i32, i32, i32
  }
  func.func @transform_8(%arg0: i32) -> (i32, i32, i32) {
    %c0_i32 = arith.constant 0 : i32
    %c0_i32_0 = arith.constant 0 : i32
    %c0_i32_1 = arith.constant 0 : i32
    %c0_i32_2 = arith.constant 0 : i32
    return %c0_i32, %c0_i32_0, %c0_i32_1 : i32, i32, i32
  }
  func.func @transform_9(%arg0: i32) -> (i32, i32, i32) {
    %c0_i32 = arith.constant 0 : i32
    %c0_i32_0 = arith.constant 0 : i32
    %c0_i32_1 = arith.constant 0 : i32
    return %arg0, %c0_i32, %c0_i32_0 : i32, i32, i32
  }
}

</mosaic_0001>

<bundles_post_ra>
// kernel: tpu_custom_call.1
= control target key start
LH: loop header
LB: loop body
LE: loop exit
PB: predicated region body
PF: predicated region fallthrough
CT: control target
= control target key end

     0   :  { %s6976_s0 = inlined_call_operand.hbm [shape: f32[2,16,128], index: 0, kind: input, shape index: {}]   ;;  %s6977_s1 = inlined_call_operand.hbm [shape: f32[128,128], index: 1, kind: input, shape index: {}]   ;;  %s6978_s2 = inlined_call_operand.hbm [shape: f32[17,128], index: 2, kind: input, shape index: {}]   ;;  %s6979_s3 = inlined_call_operand.hbm [shape: f32[2,128,384], index: 3, kind: input, shape index: {}]   ;;  %s6980_s4 = inlined_call_operand.vmem [shape: f32[2,1,384], index: 4, kind: input, shape index: {}]   ;;  %s6981_s5 = inlined_call_operand.hbm [shape: f32[2,128,128], index: 5, kind: input, shape index: {}]   ;;  %s6982_s6 = inlined_call_operand.hbm [shape: f32[2,128,512], index: 6, kind: input, shape index: {}]   ;;  %s6983_s7 = inlined_call_operand.vmem [shape: f32[2,1,512], index: 7, kind: input, shape index: {}]   ;;  %s6984_s8 = inlined_call_operand.hbm [shape: f32[2,512,128], index: 8, kind: input, shape index: {}]   ;;  %s6985_s9 = inlined_call_operand.hbm [shape: f32[2,16,128], index: 9, kind: output, shape index: {}]  }
   0x1   :  { %6994 = sst [smem:[#allocation20_spill]] %s6977_s1 }
   0x2   :  { %6995 = sst [smem:[#allocation21_spill]] %s6979_s3 }
   0x3   :  { %6996 = sst [smem:[#allocation22_spill]] %s6985_s9 }
   0x4   :  { %14 = vsyncpa [#allocation3], 0 }
   0x5   :  { %16 = vsyncpa [#allocation3 + $0x1], 0 }
   0x6   :  { %17 = vsyncpa [#allocation6], 0 }
   0x7   :  { %18 = vsyncpa [#allocation9], 0 }
   0x8   :  { %19 = vsyncpa [#allocation12], 0 }
   0x9   :  { %20 = vsyncpa [#allocation4], 0 }
   0xa   :  { %22 = vsyncpa [#allocation4 + $0x1], 0  ;;  %s6212_s30 = smov 0   ;;  %s6214_s10 = smov 0  }
   0xb   :  { %s6216_s11 = smov 0   ;;  %s6218_s12 = smov 0  }
   0xc LB: > { %s6142_s13 = smov [#allocation5]   ;;  %s6233_s15 = sadd.s32 4294967295, %s6140_s12   ;;  %s6140_s12 = sphi %s6218_s12, %s7026_s12   ;;  %s6136_s11 = sphi %s6216_s11, %s7025_s11   ;;  %s6132_s10 = sphi %s6214_s10, %s7024_s10   ;;  %s6128_s30 = sphi %s6212_s30, %s7023_s30  }
   0xd   : > { %s265_s14 = sshll.u32 %s6142_s13, 4  ;;  %p4284_p0 = scmp.ge.s32.totalorder %s6140_s12, 1  ;;  %s6238_s14 = int_to_ptr.vmem [resolvable:$true] %s265_s14 }
   0xe   : > { %p6989_p1 = scmp.eq.s32.totalorder %s6233_s15, 0  ;;  %p253_p2 = scmp.lt.s32.totalorder %s6140_s12, 3 }
   0xf   : > { %s6143_s17 = smov [#allocation8]   ;;  %s6144_s20 = smov [#allocation11]  }
  0x10   : > { %p6240_p3 = pnand %p4284_p0, %p253_p2  ;;  %s291_s18 = sshll.u32 %s6143_s17, 4  ;;  %s6253_s18 = int_to_ptr.vmem [resolvable:$true] %s291_s18 }
  0x11   : > { %s6255_s21 = sshll.u32 %s6144_s20, 4  ;;  %s6999_s1 = sld [smem:[#allocation20_spill]]  ;;  %s321_s21 = int_to_ptr.vmem [resolvable:$true] %s6255_s21 }
  0x12   : > { %s6997_s16 = scalar_select %p6240_p3, 1, 0 }
  0x13   : > { %p5559_p5 = pneg %p6240_p3 }
  0x15   : > { %p6249_p6 = pnand %p5559_p5, %p6989_p1 }
  0x17   : > { %s5864_s24 = scalar_lea.hbm %s6999_s1, 2048  ;;  %p6265_p8 = pneg %p6249_p6 }
  0x18   : > { %p5865_p7 = scmp.ne.s32.totalorder %s6999_s1, %s5864_s24  ;;  %p5871_p11 = scmp.lt.u32.totalorder %s5864_s24, %s6999_s1 }
  0x1a   : > { %p5867_p9 = pnand %p6265_p8, %p5865_p7 }
  0x1c   : > { %p5868_p10 = pneg %p5867_p9 }
  0x1e   : > { %p5873_p12 = pnand %p5871_p11, %p5868_p10 }
  0x20   : > { %5876 = shalt.err (!%p5873_p12)
}
  0x21   : > { %s5877_s13 = scalar_lea.vmem %s6238_s14, 2048  ;;  %p5885_p5 = scmp.lt.s32.totalorder %s6238_s14, %s6238_s14 }
  0x22   : > { %p5878_p13 = scmp.ne.s32.totalorder %s6238_s14, %s5877_s13  ;;  %p5886_p4 = scmp.lt.s32.totalorder %s5877_s13, %s5877_s13 }
  0x24   : > { %p5880_p0 = pnand %p5878_p13, %p6265_p8  ;;  %p5887_p7 = por %p5886_p4, %p5885_p5 }
  0x26   : > { %p5881_p2 = pneg %p5880_p0 }
  0x28   : > { %p5888_p9 = pnand %p5887_p7, %p5881_p2 }
  0x2a   : > { %5891 = shalt.err (!%p5888_p9)
}
  0x2b   : > { %s6987_s17 = smov 128   ;;  %s6991_s20 = smov 8  }
  0x2c   : > { %5562 = dma.hbm_to_vmem [thread:$0]  (!%p6249_p6), %s6999_s1, 2048, %s6238_s14, [#allocation6], %s6987_s17, %s6987_s17, %s6991_s20  }
  0x2d   : > { %s7001_s3 = sld [smem:[#allocation21_spill]] }
  0x33   : > { %s5892_s26 = scalar_lea.hbm %s7001_s3, 12288 }
  0x34   : > { %p5893_p4 = scmp.ne.s32.totalorder %s7001_s3, %s5892_s26  ;;  %p5899_p12 = scmp.lt.u32.totalorder %s5892_s26, %s7001_s3 }
  0x36   : > { %p5895_p10 = pnand %p5893_p4, %p6265_p8 }
  0x38   : > { %p5896_p11 = pneg %p5895_p10 }
  0x3a   : > { %p5901_p13 = pnand %p5899_p12, %p5896_p11 }
  0x3c   : > { %5904 = shalt.err (!%p5901_p13)
}
  0x3d   : > { %s5905_s14 = scalar_lea.vmem %s6253_s18, 12288  ;;  %p5913_p7 = scmp.lt.s32.totalorder %s6253_s18, %s6253_s18 }
  0x3e   : > { %p5906_p0 = scmp.ne.s32.totalorder %s6253_s18, %s5905_s14  ;;  %p5914_p9 = scmp.lt.s32.totalorder %s5905_s14, %s5905_s14 }
  0x40   : > { %p5908_p2 = pnand %p5906_p0, %p6265_p8  ;;  %p5915_p4 = por %p5914_p9, %p5913_p7 }
  0x42   : > { %p5909_p5 = pneg %p5908_p2 }
  0x44   : > { %p5916_p10 = pnand %p5915_p4, %p5909_p5 }
  0x46   : > { %5919 = shalt.err (!%p5916_p10)
}
  0x47   : > { %s6147_s22 = smov 384   ;;  %s6148_s9 = smov 24  }
  0x48   : > { %5568 = dma.hbm_to_vmem [thread:$0]  (!%p6249_p6), %s7001_s3, 12288, %s6253_s18, [#allocation9], %s6147_s22, %s6147_s22, %s6148_s9  }
  0x49   : > { %s5920_s28 = scalar_lea.hbm %s6982_s6, 16384 }
  0x4a   : > { %p5921_p11 = scmp.ne.s32.totalorder %s6982_s6, %s5920_s28  ;;  %p5927_p0 = scmp.lt.u32.totalorder %s5920_s28, %s6982_s6 }
  0x4c   : > { %p5923_p12 = pnand %p5921_p11, %p6265_p8 }
  0x4e   : > { %p5924_p13 = pneg %p5923_p12 }
  0x50   : > { %p5929_p2 = pnand %p5927_p0, %p5924_p13 }
  0x52   : > { %5932 = shalt.err (!%p5929_p2)
}
  0x53   : > { %s5933_s23 = scalar_lea.vmem %s321_s21, 16384  ;;  %p5941_p4 = scmp.lt.s32.totalorder %s321_s21, %s321_s21 }
  0x54   : > { %p5934_p5 = scmp.ne.s32.totalorder %s321_s21, %s5933_s23  ;;  %p5942_p10 = scmp.lt.s32.totalorder %s5933_s23, %s5933_s23 }
  0x56   : > { %p5936_p7 = pnand %p5934_p5, %p6265_p8  ;;  %p5943_p1 = por %p5942_p10, %p5941_p4 }
  0x58   : > { %p5937_p9 = pneg %p5936_p7 }
  0x5a   : > { %p5944_p3 = pnand %p5943_p1, %p5937_p9 }
  0x5c   : > { %5947 = shalt.err (!%p5944_p3)
}
  0x5d   : > { %s6149_s18 = smov 512   ;;  %s6150_s22 = smov 32  }
  0x5e   : > { %5574 = dma.hbm_to_vmem [thread:$0]  (!%p6249_p6), %s6982_s6, 16384, %s321_s21, [#allocation12], %s6149_s18, %s6149_s18, %s6150_s22  }
  0x5f   : > { %s6151_s24 = smov [#allocation7]   ;;  %s6152_s26 = smov [#allocation10]  }
  0x60   : > { %s278_s25 = sshll.u32 %s6151_s24, 4  ;;  %s307_s28 = sshll.u32 %s6152_s26, 4  ;;  %s279_s25 = int_to_ptr.vmem [resolvable:$true] %s278_s25  ;;  %s308_s28 = int_to_ptr.vmem [resolvable:$true] %s307_s28 }
  0x61   : > { %s5948_s14 = scalar_lea.hbm %s6978_s2, 384 }
  0x62   : > { %p5949_p1 = scmp.ne.s32.totalorder %s6978_s2, %s5948_s14  ;;  %p5955_p12 = scmp.lt.u32.totalorder %s5948_s14, %s6978_s2 }
  0x64   : > { %p5951_p3 = pnand %p5949_p1, %p6265_p8 }
  0x66   : > { %p5952_p11 = pneg %p5951_p3 }
  0x68   : > { %p5957_p13 = pnand %p5955_p12, %p5952_p11 }
  0x6a   : > { %5960 = shalt.err (!%p5957_p13)
}
  0x6b   : > { %s5961_s21 = scalar_lea.vmem %s279_s25, 384  ;;  %p5969_p7 = scmp.lt.s32.totalorder %s279_s25, %s279_s25 }
  0x6c   : > { %p5962_p0 = scmp.ne.s32.totalorder %s279_s25, %s5961_s21  ;;  %p5970_p9 = scmp.lt.s32.totalorder %s5961_s21, %s5961_s21 }
  0x6e   : > { %p5964_p2 = pnand %p5962_p0, %p6265_p8  ;;  %p5971_p4 = por %p5970_p9, %p5969_p7 }
  0x70   : > { %p5965_p5 = pneg %p5964_p2 }
  0x72   : > { %p5972_p10 = pnand %p5971_p4, %p5965_p5 }
  0x74   : > { %5975 = shalt.err (!%p5972_p10)
}
  0x75   : > { %s7002_s20 = smov 8   ;;  %s7003_s18 = smov 128  }
  0x76   : > { %5565 = dma.hbm_to_vmem [thread:$0]  (!%p6249_p6), %s6978_s2, 384, %s279_s25, [#allocation6], %s7003_s18, %s7003_s18, %s7002_s20  }
  0x77   : > { %s5976_s9 = scalar_lea.hbm %s6981_s5, 4096 }
  0x78   : > { %p5977_p1 = scmp.ne.s32.totalorder %s6981_s5, %s5976_s9  ;;  %p5983_p12 = scmp.lt.u32.totalorder %s5976_s9, %s6981_s5 }
  0x7a   : > { %p5979_p3 = pnand %p5977_p1, %p6265_p8 }
  0x7c   : > { %p5980_p11 = pneg %p5979_p3 }
  0x7e   : > { %p5985_p13 = pnand %p5983_p12, %p5980_p11 }
  0x80   : > { %5988 = shalt.err (!%p5985_p13)
}
  0x81   : > { %s5989_s14 = scalar_lea.vmem %s308_s28, 4096  ;;  %p5997_p7 = scmp.lt.s32.totalorder %s308_s28, %s308_s28 }
  0x82   : > { %p5990_p0 = scmp.ne.s32.totalorder %s308_s28, %s5989_s14  ;;  %p5998_p9 = scmp.lt.s32.totalorder %s5989_s14, %s5989_s14 }
  0x84   : > { %p5992_p2 = pnand %p5990_p0, %p6265_p8  ;;  %p5999_p4 = por %p5998_p9, %p5997_p7 }
  0x86   : > { %p5993_p5 = pneg %p5992_p2 }
  0x88   : > { %p6000_p10 = pnand %p5999_p4, %p5993_p5 }
  0x8a   : > { %6003 = shalt.err (!%p6000_p10)
}
  0x8b   : > { %5571 = dma.hbm_to_vmem [thread:$0]  (!%p6249_p6), %s6981_s5, 4096, %s308_s28, [#allocation9], %s7003_s18, %s7003_s18, %s7002_s20  }
  0x8c   : > { %s6153_s21 = smov [#allocation13]   ;;  %s6004_s17 = scalar_lea.hbm %s6984_s8, 16384 }
  0x8d   : > { %s336_s1 = sshll.u32 %s6153_s21, 4  ;;  %p6005_p1 = scmp.ne.s32.totalorder %s6984_s8, %s6004_s17  ;;  %s337_s1 = int_to_ptr.vmem [resolvable:$true] %s336_s1 }
  0x8e   : > { %p6011_p12 = scmp.lt.u32.totalorder %s6004_s17, %s6984_s8 }
  0x8f   : > { %p6007_p3 = pnand %p6005_p1, %p6265_p8 }
  0x91   : > { %p6008_p11 = pneg %p6007_p3 }
  0x93   : > { %p6013_p13 = pnand %p6011_p12, %p6008_p11 }
  0x95   : > { %6016 = shalt.err (!%p6013_p13)
}
  0x96   : > { %s6017_s28 = scalar_lea.vmem %s337_s1, 16384  ;;  %p6025_p7 = scmp.lt.s32.totalorder %s337_s1, %s337_s1 }
  0x97   : > { %p6018_p0 = scmp.ne.s32.totalorder %s337_s1, %s6017_s28  ;;  %p6026_p9 = scmp.lt.s32.totalorder %s6017_s28, %s6017_s28 }
  0x99   : > { %p6020_p2 = pnand %p6018_p0, %p6265_p8  ;;  %p6027_p4 = por %p6026_p9, %p6025_p7 }
  0x9b   : > { %p6021_p5 = pneg %p6020_p2 }
  0x9d   : > { %p6028_p10 = pnand %p6027_p4, %p6021_p5 }
  0x9f   : > { %6031 = shalt.err (!%p6028_p10)
}
  0xa0   : > { %5577 = dma.hbm_to_vmem [thread:$0]  (!%p6249_p6), %s6984_s8, 16384, %s337_s1, [#allocation12], %s7003_s18, %s7003_s18, %s7002_s20  }
  0xa1   : > { %s4283_s19 = sadd.s32 4294967294, %s6140_s12   ;;  %s6396_s27 = sadd.s32 1, %s6140_s12  }
  0xa2   : > { %s32_s25 = ssub.s32 %s6140_s12, %s6396_s27  ;;  %s35_s23 = sadd.s32 1, %s6136_s11 }
  0xa3   : > { %p33_p8 = scmp.eq.s32.totalorder %s32_s25, 0  ;;  %p42_p1 = scmp.ne.s32.totalorder %s6136_s11, %s6132_s10 }
  0xa4   : > { %p43_p3 = scmp.eq.s32.totalorder %s6140_s12, 0  ;;  %p48_p11 = scmp.ne.s32.totalorder %s6132_s10, %s6128_s30 }
  0xa5   : > { %s6407_s21 = scalar_select %p33_p8, %s6136_s11, %s35_s23  }
  0xa6   : > { %p6409_p12 = por %p43_p3, %p42_p1  ;;  %p7005_p13 = scmp.eq.s32.totalorder %s6233_s15, 0 }
  0xa7   : > { %p240_p0 = scmp.eq.s32.totalorder %s6233_s15, 1  ;;  %p246_p2 = scmp.eq.s32.totalorder %s4283_s19, 1 }
  0xa8   : > { %p6415_p6 = por %p7005_p13, %p48_p11  ;;  %p5592_p5 = scmp.lt.s32.totalorder %s6140_s12, 2 }
  0xa9   : > { %s350_s22 = sand.u32 1, %s6136_s11   ;;  %p6422_p7 = por %p240_p0, %p42_p1 }
  0xaa   : > { %p6426_p9 = por %p246_p2, %p48_p11  ;;  %s4292_s24 = sshll.u32 %s350_s22, 4 }
  0xab   : > { %s7007_s17 = scalar_select %p6422_p7, 1, 0 }
  0xac   : > { %s7008_s9 = scalar_select %p6426_p9, 1, 0 }
  0xad   : > { %s4376_s26 = sshll.u32 %s6140_s12, 8  ;;  %s354_s14 = scalar_lea.vmem [#allocation2], %s4292_s24 }
  0xae   : > { %s6434_s13 = scalar_lea.hbm %s6976_s0, %s4376_s26  ;;  %s361_s19 = sshll.u32 %s354_s14, 4  ;;  %s6436_s19 = int_to_ptr.vmem [resolvable:$true] %s361_s19 }
  0xaf   : > { %p6440_p4 = pnand %p5592_p5, %p6409_p12  ;;  %s6444_s23 = scalar_lea.sflag [#allocation3], %s350_s22 }
  0xb0   : > { %s6032_s29 = scalar_lea.hbm %s6434_s13, 256  ;;  %s6037_s3 = scalar_lea.hbm %s6976_s0, 512 }
  0xb1   : > { %p6033_p10 = scmp.ne.s32.totalorder %s6434_s13, %s6032_s29  ;;  %p6034_p8 = pneg %p6440_p4 }
  0xb2   : > { %p6038_p11 = scmp.lt.u32.totalorder %s6434_s13, %s6976_s0  ;;  %p6039_p12 = scmp.lt.u32.totalorder %s6037_s3, %s6032_s29 }
  0xb3   : > { %p6035_p1 = pnand %p6034_p8, %p6033_p10  ;;  %p6041_p0 = scmp.lt.u32.totalorder %s6032_s29, %s6434_s13 }
  0xb4   : > { %p6040_p13 = por %p6039_p12, %p6038_p11 }
  0xb5   : > { %p6036_p3 = pneg %p6035_p1 }
  0xb6   : > { %p6042_p2 = por %p6041_p0, %p6040_p13 }
  0xb8   : > { %p6043_p5 = pnand %p6042_p2, %p6036_p3 }
  0xba   : > { %6046 = shalt.err (!%p6043_p5)
}
  0xbb   : > { %s6047_s22 = scalar_lea.vmem %s6436_s19, 256  ;;  %s6154_s24 = smov [#allocation2]  }
  0xbc   : > { %p6048_p10 = scmp.ne.s32.totalorder %s6436_s19, %s6047_s22  ;;  %s6052_s26 = sshll.u32 %s6154_s24, 4  ;;  %s6053_s26 = int_to_ptr.vmem [resolvable:$false] %s6052_s26 }
  0xbd   : > { %s6054_s28 = scalar_lea.vmem %s6053_s26, 512  ;;  %p6055_p7 = scmp.lt.s32.totalorder %s6436_s19, %s6053_s26 }
  0xbe   : > { %p6050_p1 = pnand %p6048_p10, %p6034_p8  ;;  %p6056_p11 = scmp.lt.s32.totalorder %s6054_s28, %s6047_s22 }
  0xc0   : > { %p6051_p9 = pneg %p6050_p1  ;;  %p6057_p12 = por %p6056_p11, %p6055_p7 }
  0xc2   : > { %p6058_p13 = pnand %p6057_p12, %p6051_p9 }
  0xc4   : > { %6061 = shalt.err (!%p6058_p13)
}
  0xc5   : > { %5581 = dma.hbm_to_vmem [thread:$0]  (!%p6440_p4), %s6434_s13, 256, %s6436_s19, %s6444_s23, %s7003_s18, %s7003_s18, %s7002_s20  }
  0xc6   : > { %p7010_p8 = scmp.ne.s32.totalorder %s6997_s16, 0 }
  0xc7   : > { %s6478_s29 = sand.u32 (!%p7010_p8), 1, %s6132_s10  }
  0xc8   : > { %373 = sbr.rel (%p7010_p8) target bundleno = 9173 (0x23d5), region = 56  ;;  %s4296_s3 = sshll.u32 (!%p7010_p8), %s6478_s29, 4 }
  0xc9   : > { %s376_s14 = scalar_lea.sflag (!%p7010_p8), [#allocation3], %s6478_s29  ;;  %s6484_s25 = scalar_lea.vmem (!%p7010_p8), [#allocation2], %s4296_s3 }
  0xcf   : > { %6107 = dma.done.wait (%p6415_p6), %s376_s14, 256  }
  0xd0   : > { %6109 = vsyncadd (%p6415_p6), %s376_s14, 4294967040  ;;  %p7011_p7 = scmp.eq.s32.totalorder %s6233_s15, 0 }
  0xd2   : > { %6111 = dma.done.wait (%p7011_p7), [#allocation6], 2432   ;;  %p7012_p9 = pmov %p7011_p7 }
  0xd3   : > { %p7013_p4 = pmov %p7011_p7 }
  0xd4   : > { %6113 = vsyncadd (%p7012_p9), [#allocation6], 4294964864 }
  0xd5   : > { %6115 = dma.done.wait (%p7013_p4), [#allocation9], 16384   ;;  %p7014_p3 = pmov %p7013_p4 }
  0xd7   : > { %6117 = vsyncadd (%p7014_p3), [#allocation9], 4294950912  ;;  %p7015_p0 = pmov %p7014_p3 }
  0xd9   : > { %6119 = dma.done.wait (%p7015_p0), [#allocation12], 32768   ;;  %p7016_p2 = pmov %p7015_p0 }
  0xda   : > { %v440_v0 = vld [vmem:[#allocation5] sm:$0xff]  ;;  %v441_v1 = vld [vmem:[#allocation5 + $0x8] sm:$0xff]  ;;  %v442_v2 = vld [vmem:[#allocation5 + $0x10] sm:$0xff]  ;;  %vm848_vm0 = vcmask 261120   ;;  %vm938_vm2 = vcmask 130048   ;;  %s6156_s18 = smov 96  }
  0xdb   : > { %6121 = vsyncadd (%p7016_p2), [#allocation12], 4294934528  ;;  %v4971_v3 = vpack.c.bf16 %v441_v1, %v440_v0  ;;  %v443_v4 = vld [vmem:[#allocation5 + $0x18] sm:$0xff]  ;;  %v444_v6 = vld [vmem:[#allocation5 + $0x20] sm:$0xff]  ;;  %s6157_s1 = smov 64   ;;  %s6158_s13 = smov 32  }
  0xdc   : > { %v4975_v5 = vpack.c.bf16 %v443_v4, %v442_v2  ;;  %v445_v7 = vld [vmem:[#allocation5 + $0x28] sm:$0xff]  ;;  %v438_v9 = vld [vmem:[%s6484_s25] sm:$0xff]  ;;  %v447_v11 = vld [vmem:[#allocation5 + $0x38] sm:$0xff]  ;;  %vm1676_vm3 = vcmask 523264   ;;  %vm1679_vm4 = vcmask 785408   ;;  %s4377_s14 = sshll.u32 %s6233_s15, 8 }
  0xdd   : > { %4972 = vmatprep.subr.bf16.mxu0 %v4971_v3  ;;  %v4979_v8 = vpack.c.bf16 %v445_v7, %v444_v6  ;;  %v446_v10 = vld [vmem:[#allocation5 + $0x30] sm:$0xff]  ;;  %4716 = vmatprep.mubr.f32.mxu0 %v438_v9  ;;  %v448_v13 = vld [vmem:[#allocation5 + $0x40] sm:$0xff]  ;;  %v449_v14 = vld [vmem:[#allocation5 + $0x48] sm:$0xff]  ;;  %s4140_s19 = scalar_lea.sflag [#allocation4], %s6478_s29  ;;  %p7020_p5 = scmp.ne.s32.totalorder %s7007_s17, 0 }
  0xde   : > { %4974 = vmatpush3.bf16.msra.mxu0 %v4971_v3  ;;  %v4983_v12 = vpack.c.bf16 %v447_v11, %v446_v10  ;;  %v4987_v15 = vpack.c.bf16 %v449_v14, %v448_v13  ;;  %v450_v16 = vld [vmem:[#allocation5 + $0x50] sm:$0xff]  ;;  %v451_v17 = vld [vmem:[#allocation5 + $0x58] sm:$0xff]  ;;  %v452_v19 = vld [vmem:[#allocation5 + $0x60] sm:$0xff]  ;;  %s6159_s15 = smov [#allocation14]  }
  0xdf   : > { %4976 = vmatprep.subr.bf16.mxu0 %v4975_v5  ;;  %v4991_v18 = vpack.c.bf16 %v451_v17, %v450_v16  ;;  %v453_v20 = vld [vmem:[#allocation5 + $0x68] sm:$0xff]  ;;  %v454_v22 = vld [vmem:[#allocation5 + $0x70] sm:$0xff]  ;;  %v455_v23 = vld [vmem:[#allocation5 + $0x78] sm:$0xff] }
  0xe0   : > { %v4995_v21 = vpack.c.bf16 %v453_v20, %v452_v19  ;;  %v4999_v24 = vpack.c.bf16 %v455_v23, %v454_v22  ;;  %v439_v25 = vld [vmem:[%s6484_s25 + $0x8] sm:$0xff]  ;;  %v4304_v26 = vld [vmem:[#allocation7] ss:$0 sm:$0xff]  ;;  %v4305_v46 = vld [vmem:[#allocation7 + $0x1] ss:$0 sm:$0xff]  ;;  %s437_s25 = scalar_lea.vmem [#allocation14], %s4296_s3 }
  0xe1   : > { %v4306_v48 = vld [vmem:[#allocation7 + $0x2] ss:$0 sm:$0xff]  ;;  %v635_v10 = vld [vmem:[#allocation8 + $0x20] sm:$0xff]  ;;  %v634_v13 = vld [vmem:[#allocation8 + $0x18] sm:$0xff]  ;;  %s4153_s16 = sshll.u32 %s437_s25, 4  ;;  %s6066_s3 = sshll.u32 %s6159_s15, 4  ;;  %s6932_s16 = int_to_ptr.vmem [resolvable:$true] %s4153_s16  ;;  %s6067_s3 = int_to_ptr.vmem [resolvable:$false] %s6066_s3 }
  0xe2   : > { %4978 = vmatpush3.bf16.msra.mxu0 %v4975_v5  ;;  %v632_v9 = vld [vmem:[#allocation8 + $0x8] sm:$0xff]  ;;  %v631_v11 = vld [vmem:[#allocation8] sm:$0xff]  ;;  %v638_v14 = vld [vmem:[#allocation8 + $0x38] sm:$0xff]  ;;  %s6062_s23 = scalar_lea.vmem %s6932_s16, 256  ;;  %s6068_s22 = scalar_lea.vmem %s6067_s3, 512 }
  0xe3   : > { %4980 = vmatprep.subr.bf16.mxu0 %v4979_v8  ;;  %v5005_v16 = vpack.c.bf16 %v634_v13, %v631_v11  ;;  %v636_v19 = vld [vmem:[#allocation8 + $0x28] sm:$0xff]  ;;  %v637_v20 = vld [vmem:[#allocation8 + $0x30] sm:$0xff]  ;;  %v667_v11 = vld [vmem:[#allocation8 + $0x120] sm:$0xff]  ;;  %v6155_v13 = vmov 0.0   ;;  %p6063_p6 = scmp.ne.s32.totalorder %s6932_s16, %s6062_s23  ;;  %p6069_p11 = scmp.lt.s32.totalorder %s6932_s16, %s6067_s3 }
  0xe4   : > { %v640_v22 = vld [vmem:[#allocation8 + $0x48] sm:$0xff]  ;;  %760 = vmatprep.mubr.f32.mxu1 %v6155_v13  ;;  %vm6547_vm1 = vmpackc.low %vm848_vm0, %vm848_vm0  ;;  %p6070_p12 = scmp.lt.s32.totalorder %s6068_s22, %s6062_s23 }
  0xe5   : > { %v644_v23 = vld [vmem:[#allocation8 + $0x68] sm:$0xff]  ;;  %p6064_p10 = pnand %p6063_p6, %p7020_p5 }
  0xe6   : > { %4982 = vmatpush3.bf16.msra.mxu0 %v4979_v8  ;;  %p6071_p13 = por %p6070_p12, %p6069_p11 }
  0xe7   : > { %4984 = vmatprep.subr.bf16.mxu0 %v4983_v12  ;;  %p6065_p1 = pneg %p6064_p10 }
  0xe9   : > { %p6072_p8 = pnand %p6071_p13, %p6065_p1 }
  0xea   : > { %4986 = vmatpush3.bf16.msra.mxu0 %v4983_v12  ;;  %v5003_v12 = vpack.c.bf16 %v635_v10, %v632_v9  ;;  %v666_v10 = vld [vmem:[#allocation8 + $0x118] sm:$0xff] }
  0xeb   : > { %4988 = vmatprep.subr.bf16.mxu0 %v4987_v15 }
  0xec   : > { %5004 = vmatprep.subr.bf16.mxu1 %v5003_v12  ;;  %v670_v12 = vld [vmem:[#allocation8 + $0x138] sm:$0xff] }
  0xed   : > { %5006 = vmatpush1.bf16.msra.mxu1 %v5005_v16  ;;  %v674_v16 = vld [vmem:[#allocation8 + $0x158] sm:$0xff] }
  0xee   : > { %4990 = vmatpush3.bf16.msra.mxu0 %v4987_v15  ;;  %v641_v15 = vld [vmem:[#allocation8 + $0x50] sm:$0xff] }
  0xef   : > { %4992 = vmatprep.subr.bf16.mxu0 %v4991_v18  ;;  %v5007_v17 = vpack.c.bf16 %v641_v15, %v638_v14  ;;  %v5029_v15 = vpack.c.bf16 %v670_v12, %v667_v11 }
  0xf1   : > { %5008 = vmatprep.subr.bf16.mxu1 %v5007_v17  ;;  %v677_v17 = vld [vmem:[#allocation8 + $0x170] sm:$0xff] }
  0xf2   : > { %4994 = vmatpush3.bf16.msra.mxu0 %v4991_v18  ;;  %v633_v18 = vld [vmem:[#allocation8 + $0x10] sm:$0xff] }
  0xf3   : > { %4996 = vmatprep.subr.bf16.mxu0 %v4995_v21 }
  0xf6   : > { %4998 = vmatpush3.bf16.msra.mxu0 %v4995_v21  ;;  %v5035_v21 = vpack.c.bf16 %v636_v19, %v633_v18  ;;  %v669_v18 = vld [vmem:[#allocation8 + $0x130] sm:$0xff]  ;;  %v5031_v19 = vpack.c.bf16 %v677_v17, %v674_v16 }
  0xf7   : > { %5000 = vmatprep.subr.bf16.mxu0 %v4999_v24 }
  0xfa   : > { %5002 = vmatpush3.bf16.msra.mxu0 %v4999_v24  ;;  %v647_v24 = vld [vmem:[#allocation8 + $0x80] sm:$0xff] }
  0xfb   : > { %5036 = vmatprep.subr.bf16.mxu0 %v5035_v21 }
  0xfd   : > { %4717 = vmatmul.mubr.f32.vlgmr.msra.gmra.mrb[0].mxu0 %v439_v25  ;;  %v5009_v25 = vpack.c.bf16 %v640_v22, %v637_v20  ;;  %v672_v20 = vld [vmem:[#allocation8 + $0x148] sm:$0xff] }
  0xfe   : > { %5038 = vmatpush3.bf16.msra.mxu0 %v5035_v21  ;;  %v673_v21 = vld [vmem:[#allocation8 + $0x150] sm:$0xff]  ;;  %v676_v22 = vld [vmem:[#allocation8 + $0x168] sm:$0xff] }
  0xff   : > { %5010 = vmatpush1.bf16.msra.mxu1 %v5009_v25  ;;  %v675_v25 = vld [vmem:[#allocation8 + $0x160] sm:$0xff] }
 0x1d0   : > { %v4718_v27 = vpop.f32.mrb[0].mxu0 }
 0x1d1   : > { %v527_v28 = vpop.f32.mrb[1].mxu0  ;;  %v533_v30 = vadd.f32 %v4718_v27, %v4304_v26  ;;  %v642_v27 = vld [vmem:[#allocation8 + $0x58] sm:$0xff] }
 0x1d2   : > { %v528_v29 = vadd.f32 %v4304_v26, %v527_v28  ;;  %v639_v26 = vld [vmem:[#allocation8 + $0x40] sm:$0xff]  ;;  %v5011_v28 = vpack.c.bf16 %v647_v24, %v644_v23  ;;  %v5059_v23 = vpack.c.bf16 %v672_v20, %v669_v18  ;;  %v5033_v24 = vpack.c.bf16 %v676_v22, %v673_v21 }
 0x1d4   : > { %538 = vadd.xlane.f32.xlu0 %v528_v29  ;;  %5012 = vmatprep.subr.bf16.mxu1 %v5011_v28 }
 0x1d8   : > { %540 = vadd.xlane.f32.xlu0 %v533_v30 }
 0x261   : > { %v539_v31 = vpop.xlane.xlu0 %538 }
 0x262   : > { %v543_v32 = vmul.f32 0.0078125, %v539_v31  ;;  %v646_v31 = vld [vmem:[#allocation8 + $0x78] sm:$0xff] }
 0x264   : > { %v545_v33 = vsub.f32 %v528_v29, %v543_v32  ;;  %v5039_v29 = vpack.c.bf16 %v642_v27, %v639_v26  ;;  %v678_v26 = vld [vmem:[#allocation8 + $0x178] sm:$0xff] }
 0x265   : > { %v541_v34 = vpop.xlane.xlu0 %540  ;;  %v5063_v27 = vpack.c.bf16 %v678_v26, %v675_v25 }
 0x266   : > { %v544_v35 = vmul.f32 0.0078125, %v541_v34  ;;  %v547_v36 = vmul.f32 %v545_v33, %v545_v33  ;;  %5040 = vmatprep.subr.bf16.mxu0 %v5039_v29 }
 0x267   : > { %5042 = vmatpush3.bf16.msra.mxu0 %v5039_v29 }
 0x268   : > { %v546_v37 = vsub.f32 %v533_v30, %v544_v35  ;;  %549 = vadd.xlane.f32.xlu1 %v547_v36  ;;  %v643_v30 = vld [vmem:[#allocation8 + $0x60] sm:$0xff] }
 0x269   : > { %v5013_v32 = vpack.c.bf16 %v646_v31, %v643_v30 }
 0x26a   : > { %v548_v38 = vmul.f32 %v546_v37, %v546_v37 }
 0x26b   : > { %5014 = vmatpush1.bf16.msra.mxu1 %v5013_v32 }
 0x26c   : > { %551 = vadd.xlane.f32.xlu1 %v548_v38 }
 0x2f5   : > { %v550_v39 = vpop.xlane.xlu1 %549 }
 0x2f6   : > { %v553_v40 = vmul.f32 0.0078125, %v550_v39 }
 0x2f8   : > { %v555_v41 = vadd.f32 1e-05, %v553_v40 }
 0x2f9   : > { %v552_v42 = vpop.xlane.xlu1 %551 }
 0x2fa   : > { %5740 = vrsqrt.f32 %v555_v41  ;;  %v554_v43 = vmul.f32 0.0078125, %v552_v42  ;;  %v650_v41 = vld [vmem:[#allocation8 + $0x98] sm:$0xff]  ;;  %v653_v42 = vld [vmem:[#allocation8 + $0xb0] sm:$0xff] }
 0x2fc   : > { %v556_v44 = vadd.f32 1e-05, %v554_v43  ;;  %v645_v43 = vld [vmem:[#allocation8 + $0x70] sm:$0xff] }
 0x2fe   : > { %5742 = vrsqrt.f32 %v556_v44  ;;  %v5015_v44 = vpack.c.bf16 %v653_v42, %v650_v41 }
 0x300   : > { %5016 = vmatprep.subr.bf16.mxu1 %v5015_v44 }
 0x304   : > { %v5741_v45 = vpop.eup %5740 }
 0x305   : > { %v559_v47 = vmul.f32 %v5741_v45, %v545_v33  ;;  %v648_v45 = vld [vmem:[#allocation8 + $0x88] sm:$0xff] }
 0x307   : > { %v565_v49 = vmul.f32 %v4305_v46, %v559_v47  ;;  %v652_v47 = vld [vmem:[#allocation8 + $0xa8] sm:$0xff] }
 0x308   : > { %v5743_v50 = vpop.eup %5742 }
 0x309   : > { %v571_v51 = vadd.f32 %v4306_v48, %v565_v49  ;;  %v560_v52 = vmul.f32 %v5743_v50, %v546_v37  ;;  %v656_v50 = vld [vmem:[#allocation8 + $0xc8] sm:$0xff] }
 0x30b   : > { %v566_v53 = vmul.f32 %v4305_v46, %v560_v52  ;;  %v575_v54 = vmul.f32 0.044715, %v571_v51  ;;  %v573_v2 = vmul.f32 0.5, %v571_v51  ;;  %v649_v46 = vld [vmem:[#allocation8 + $0x90] sm:$0xff]  ;;  %v651_v52 = vld [vmem:[#allocation8 + $0xa0] sm:$0xff] }
 0x30c   : > { %v5017_v49 = vpack.c.bf16 %v652_v47, %v649_v46  ;;  %v681_v46 = vlaneseq }
 0x30d   : > { %v572_v55 = vadd.f32 %v4306_v48, %v566_v53  ;;  %v577_v56 = vmul.f32 %v575_v54, %v571_v51  ;;  %v5043_v48 = vpack.c.bf16 %v648_v45, %v645_v43  ;;  %v654_v54 = vld [vmem:[#allocation8 + $0xb8] sm:$0xff] }
 0x30e   : > { %5018 = vmatpush1.bf16.msra.mxu1 %v5017_v49  ;;  %v6524_v47 = vshrl.u32 %v681_v46, 7 }
 0x30f   : > { %v579_v57 = vmul.f32 %v577_v56, %v571_v51  ;;  %v576_v58 = vmul.f32 0.044715, %v572_v55  ;;  %v574_v6 = vmul.f32 0.5, %v572_v55  ;;  %5044 = vmatprep.subr.bf16.mxu0 %v5043_v48  ;;  %v658_v56 = vld [vmem:[#allocation8 + $0xd8] sm:$0xff] }
 0x310   : > { %5046 = vmatpush3.bf16.msra.mxu0 %v5043_v48  ;;  %v6527_v48 = vsub.s32 0, %v6524_v47  ;;  %v6534_v49 = vsub.s32 2, %v6524_v47 }
 0x311   : > { %v581_v59 = vadd.f32 %v579_v57, %v571_v51  ;;  %v578_v60 = vmul.f32 %v576_v58, %v572_v55  ;;  %v659_v51 = vld [vmem:[#allocation8 + $0xe0] sm:$0xff]  ;;  %v5047_v57 = vpack.c.bf16 %v654_v54, %v651_v52 }
 0x312   : > { %v5019_v53 = vpack.c.bf16 %v659_v51, %v656_v50  ;;  %v6537_v50 = vsub.s32 1, %v6524_v47 }
 0x313   : > { %v583_v61 = vmul.f32 0.7978846, %v581_v59  ;;  %v580_v62 = vmul.f32 %v578_v60, %v572_v55  ;;  %5048 = vmatprep.subr.bf16.mxu0 %v5047_v57  ;;  %v662_v59 = vld [vmem:[#allocation8 + $0xf8] sm:$0xff]  ;;  %v665_v60 = vld [vmem:[#allocation8 + $0x110] sm:$0xff] }
 0x314   : > { %5020 = vmatprep.subr.bf16.mxu1 %v5019_v53  ;;  %5050 = vmatpush3.bf16.msra.mxu0 %v5047_v57 }
 0x315   : > { %5744 = vtanh.f32 %v583_v61  ;;  %v582_v63 = vadd.f32 %v580_v62, %v572_v55  ;;  %v655_v55 = vld [vmem:[#allocation8 + $0xc0] sm:$0xff]  ;;  %v657_v61 = vld [vmem:[#allocation8 + $0xd0] sm:$0xff]  ;;  %v5023_v62 = vpack.c.bf16 %v665_v60, %v662_v59 }
 0x316   : > { %v5021_v58 = vpack.c.bf16 %v658_v56, %v655_v55 }
 0x317   : > { %v584_v0 = vmul.f32 0.7978846, %v582_v63  ;;  %v660_v63 = vld [vmem:[#allocation8 + $0xe8] sm:$0xff] }
 0x318   : > { %5022 = vmatpush1.bf16.msra.mxu1 %v5021_v58 }
 0x319   : > { %5746 = vtanh.f32 %v584_v0  ;;  %v661_v0 = vld [vmem:[#allocation8 + $0xf0] sm:$0xff]  ;;  %5024 = vmatprep.subr.bf16.mxu1 %v5023_v62 }
 0x31f   : > { %v5745_v1 = vpop.eup %5744 }
 0x320   : > { %v587_v3 = vadd.f32 1.0, %v5745_v1  ;;  %v664_v1 = vld [vmem:[#allocation8 + $0x108] sm:$0xff] }
 0x322   : > { %v6504_v4 = vmul.f32 %v587_v3, %v573_v2  ;;  %v5051_v2 = vpack.c.bf16 %v660_v63, %v657_v61  ;;  %v5025_v3 = vpack.c.bf16 %v664_v1, %v661_v0 }
 0x323   : > { %v5747_v5 = vpop.eup %5746 }
 0x324   : > { %597 = vadd.xlane.f32.xlu0 %v6504_v4  ;;  %v588_v7 = vadd.f32 1.0, %v5747_v5  ;;  %v668_v5 = vld [vmem:[#allocation8 + $0x128] sm:$0xff]  ;;  %5052 = vmatprep.subr.bf16.mxu0 %v5051_v2 }
 0x325   : > { %5026 = vmatpush1.bf16.msra.mxu1 %v5025_v3  ;;  %5054 = vmatpush3.bf16.msra.mxu0 %v5051_v2 }
 0x326   : > { %v6507_v8 = vmul.f32 %v588_v7, %v574_v6  ;;  %v671_v6 = vld [vmem:[#allocation8 + $0x140] sm:$0xff] }
 0x327   : > { %v663_v7 = vld [vmem:[#allocation8 + $0x100] sm:$0xff]  ;;  %v5027_v9 = vpack.c.bf16 %v671_v6, %v668_v5 }
 0x328   : > { %599 = vadd.xlane.f32.xlu1 %v6507_v8  ;;  %v5055_v14 = vpack.c.bf16 %v666_v10, %v663_v7 }
 0x329   : > { %5028 = vmatprep.subr.bf16.mxu1 %v5027_v9 }
 0x32a   : > { %5056 = vmatprep.subr.bf16.mxu0 %v5055_v14  ;;  %5030 = vmatpush1.bf16.msra.mxu1 %v5029_v15 }
 0x32b   : > { %5058 = vmatpush3.bf16.msra.mxu0 %v5055_v14  ;;  %5032 = vmatprep.subr.bf16.mxu1 %v5031_v19 }
 0x32c   : > { %5060 = vmatprep.subr.bf16.mxu0 %v5059_v23 }
 0x32e   : > { %5034 = vmatpush1.bf16.msra.mxu1 %v5033_v24 }
 0x32f   : > { %5062 = vmatpush3.bf16.msra.mxu0 %v5059_v23 }
 0x330   : > { %5064 = vmatprep.subr.bf16.mxu0 %v5063_v27 }
 0x333   : > { %5066 = vmatpush3.bf16.msra.mxu0 %v5063_v27 }
 0x3b1   : > { %v598_v33 = vpop.xlane.xlu0 %597 }
 0x3b2   : > { %v601_v34 = vmul.f32 0.0078125, %v598_v33 }
 0x3b4   : > { %v6511_v35 = vsub.f32 %v6504_v4, %v601_v34 }
 0x3b5   : > { %v600_v36 = vpop.xlane.xlu1 %599 }
 0x3b6   : > { %v602_v37 = vmul.f32 0.0078125, %v600_v36  ;;  %v605_v38 = vmul.f32 %v6511_v35, %v6511_v35  ;;  %v4307_v36 = vld [vmem:[#allocation7 + $0x5] ss:$0 sm:$0xff] }
 0x3b8   : > { %v6516_v39 = vsub.f32 %v6507_v8, %v602_v37  ;;  %607 = vadd.xlane.f32.xlu0 %v605_v38  ;;  %v4308_v38 = vld [vmem:[#allocation7 + $0x6] ss:$0 sm:$0xff] }
 0x3ba   : > { %v606_v40 = vmul.f32 %v6516_v39, %v6516_v39 }
 0x3bc   : > { %609 = vadd.xlane.f32.xlu1 %v606_v40 }
 0x445   : > { %v608_v28 = vpop.xlane.xlu0 %607 }
 0x446   : > { %v611_v29 = vmul.f32 0.0078125, %v608_v28 }
 0x448   : > { %v613_v30 = vadd.f32 1e-05, %v611_v29 }
 0x449   : > { %v610_v31 = vpop.xlane.xlu1 %609 }
 0x44a   : > { %5748 = vrsqrt.f32 %v613_v30  ;;  %v612_v32 = vmul.f32 0.0078125, %v610_v31 }
 0x44c   : > { %v614_v33 = vadd.f32 1e-05, %v612_v32 }
 0x44e   : > { %5750 = vrsqrt.f32 %v614_v33 }
 0x454   : > { %v5749_v34 = vpop.eup %5748 }
 0x455   : > { %v617_v37 = vmul.f32 %v5749_v34, %v6511_v35  ;;  %v679_v35 = vld [vmem:[%s6980_s4] sm:$0x7] }
 0x456   : > { %v692_v54 = vrot.slane %v679_v35, %v6534_v49  ;;  %v688_v55 = vrot.slane %v679_v35, %v6537_v50 }
 0x457   : > { %v623_v40 = vmul.f32 %v4307_v36, %v617_v37 }
 0x458   : > { %v5751_v41 = vpop.eup %5750 }
 0x459   : > { %v629_v42 = vadd.f32 %v4308_v38, %v623_v40  ;;  %v618_v43 = vmul.f32 %v5751_v41, %v6516_v39  ;;  %v684_v39 = vrot.slane %v679_v35, %v6527_v48 }
 0x45b   : > { %761 = vmatmul.mubr.f32.vlgmr.msra.gmra.mrb[0].mxu1 %v629_v42  ;;  %4751 = vmatprep.mubr.f32.mxu0 %v629_v42  ;;  %v624_v44 = vmul.f32 %v4307_v36, %v618_v43 }
 0x45c   : > { %766 = vmatprep.mubr.f32.mxu1 %v6155_v13 }
 0x45d   : > { %v630_v45 = vadd.f32 %v4308_v38, %v624_v44 }
 0x45f   : > { %767 = vmatmul.mubr.f32.gmra.mrb[2].mxu1 %v630_v45  ;;  %4752 = vmatmul.mubr.f32.vlgmr.msra.gmra.mrb[2].mxu0 %v630_v45 }
 0x52e   : > { %v762_v51 = vpop.f32.mrb[0].mxu1 }
 0x52f   : > { %v6539_v52 = vadd.f32 %v762_v51, %v684_v39  ;;  %v764_v53 = vpop.f32.mrb[1].mxu1 }
 0x530   : > { %v765_v61 = vadd.f32 %v764_v53, %v688_v55 }
 0x531   : > { %4758 = vmatprep.mubr.msk.f32.mxu1 %vm848_vm0, %v6539_v52 }
 0x532   : > { %v768_v56 = vpop.f32.mrb[2].mxu1  ;;  %v4753_v57 = vpop.f32.mrb[2].mxu0 }
 0x533   : > { %v845_v58 = vadd.f32 %v4753_v57, %v692_v54  ;;  %v770_v59 = vpop.f32.mrb[3].mxu1  ;;  %v839_v60 = vpop.f32.mrb[3].mxu0  ;;  %v6559_v6 = vadd.f32 %v768_v56, %v684_v39 }
 0x534   : > { %v771_v62 = vadd.f32 %v770_v59, %v688_v55  ;;  %v840_v63 = vadd.f32 %v839_v60, %v692_v54 }
 0x536   : > { %v5067_v1 = vpack.c.bf16 %v771_v62, %v765_v61  ;;  %v5073_v2 = vpack.c.bf16 %v845_v58, %v840_v63  ;;  %v6551_v3 = vpack.i.bf16 %v771_v62, %v765_v61  ;;  %v6553_v5 = vpack.i.bf16 %v845_v58, %v840_v63 }
 0x538   : > { %5069 = vmatprep.subr.msk.bf16.mxu1 %vm6547_vm1, %v5067_v1 }
 0x539   : > { %5072 = vmatpush3.bf16.xpose.msk.msra.mxu1 %vm6547_vm1, %v5067_v1 }
 0x53a   : > { %5074 = vmatprep.subr.bf16.mxu1 %v5073_v2 }
 0x540   : > { %4759 = vmatmul.mubr.msk.f32.vlgmr.msra.gmra.mrb[4].mxu1 %vm848_vm0, %v6559_v6 }
 0x541   : > { %5076 = vmatpush3.bf16.msra.mxu1 %v5073_v2 }
 0x613   : > { %v4760_v7 = vpop.f32.mrb[4].mxu1 }
 0x614   : > { %v937_v9 = vmul.f32 0.17677669, %v4760_v7  ;;  %v927_v10 = vpop.f32.mrb[5].mxu1 }
 0x615   : > { %v936_v11 = vmul.f32 0.17677669, %v927_v10 }
 0x616   : > { %v942_v12 = vsel %vm938_vm2, %v937_v9, -inf }
 0x617   : > { %943 = vmax.xlane.f32.xlu1 %v942_v12  ;;  %v939_v14 = vsel %vm938_vm2, %v936_v11, -inf }
 0x618   : > { %940 = vmax.xlane.f32.xlu0 %v939_v14 }
 0x6a4   : > { %v944_v15 = vpop.xlane.xlu1 %943 }
 0x6a5   : > { %v946_v16 = vsub.f32 %v937_v9, %v944_v15  ;;  %v941_v17 = vpop.xlane.xlu0 %940 }
 0x6a6   : > { %v945_v18 = vsub.f32 %v936_v11, %v941_v17 }
 0x6a7   : > { %v949_v19 = vmul.f32 1.442695, %v946_v16 }
 0x6a8   : > { %v947_v20 = vmul.f32 1.442695, %v945_v18 }
 0x6a9   : > { %5752 = vpow2.f32 %v949_v19 }
 0x6aa   : > { %5754 = vpow2.f32 %v947_v20 }
 0x6b3   : > { %v5753_v21 = vpop.eup %5752 }
 0x6b4   : > { %v5755_v22 = vpop.eup %5754  ;;  %v954_v23 = vsel %vm938_vm2, %v5753_v21, 0.0 }
 0x6b5   : > { %955 = vadd.xlane.f32.xlu1 %v954_v23  ;;  %v951_v24 = vsel %vm938_vm2, %v5755_v22, 0.0 }
 0x6b6   : > { %952 = vadd.xlane.f32.xlu0 %v951_v24 }
 0x6c6   : > { %1042 = vrot.lane.b32.xlu1 %v6539_v52, %s6156_s18 }
 0x6ca   : > { %1044 = vrot.lane.b32.xlu1 %v6559_v6, %s6156_s18 }
 0x6cc   : > { %5651 = vrot.lane.b32.xlu0 %v6551_v3, %s6156_s18 }
 0x742   : > { %v956_v25 = vpop.xlane.xlu1 %955 }
 0x743   : > { %5756 = vrcp.f32 %v956_v25  ;;  %v953_v26 = vpop.xlane.xlu0 %952 }
 0x744   : > { %5758 = vrcp.f32 %v953_v26 }
 0x746   : > { %v1043_v36 = vpop.permute.xlu1 %1042 }
 0x747   : > { %v5652_v27 = vpop.permute.xlu0 %5651 }
 0x748   : > { %v5654_v28 = vunpack.i.h.bf16 %v5652_v27  ;;  %v5653_v29 = vunpack.i.l.bf16 %v5652_v27 }
 0x74a   : > { %v5077_v30 = vpack.c.bf16 %v5654_v28, %v5653_v29  ;;  %v1045_v37 = vpop.permute.xlu1 %1044 }
 0x74c   : > { %5079 = vmatprep.subr.msk.bf16.mxu1 %vm6547_vm1, %v5077_v30 }
 0x74d   : > { %v5757_v31 = vpop.eup %5756 }
 0x74e   : > { %v5759_v32 = vpop.eup %5758  ;;  %v960_v34 = vmul.f32 %v5757_v31, %v5753_v21 }
 0x74f   : > { %v959_v33 = vmul.f32 %v5759_v32, %v5755_v22 }
 0x751   : > { %4765 = vmatprep.mubr.msk.f32.mxu1 %vm938_vm2, %v959_v33 }
 0x752   : > { %4766 = vmatmul.mubr.msk.f32.vlgmr.msra.gmra.mrb[6].mxu1 %vm938_vm2, %v960_v34 }
 0x753   : > { %5082 = vmatpush3.bf16.xpose.msk.msra.mxu1 %vm6547_vm1, %v5077_v30  ;;  %4772 = vmatprep.mubr.msk.f32.mxu1 %vm848_vm0, %v1043_v36 }
 0x75a   : > { %4773 = vmatmul.mubr.msk.f32.vlgmr.msra.gmra.mrb[8].mxu1 %vm848_vm0, %v1045_v37 }
 0x825   : > { %v6581_v38 = vpop.f32.mrb[6].mxu1 }
 0x826   : > { %v6583_v40 = vpop.f32.mrb[7].mxu1 }
 0x82d   : > { %v4774_v41 = vpop.f32.mrb[8].mxu1 }
 0x82e   : > { %v1134_v42 = vmul.f32 0.17677669, %v4774_v41  ;;  %v1124_v43 = vpop.f32.mrb[9].mxu1 }
 0x82f   : > { %v1133_v44 = vmul.f32 0.17677669, %v1124_v43 }
 0x830   : > { %v1138_v45 = vsel %vm938_vm2, %v1134_v42, -inf }
 0x831   : > { %1139 = vmax.xlane.f32.xlu0 %v1138_v45  ;;  %v1135_v46 = vsel %vm938_vm2, %v1133_v44, -inf }
 0x832   : > { %1136 = vmax.xlane.f32.xlu1 %v1135_v46 }
 0x843   : > { %5656 = vrot.lane.b32.xlu1 %v6553_v5, %s6156_s18 }
 0x847   : > { %1246 = vrot.lane.b32.xlu1 %v6539_v52, %s6157_s1 }
 0x84b   : > { %1248 = vrot.lane.b32.xlu1 %v6559_v6, %s6157_s1 }
 0x8be   : > { %v1140_v35 = vpop.xlane.xlu0 %1139 }
 0x8bf   : > { %v1142_v39 = vsub.f32 %v1134_v42, %v1140_v35  ;;  %v1137_v51 = vpop.xlane.xlu1 %1136 }
 0x8c0   : > { %v1141_v53 = vsub.f32 %v1133_v44, %v1137_v51 }
 0x8c1   : > { %v1145_v54 = vmul.f32 1.442695, %v1142_v39 }
 0x8c2   : > { %v1143_v55 = vmul.f32 1.442695, %v1141_v53 }
 0x8c3   : > { %5760 = vpow2.f32 %v1145_v54  ;;  %v5657_v56 = vpop.permute.xlu1 %5656 }
 0x8c4   : > { %v5659_v57 = vunpack.i.h.bf16 %v5657_v56  ;;  %v5658_v58 = vunpack.i.l.bf16 %v5657_v56  ;;  %5762 = vpow2.f32 %v1143_v55 }
 0x8c6   : > { %v5083_v59 = vpack.c.bf16 %v5659_v57, %v5658_v58 }
 0x8c7   : > { %v1247_v17 = vpop.permute.xlu1 %1246 }
 0x8c8   : > { %5084 = vmatprep.subr.bf16.mxu1 %v5083_v59 }
 0x8c9   : > { %5086 = vmatpush3.bf16.msra.mxu1 %v5083_v59 }
 0x8cb   : > { %v1249_v18 = vpop.permute.xlu1 %1248 }
 0x8cd   : > { %v5761_v60 = vpop.eup %5760 }
 0x8ce   : > { %v1150_v61 = vsel %vm938_vm2, %v5761_v60, 0.0  ;;  %v5763_v62 = vpop.eup %5762 }
 0x8cf   : > { %1151 = vadd.xlane.f32.xlu0 %v1150_v61  ;;  %v1147_v63 = vsel %vm938_vm2, %v5763_v62, 0.0 }
 0x8d3   : > { %1148 = vadd.xlane.f32.xlu0 %v1147_v63 }
 0x8e9   : > { %5661 = vrot.lane.b32.xlu0 %v6551_v3, %s6157_s1 }
 0x95c   : > { %v1152_v1 = vpop.xlane.xlu0 %1151 }
 0x95d   : > { %5764 = vrcp.f32 %v1152_v1 }
 0x960   : > { %v1149_v2 = vpop.xlane.xlu0 %1148 }
 0x961   : > { %5766 = vrcp.f32 %v1149_v2 }
 0x964   : > { %v5662_v7 = vpop.permute.xlu0 %5661 }
 0x965   : > { %v5664_v9 = vunpack.i.h.bf16 %v5662_v7  ;;  %v5663_v10 = vunpack.i.l.bf16 %v5662_v7 }
 0x967   : > { %v5087_v11 = vpack.c.bf16 %v5664_v9, %v5663_v10  ;;  %v5765_v12 = vpop.eup %5764 }
 0x968   : > { %v1156_v16 = vmul.f32 %v5765_v12, %v5761_v60 }
 0x969   : > { %5089 = vmatprep.subr.msk.bf16.mxu1 %vm6547_vm1, %v5087_v11 }
 0x96b   : > { %v5767_v14 = vpop.eup %5766 }
 0x96c   : > { %v1155_v15 = vmul.f32 %v5767_v14, %v5763_v62 }
 0x96e   : > { %4779 = vmatprep.mubr.msk.f32.mxu1 %vm938_vm2, %v1155_v15 }
 0x96f   : > { %4780 = vmatmul.mubr.msk.f32.vlgmr.msra.gmra.mrb[10].mxu1 %vm938_vm2, %v1156_v16 }
 0x970   : > { %5092 = vmatpush3.bf16.xpose.msk.msra.mxu1 %vm6547_vm1, %v5087_v11  ;;  %4786 = vmatprep.mubr.msk.f32.mxu1 %vm848_vm0, %v1247_v17 }
 0x977   : > { %4787 = vmatmul.mubr.msk.f32.vlgmr.msra.gmra.mrb[12].mxu1 %vm848_vm0, %v1249_v18 }
 0xa42   : > { %v6605_v19 = vpop.f32.mrb[10].mxu1 }
 0xa43   : > { %v6607_v20 = vpop.f32.mrb[11].mxu1 }
 0xa44   : > { %v5680_v21 = vpack.i.bf16 %v6605_v19, %v6607_v20  ;;  %v1685_v19 = vld [vmem:[#allocation10 + $0x18] sm:$0xff] }
 0xa4a   : > { %v4788_v22 = vpop.f32.mrb[12].mxu1 }
 0xa4b   : > { %v1338_v23 = vmul.f32 0.17677669, %v4788_v22  ;;  %v1328_v24 = vpop.f32.mrb[13].mxu1 }
 0xa4c   : > { %v1337_v25 = vmul.f32 0.17677669, %v1328_v24 }
 0xa4d   : > { %v1342_v26 = vsel %vm938_vm2, %v1338_v23, -inf }
 0xa4e   : > { %1343 = vmax.xlane.f32.xlu0 %v1342_v26  ;;  %v1339_v27 = vsel %vm938_vm2, %v1337_v25, -inf }
 0xa4f   : > { %1340 = vmax.xlane.f32.xlu1 %v1339_v27 }
 0xa60   : > { %5666 = vrot.lane.b32.xlu1 %v6553_v5, %s6157_s1 }
 0xa64   : > { %1448 = vrot.lane.b32.xlu1 %v6539_v52, %s6158_s13 }
 0xa68   : > { %1450 = vrot.lane.b32.xlu1 %v6559_v6, %s6158_s13 }
 0xadb   : > { %v1344_v28 = vpop.xlane.xlu0 %1343 }
 0xadc   : > { %v1346_v29 = vsub.f32 %v1338_v23, %v1344_v28  ;;  %v1341_v30 = vpop.xlane.xlu1 %1340 }
 0xadd   : > { %v1345_v31 = vsub.f32 %v1337_v25, %v1341_v30 }
 0xade   : > { %v1349_v32 = vmul.f32 1.442695, %v1346_v29 }
 0xadf   : > { %v1347_v33 = vmul.f32 1.442695, %v1345_v31 }
 0xae0   : > { %5768 = vpow2.f32 %v1349_v32  ;;  %v5667_v34 = vpop.permute.xlu1 %5666  ;;  %v1682_v32 = vld [vmem:[#allocation10] sm:$0xff] }
 0xae1   : > { %v5669_v36 = vunpack.i.h.bf16 %v5667_v34  ;;  %v5668_v37 = vunpack.i.l.bf16 %v5667_v34  ;;  %5770 = vpow2.f32 %v1347_v33  ;;  %v1683_v33 = vld [vmem:[#allocation10 + $0x8] sm:$0xff]  ;;  %v1684_v34 = vld [vmem:[#allocation10 + $0x10] sm:$0xff] }
 0xae2   : > { %v5111_v20 = vpack.c.bf16 %v1685_v19, %v1684_v34  ;;  %v1815_v34 = vld [vmem:[#allocation11 + $0x10] sm:$0xff] }
 0xae3   : > { %v5093_v41 = vpack.c.bf16 %v5669_v36, %v5668_v37  ;;  %v5107_v36 = vpack.c.bf16 %v1683_v33, %v1682_v32  ;;  %v1687_v37 = vld [vmem:[#allocation10 + $0x28] sm:$0xff] }
 0xae4   : > { %v1449_v57 = vpop.permute.xlu1 %1448 }
 0xae5   : > { %5094 = vmatprep.subr.bf16.mxu1 %v5093_v41  ;;  %5108 = vmatprep.subr.bf16.mxu0 %v5107_v36 }
 0xae6   : > { %5096 = vmatpush3.bf16.msra.mxu1 %v5093_v41  ;;  %5110 = vmatpush3.bf16.msra.mxu0 %v5107_v36  ;;  %v1819_v36 = vld [vmem:[#allocation11 + $0x30] sm:$0xff] }
 0xae7   : > { %5112 = vmatprep.subr.bf16.mxu0 %v5111_v20  ;;  %v5173_v19 = vpack.c.bf16 %v1819_v36, %v1815_v34  ;;  %v1847_v34 = vld [vmem:[#allocation11 + $0x110] sm:$0xff] }
 0xae8   : > { %v1851_v36 = vld [vmem:[#allocation11 + $0x130] sm:$0xff] }
 0xaea   : > { %v5769_v42 = vpop.eup %5768  ;;  %5114 = vmatpush3.bf16.msra.mxu0 %v5111_v20  ;;  %v1824_v20 = vld [vmem:[#allocation11 + $0x58] sm:$0xff] }
 0xaeb   : > { %v1354_v52 = vsel %vm938_vm2, %v5769_v42, 0.0  ;;  %v5771_v43 = vpop.eup %5770 }
 0xaec   : > { %1355 = vadd.xlane.f32.xlu0 %v1354_v52  ;;  %v1351_v6 = vsel %vm938_vm2, %v5771_v43, 0.0  ;;  %v1689_v52 = vld [vmem:[#allocation10 + $0x38] sm:$0xff] }
 0xaf0   : > { %1352 = vadd.xlane.f32.xlu0 %v1351_v6  ;;  %v1690_v6 = vld [vmem:[#allocation10 + $0x40] sm:$0xff] }
 0xb06   : > { %5671 = vrot.lane.b32.xlu0 %v6551_v3, %s6158_s13  ;;  %v1451_v3 = vpop.permute.xlu1 %1450 }
 0xb79   : > { %v1356_v44 = vpop.xlane.xlu0 %1355 }
 0xb7a   : > { %5772 = vrcp.f32 %v1356_v44  ;;  %v1691_v44 = vld [vmem:[#allocation10 + $0x48] sm:$0xff] }
 0xb7d   : > { %v1353_v45 = vpop.xlane.xlu0 %1352 }
 0xb7e   : > { %5774 = vrcp.f32 %v1353_v45  ;;  %v5123_v45 = vpack.c.bf16 %v1691_v44, %v1690_v6  ;;  %v1827_v44 = vld [vmem:[#allocation11 + $0x70] sm:$0xff] }
 0xb81   : > { %v5672_v46 = vpop.permute.xlu0 %5671 }
 0xb82   : > { %v5674_v35 = vunpack.i.h.bf16 %v5672_v46  ;;  %v5673_v39 = vunpack.i.l.bf16 %v5672_v46  ;;  %v1692_v46 = vld [vmem:[#allocation10 + $0x50] sm:$0xff] }
 0xb84   : > { %v5097_v51 = vpack.c.bf16 %v5674_v35, %v5673_v39  ;;  %v5773_v53 = vpop.eup %5772  ;;  %v1693_v35 = vld [vmem:[#allocation10 + $0x58] sm:$0xff] }
 0xb85   : > { %v1360_v56 = vmul.f32 %v5773_v53, %v5769_v42  ;;  %v1688_v42 = vld [vmem:[#allocation10 + $0x30] sm:$0xff]  ;;  %v5127_v39 = vpack.c.bf16 %v1693_v35, %v1692_v46  ;;  %v1695_v53 = vld [vmem:[#allocation10 + $0x68] sm:$0xff] }
 0xb86   : > { %5099 = vmatprep.subr.msk.bf16.mxu1 %vm6547_vm1, %v5097_v51  ;;  %v1834_v46 = vld [vmem:[#allocation11 + $0xa8] sm:$0xff] }
 0xb88   : > { %v5775_v54 = vpop.eup %5774 }
 0xb89   : > { %v1359_v55 = vmul.f32 %v5775_v54, %v5771_v43  ;;  %v5119_v43 = vpack.c.bf16 %v1689_v52, %v1688_v42  ;;  %v1821_v42 = vld [vmem:[#allocation11 + $0x40] sm:$0xff] }
 0xb8a   : > { %v1825_v52 = vld [vmem:[#allocation11 + $0x60] sm:$0xff] }
 0xb8b   : > { %4793 = vmatprep.mubr.msk.f32.mxu1 %vm938_vm2, %v1359_v55  ;;  %v1696_v55 = vld [vmem:[#allocation10 + $0x70] sm:$0xff]  ;;  %v5145_v6 = vpack.c.bf16 %v1825_v52, %v1821_v42  ;;  %v1857_v42 = vld [vmem:[#allocation11 + $0x160] sm:$0xff] }
 0xb8c   : > { %4794 = vmatmul.mubr.msk.f32.vlgmr.msra.gmra.mrb[14].mxu1 %vm938_vm2, %v1360_v56  ;;  %v1697_v56 = vld [vmem:[#allocation10 + $0x78] sm:$0xff] }
 0xb8d   : > { %5102 = vmatpush3.bf16.xpose.msk.msra.mxu1 %vm6547_vm1, %v5097_v51  ;;  %4800 = vmatprep.mubr.msk.f32.mxu1 %vm848_vm0, %v1449_v57  ;;  %v1694_v51 = vld [vmem:[#allocation10 + $0x60] sm:$0xff]  ;;  %v5135_v57 = vpack.c.bf16 %v1697_v56, %v1696_v55 }
 0xb8e   : > { %v5131_v54 = vpack.c.bf16 %v1695_v53, %v1694_v51  ;;  %v1832_v51 = vld [vmem:[#allocation11 + $0x98] sm:$0xff]  ;;  %v1833_v56 = vld [vmem:[#allocation11 + $0xa0] sm:$0xff] }
 0xb8f   : > { %v1836_v53 = vld [vmem:[#allocation11 + $0xb8] sm:$0xff] }
 0xb90   : > { %v5179_v55 = vpack.c.bf16 %v1836_v53, %v1832_v51  ;;  %v1868_v51 = vld [vmem:[#allocation11 + $0x1b8] sm:$0xff] }
 0xb94   : > { %4801 = vmatmul.mubr.msk.f32.vlgmr.msra.gmra.mrb[16].mxu1 %vm848_vm0, %v1451_v3 }
 0xc5f   : > { %v4795_v58 = vpop.f32.mrb[14].mxu1 }
 0xc60   : > { %v1439_v59 = vpop.f32.mrb[15].mxu1 }
 0xc61   : > { %v5685_v60 = vpack.i.bf16 %v4795_v58, %v1439_v59 }
 0xc67   : > { %v4802_v61 = vpop.f32.mrb[16].mxu1 }
 0xc68   : > { %v1540_v62 = vmul.f32 0.17677669, %v4802_v61  ;;  %v1530_v63 = vpop.f32.mrb[17].mxu1 }
 0xc69   : > { %v1539_v1 = vmul.f32 0.17677669, %v1530_v63 }
 0xc6a   : > { %v1544_v2 = vsel %vm938_vm2, %v1540_v62, -inf }
 0xc6b   : > { %1545 = vmax.xlane.f32.xlu0 %v1544_v2  ;;  %v1541_v7 = vsel %vm938_vm2, %v1539_v1, -inf }
 0xc6c   : > { %1542 = vmax.xlane.f32.xlu1 %v1541_v7 }
 0xc7d   : > { %5676 = vrot.lane.b32.xlu1 %v6553_v5, %s6158_s13 }
 0xc81   : > { %5686 = vrot.lane.b32.xlu1 %v5685_v60, %s6157_s1 }
 0xcf8   : > { %v1546_v9 = vpop.xlane.xlu0 %1545 }
 0xcf9   : > { %v1548_v10 = vsub.f32 %v1540_v62, %v1546_v9  ;;  %v1543_v11 = vpop.xlane.xlu1 %1542 }
 0xcfa   : > { %v1547_v12 = vsub.f32 %v1539_v1, %v1543_v11 }
 0xcfb   : > { %v1551_v14 = vmul.f32 1.442695, %v1548_v10 }
 0xcfc   : > { %v1549_v15 = vmul.f32 1.442695, %v1547_v12 }
 0xcfd   : > { %v5677_v16 = vpop.permute.xlu1 %5676 }
 0xcfe   : > { %5776 = vpow2.f32 %v1549_v15  ;;  %v5679_v17 = vunpack.i.h.bf16 %v5677_v16  ;;  %v5678_v18 = vunpack.i.l.bf16 %v5677_v16 }
 0xcff   : > { %5778 = vpow2.f32 %v1551_v14 }
 0xd00   : > { %v5103_v22 = vpack.c.bf16 %v5679_v17, %v5678_v18 }
 0xd01   : > { %v5687_v63 = vpop.permute.xlu1 %5686 }
 0xd02   : > { %5104 = vmatprep.subr.bf16.mxu1 %v5103_v22  ;;  %v5689_v7 = vunpack.i.h.bf16 %v5687_v63  ;;  %v5688_v9 = vunpack.i.l.bf16 %v5687_v63 }
 0xd03   : > { %5106 = vmatpush3.bf16.msra.mxu1 %v5103_v22 }
 0xd08   : > { %v5777_v23 = vpop.eup %5776 }
 0xd09   : > { %v1553_v24 = vsel %vm938_vm2, %v5777_v23, 0.0  ;;  %v5779_v5 = vpop.eup %5778 }
 0xd0a   : > { %1554 = vadd.xlane.f32.xlu0 %v1553_v24  ;;  %v1556_v25 = vsel %vm938_vm2, %v5779_v5, 0.0 }
 0xd0e   : > { %1557 = vadd.xlane.f32.xlu0 %v1556_v25  ;;  %v1814_v25 = vld [vmem:[#allocation11 + $0x8] sm:$0xff] }
 0xd24   : > { %5681 = vrot.lane.b32.xlu0 %v5680_v21, %s6158_s13  ;;  %v1686_v21 = vld [vmem:[#allocation10 + $0x20] sm:$0xff] }
 0xd25   : > { %v5115_v41 = vpack.c.bf16 %v1687_v37, %v1686_v21  ;;  %v1828_v21 = vld [vmem:[#allocation11 + $0x78] sm:$0xff] }
 0xd27   : > { %5116 = vmatprep.subr.bf16.mxu0 %v5115_v41 }
 0xd28   : > { %5118 = vmatpush3.bf16.msra.mxu0 %v5115_v41  ;;  %v5175_v41 = vpack.c.bf16 %v1828_v21, %v1824_v20  ;;  %v1856_v20 = vld [vmem:[#allocation11 + $0x158] sm:$0xff] }
 0xd29   : > { %5120 = vmatprep.subr.bf16.mxu0 %v5119_v43 }
 0xd2c   : > { %5122 = vmatpush3.bf16.msra.mxu0 %v5119_v43  ;;  %v1823_v43 = vld [vmem:[#allocation11 + $0x50] sm:$0xff] }
 0xd2d   : > { %5124 = vmatprep.subr.bf16.mxu0 %v5123_v45  ;;  %v5177_v35 = vpack.c.bf16 %v1827_v44, %v1823_v43  ;;  %v1859_v44 = vld [vmem:[#allocation11 + $0x170] sm:$0xff] }
 0xd30   : > { %5126 = vmatpush3.bf16.msra.mxu0 %v5123_v45  ;;  %v1830_v45 = vld [vmem:[#allocation11 + $0x88] sm:$0xff] }
 0xd31   : > { %5128 = vmatprep.subr.bf16.mxu0 %v5127_v39 }
 0xd34   : > { %5130 = vmatpush3.bf16.msra.mxu0 %v5127_v39  ;;  %v5147_v39 = vpack.c.bf16 %v1834_v46, %v1830_v45  ;;  %v1862_v45 = vld [vmem:[#allocation11 + $0x188] sm:$0xff] }
 0xd35   : > { %5132 = vmatprep.subr.bf16.mxu0 %v5131_v54 }
 0xd38   : > { %5134 = vmatpush3.bf16.msra.mxu0 %v5131_v54  ;;  %v1829_v54 = vld [vmem:[#allocation11 + $0x80] sm:$0xff] }
 0xd39   : > { %5136 = vmatprep.subr.bf16.mxu0 %v5135_v57 }
 0xd3c   : > { %5138 = vmatpush3.bf16.msra.mxu0 %v5135_v57  ;;  %v1831_v57 = vld [vmem:[#allocation11 + $0x90] sm:$0xff] }
 0xd97   : > { %v1555_v26 = vpop.xlane.xlu0 %1554 }
 0xd98   : > { %5780 = vrcp.f32 %v1555_v26  ;;  %v1818_v26 = vld [vmem:[#allocation11 + $0x28] sm:$0xff] }
 0xd9b   : > { %v1558_v27 = vpop.xlane.xlu0 %1557 }
 0xd9c   : > { %5782 = vrcp.f32 %v1558_v27  ;;  %v1816_v27 = vld [vmem:[#allocation11 + $0x18] sm:$0xff] }
 0xd9f   : > { %v5682_v60 = vpop.permute.xlu0 %5681 }
 0xda0   : > { %v5684_v61 = vunpack.i.h.bf16 %v5682_v60  ;;  %v5683_v62 = vunpack.i.l.bf16 %v5682_v60 }
 0xda2   : > { %v5781_v28 = vpop.eup %5780  ;;  %v1675_v1 = vsel %vm848_vm0, %v6581_v38, %v5684_v61  ;;  %v1674_v2 = vsel %vm848_vm0, %v6583_v40, %v5683_v62  ;;  %v4333_v38 = vld [vmem:[#allocation7 + $0x7] ss:$0 sm:$0xff] }
 0xda3   : > { %v1561_v29 = vmul.f32 %v5781_v28, %v5777_v23  ;;  %v1677_v14 = vsel %vm1676_vm3, %v1674_v2, %v5688_v9  ;;  %v1678_v15 = vsel %vm1676_vm3, %v1675_v1, %v5689_v7  ;;  %v5139_v28 = vpack.c.bf16 %v1818_v26, %v1814_v25  ;;  %v1846_v25 = vld [vmem:[#allocation11 + $0x108] sm:$0xff] }
 0xda4   : > { %v1850_v26 = vld [vmem:[#allocation11 + $0x128] sm:$0xff] }
 0xda5   : > { %4807 = vmatprep.mubr.msk.f32.mxu1 %vm938_vm2, %v1561_v29  ;;  %v1820_v29 = vld [vmem:[#allocation11 + $0x38] sm:$0xff]  ;;  %5140 = vmatprep.subr.bf16.mxu1 %v5139_v28  ;;  %v5155_v28 = vpack.c.bf16 %v1850_v26, %v1846_v25 }
 0xda6   : > { %v5783_v30 = vpop.eup %5782  ;;  %v5171_v32 = vpack.c.bf16 %v1820_v29, %v1816_v27  ;;  %v1848_v27 = vld [vmem:[#allocation11 + $0x118] sm:$0xff] }
 0xda7   : > { %v1562_v31 = vmul.f32 %v5783_v30, %v5779_v5  ;;  %v1813_v30 = vld [vmem:[#allocation11] sm:$0xff]  ;;  %v1852_v29 = vld [vmem:[#allocation11 + $0x138] sm:$0xff] }
 0xda8   : > { %5172 = vmatprep.subr.bf16.mxu0 %v5171_v32  ;;  %v5187_v32 = vpack.c.bf16 %v1852_v29, %v1848_v27 }
 0xda9   : > { %4808 = vmatmul.mubr.msk.f32.vlgmr.msra.gmra.mrb[18].mxu1 %vm938_vm2, %v1562_v31  ;;  %v1817_v31 = vld [vmem:[#allocation11 + $0x20] sm:$0xff] }
 0xdaa   : > { %1963 = vmatprep.mubr.f32.mxu1 %v6155_v13  ;;  %v5141_v33 = vpack.c.bf16 %v1817_v31, %v1813_v30  ;;  %v1845_v30 = vld [vmem:[#allocation11 + $0x100] sm:$0xff] }
 0xdab   : > { %v1849_v31 = vld [vmem:[#allocation11 + $0x120] sm:$0xff] }
 0xdac   : > { %5142 = vmatpush1.bf16.msra.mxu1 %v5141_v33  ;;  %v5157_v33 = vpack.c.bf16 %v1849_v31, %v1845_v30 }
 0xe7c   : > { %v4809_v3 = vpop.f32.mrb[18].mxu1 }
 0xe7d   : > { %v1641_v58 = vpop.f32.mrb[19].mxu1 }
 0xe7e   : > { %v5690_v59 = vpack.i.bf16 %v4809_v3, %v1641_v58  ;;  %v1835_v3 = vld [vmem:[#allocation11 + $0xb0] sm:$0xff]  ;;  %v5149_v58 = vpack.c.bf16 %v1833_v56, %v1829_v54  ;;  %v1865_v56 = vld [vmem:[#allocation11 + $0x1a0] sm:$0xff] }
 0xe80   : > { %5691 = vrot.lane.b32.xlu1 %v5690_v59, %s6156_s18  ;;  %v5181_v59 = vpack.c.bf16 %v1835_v3, %v1831_v57  ;;  %v1863_v57 = vld [vmem:[#allocation11 + $0x190] sm:$0xff] }
 0xef2   : > { %v5692_v10 = vpop.permute.xlu1 %5691 }
 0xef3   : > { %v5694_v11 = vunpack.i.h.bf16 %v5692_v10  ;;  %v5693_v12 = vunpack.i.l.bf16 %v5692_v10  ;;  %v1838_v10 = vld [vmem:[#allocation11 + $0xc8] sm:$0xff] }
 0xef5   : > { %v1680_v16 = vsel %vm1679_vm4, %v1677_v14, %v5693_v12  ;;  %v1681_v17 = vsel %vm1679_vm4, %v1678_v15, %v5694_v11  ;;  %v1842_v11 = vld [vmem:[#allocation11 + $0xe8] sm:$0xff]  ;;  %v1840_v12 = vld [vmem:[#allocation11 + $0xd8] sm:$0xff] }
 0xef6   : > { %4842 = vmatprep.mubr.f32.mxu0 %v1680_v16  ;;  %v5151_v14 = vpack.c.bf16 %v1842_v11, %v1838_v10  ;;  %v1844_v15 = vld [vmem:[#allocation11 + $0xf8] sm:$0xff]  ;;  %v1837_v16 = vld [vmem:[#allocation11 + $0xc0] sm:$0xff] }
 0xef7   : > { %4843 = vmatmul.mubr.f32.vlgmr.msra.gmra.mrb[4].mxu0 %v1681_v17  ;;  %v1841_v17 = vld [vmem:[#allocation11 + $0xe0] sm:$0xff] }
 0xef8   : > { %2040 = vmatprep.mubr.f32.mxu0 %v6155_v13  ;;  %5174 = vmatpush1.bf16.msra.mxu0 %v5173_v19  ;;  %v1854_v19 = vld [vmem:[#allocation11 + $0x148] sm:$0xff]  ;;  %v1873_v11 = vld [vmem:[#allocation11 + $0x1e0] sm:$0xff] }
 0xef9   : > { %5176 = vmatprep.subr.bf16.mxu0 %v5175_v41  ;;  %v1853_v41 = vld [vmem:[#allocation11 + $0x140] sm:$0xff] }
 0xefa   : > { %v5161_v43 = vpack.c.bf16 %v1857_v42, %v1853_v41 }
 0xefc   : > { %5178 = vmatpush1.bf16.msra.mxu0 %v5177_v35  ;;  %v1866_v35 = vld [vmem:[#allocation11 + $0x1a8] sm:$0xff] }
 0xefd   : > { %5180 = vmatprep.subr.bf16.mxu0 %v5179_v55  ;;  %v5163_v53 = vpack.c.bf16 %v1866_v35, %v1862_v45  ;;  %v1861_v55 = vld [vmem:[#allocation11 + $0x180] sm:$0xff]  ;;  %v2175_v45 = vld [vmem:[#allocation13 + $0x190] sm:$0xff]  ;;  %v2176_v35 = vld [vmem:[#allocation13 + $0x198] sm:$0xff] }
 0xefe   : > { %v5165_v3 = vpack.c.bf16 %v1865_v56, %v1861_v55  ;;  %v2160_v55 = vld [vmem:[#allocation13 + $0x118] sm:$0xff] }
 0xf00   : > { %5182 = vmatpush1.bf16.msra.mxu0 %v5181_v59  ;;  %v1870_v59 = vld [vmem:[#allocation11 + $0x1c8] sm:$0xff] }
 0xfca   : > { %v4844_v40 = vpop.f32.mrb[4].mxu0 }
 0xfcb   : > { %v1774_v18 = vadd.f32 %v4844_v40, %v4333_v38  ;;  %v1768_v22 = vpop.f32.mrb[5].mxu0  ;;  %v5153_v40 = vpack.c.bf16 %v1841_v17, %v1837_v16  ;;  %v2141_v17 = vld [vmem:[#allocation13 + $0x80] sm:$0xff] }
 0xfcc   : > { %v1769_v23 = vadd.f32 %v4333_v38, %v1768_v22  ;;  %v5183_v38 = vpack.c.bf16 %v1844_v15, %v1840_v12  ;;  %v1843_v22 = vld [vmem:[#allocation11 + $0xf0] sm:$0xff] }
 0xfcd   : > { %v6656_v24 = vadd.f32 %v1774_v18, %v6507_v8  ;;  %v1822_v8 = vld [vmem:[#allocation11 + $0x48] sm:$0xff]  ;;  %v1839_v18 = vld [vmem:[#allocation11 + $0xd0] sm:$0xff] }
 0xfce   : > { %v6659_v5 = vadd.f32 %v1769_v23, %v6504_v4  ;;  %v1826_v4 = vld [vmem:[#allocation11 + $0x68] sm:$0xff]  ;;  %v5185_v23 = vpack.c.bf16 %v1843_v22, %v1839_v18  ;;  %5184 = vmatprep.subr.bf16.mxu0 %v5183_v38  ;;  %v1871_v12 = vld [vmem:[#allocation11 + $0x1d0] sm:$0xff] }
 0xfcf   : > { %1781 = vadd.xlane.f32.xlu0 %v6656_v24  ;;  %v5143_v37 = vpack.c.bf16 %v1826_v4, %v1822_v8  ;;  %v5189_v8 = vpack.c.bf16 %v1851_v36, %v1847_v34  ;;  %v1858_v4 = vld [vmem:[#allocation11 + $0x168] sm:$0xff]  ;;  %v2125_v36 = vld [vmem:[#allocation13] sm:$0xff] }
 0xfd0   : > { %1779 = vadd.xlane.f32.xlu1 %v6659_v5  ;;  %5186 = vmatpush1.bf16.msra.mxu0 %v5185_v23  ;;  %v5159_v21 = vpack.c.bf16 %v1858_v4, %v1854_v19  ;;  %v2142_v38 = vld [vmem:[#allocation13 + $0x88] sm:$0xff]  ;;  %v2157_v19 = vld [vmem:[#allocation13 + $0x100] sm:$0xff] }
 0xfd1   : > { %5144 = vmatprep.subr.bf16.mxu1 %v5143_v37  ;;  %5188 = vmatprep.subr.bf16.mxu0 %v5187_v32  ;;  %v1860_v37 = vld [vmem:[#allocation11 + $0x178] sm:$0xff]  ;;  %v5203_v18 = vpack.c.bf16 %v2142_v38, %v2141_v17  ;;  %v2174_v22 = vld [vmem:[#allocation13 + $0x188] sm:$0xff]  ;;  %v4334_v32 = vld [vmem:[#allocation7 + $0x8] ss:$0 sm:$0xff] }
 0xfd2   : > { %5146 = vmatpush1.bf16.msra.mxu1 %v5145_v6  ;;  %v5191_v52 = vpack.c.bf16 %v1860_v37, %v1856_v20  ;;  %v1855_v6 = vld [vmem:[#allocation11 + $0x150] sm:$0xff]  ;;  %v2158_v4 = vld [vmem:[#allocation13 + $0x108] sm:$0xff]  ;;  %v2180_v17 = vld [vmem:[#allocation13 + $0x1b8] sm:$0xff] }
 0xfd3   : > { %5148 = vmatprep.subr.bf16.mxu1 %v5147_v39  ;;  %v5193_v46 = vpack.c.bf16 %v1859_v44, %v1855_v6  ;;  %v1864_v39 = vld [vmem:[#allocation11 + $0x198] sm:$0xff]  ;;  %v2131_v38 = vld [vmem:[#allocation13 + $0x30] sm:$0xff] }
 0xfd4   : > { %5190 = vmatpush1.bf16.msra.mxu0 %v5189_v8  ;;  %v5195_v54 = vpack.c.bf16 %v1868_v51, %v1864_v39  ;;  %v2126_v8 = vld [vmem:[#allocation13 + $0x8] sm:$0xff]  ;;  %v2144_v44 = vld [vmem:[#allocation13 + $0x98] sm:$0xff]  ;;  %v5239_v51 = vpack.c.bf16 %v2176_v35, %v2175_v45 }
 0xfd5   : > { %5192 = vmatprep.subr.bf16.mxu0 %v5191_v52  ;;  %v5205_v42 = vpack.c.bf16 %v2126_v8, %v2125_v36  ;;  %v5237_v52 = vpack.c.bf16 %v2158_v4, %v2157_v19  ;;  %v2128_v39 = vld [vmem:[#allocation13 + $0x18] sm:$0xff]  ;;  %v2165_v8 = vld [vmem:[#allocation13 + $0x140] sm:$0xff]  ;;  %v2166_v19 = vld [vmem:[#allocation13 + $0x148] sm:$0xff] }
 0xfd6   : > { %5150 = vmatpush1.bf16.msra.mxu1 %v5149_v58  ;;  %v1867_v58 = vld [vmem:[#allocation11 + $0x1b0] sm:$0xff]  ;;  %v2168_v45 = vld [vmem:[#allocation13 + $0x158] sm:$0xff]  ;;  %v2154_v35 = vld [vmem:[#allocation13 + $0xe8] sm:$0xff] }
 0xfd7   : > { %5152 = vmatprep.subr.bf16.mxu1 %v5151_v14  ;;  %v1875_v14 = vld [vmem:[#allocation11 + $0x1f0] sm:$0xff] }
 0xfd8   : > { %5194 = vmatpush1.bf16.msra.mxu0 %v5193_v46  ;;  %v5201_v16 = vpack.c.bf16 %v1875_v14, %v1871_v12  ;;  %v2147_v12 = vld [vmem:[#allocation13 + $0xb0] sm:$0xff]  ;;  %v2148_v14 = vld [vmem:[#allocation13 + $0xb8] sm:$0xff] }
 0xfd9   : > { %5196 = vmatprep.subr.bf16.mxu0 %v5195_v54  ;;  %v2159_v54 = vld [vmem:[#allocation13 + $0x110] sm:$0xff] }
 0xfda   : > { %5154 = vmatpush1.bf16.msra.mxu1 %v5153_v40  ;;  %v2173_v40 = vld [vmem:[#allocation13 + $0x180] sm:$0xff]  ;;  %v5241_v56 = vpack.c.bf16 %v2160_v55, %v2159_v54  ;;  %v2151_v4 = vld [vmem:[#allocation13 + $0xd0] sm:$0xff] }
 0xfdb   : > { %5156 = vmatprep.subr.bf16.mxu1 %v5155_v28  ;;  %v5235_v23 = vpack.c.bf16 %v2174_v22, %v2173_v40  ;;  %v2132_v40 = vld [vmem:[#allocation13 + $0x38] sm:$0xff]  ;;  %v2137_v54 = vld [vmem:[#allocation13 + $0x60] sm:$0xff] }
 0xfdc   : > { %v5217_v22 = vpack.c.bf16 %v2132_v40, %v2131_v38  ;;  %v1893_v38 = vsub.s32 3, %v6524_v47 }
 0xfde   : > { %5158 = vmatpush1.bf16.msra.mxu1 %v5157_v33  ;;  %v4335_v33 = vld [vmem:[#allocation7 + $0x9] ss:$0 sm:$0xff] }
 0xfdf   : > { %5160 = vmatprep.subr.bf16.mxu1 %v5159_v21 }
 0xfe2   : > { %5162 = vmatpush1.bf16.msra.mxu1 %v5161_v43 }
 0xfe3   : > { %5164 = vmatprep.subr.bf16.mxu1 %v5163_v53 }
 0xfe6   : > { %5166 = vmatpush1.bf16.msra.mxu1 %v5165_v3  ;;  %v2146_v3 = vld [vmem:[#allocation13 + $0xa8] sm:$0xff] }
0x105c   : > { %v1782_v60 = vpop.xlane.xlu0 %1781 }
0x105d   : > { %v1780_v61 = vpop.xlane.xlu1 %1779  ;;  %v1784_v62 = vmul.f32 0.0078125, %v1782_v60  ;;  %v1874_v60 = vld [vmem:[#allocation11 + $0x1e8] sm:$0xff] }
0x105e   : > { %v1783_v63 = vmul.f32 0.0078125, %v1780_v61  ;;  %v5197_v61 = vpack.c.bf16 %v1867_v58, %v1863_v57  ;;  %v2145_v57 = vld [vmem:[#allocation13 + $0xa0] sm:$0xff] }
0x105f   : > { %v6667_v2 = vsub.f32 %v6656_v24, %v1784_v62  ;;  %v5167_v62 = vpack.c.bf16 %v1874_v60, %v1870_v59  ;;  %v2177_v58 = vld [vmem:[#allocation13 + $0x1a0] sm:$0xff]  ;;  %v5211_v59 = vpack.c.bf16 %v2146_v3, %v2145_v57  ;;  %v2178_v60 = vld [vmem:[#allocation13 + $0x1a8] sm:$0xff] }
0x1060   : > { %v6664_v1 = vsub.f32 %v6659_v5, %v1783_v63  ;;  %v1872_v63 = vld [vmem:[#allocation11 + $0x1d8] sm:$0xff]  ;;  %5198 = vmatpush1.bf16.msra.mxu0 %v5197_v61  ;;  %v2129_v61 = vld [vmem:[#allocation13 + $0x20] sm:$0xff]  ;;  %v2170_v3 = vld [vmem:[#allocation13 + $0x168] sm:$0xff] }
0x1061   : > { %v1788_v9 = vmul.f32 %v6667_v2, %v6667_v2  ;;  %5168 = vmatprep.subr.bf16.mxu1 %v5167_v62  ;;  %v2130_v62 = vld [vmem:[#allocation13 + $0x28] sm:$0xff]  ;;  %v2169_v57 = vld [vmem:[#allocation13 + $0x160] sm:$0xff] }
0x1062   : > { %v1787_v7 = vmul.f32 %v6664_v1, %v6664_v1 }
0x1064   : > { %1789 = vadd.xlane.f32.xlu0 %v1787_v7  ;;  %v1876_v7 = vld [vmem:[#allocation11 + $0x1f8] sm:$0xff] }
0x1065   : > { %v5199_v10 = vpack.c.bf16 %v1876_v7, %v1872_v63  ;;  %v5243_v63 = vpack.c.bf16 %v2178_v60, %v2177_v58  ;;  %v5213_v7 = vpack.c.bf16 %v2130_v62, %v2129_v61  ;;  %v2156_v60 = vld [vmem:[#allocation13 + $0xf8] sm:$0xff]  ;;  %v2187_v61 = vld [vmem:[#allocation13 + $0x1f0] sm:$0xff]  ;;  %v5261_v62 = vpack.c.bf16 %v2170_v3, %v2169_v57 }
0x1067   : > { %5200 = vmatprep.subr.bf16.mxu0 %v5199_v10  ;;  %v2162_v10 = vld [vmem:[#allocation13 + $0x128] sm:$0xff] }
0x1068   : > { %1791 = vadd.xlane.f32.xlu0 %v1788_v9  ;;  %v1869_v9 = vld [vmem:[#allocation11 + $0x1c0] sm:$0xff]  ;;  %5202 = vmatpush1.bf16.msra.mxu0 %v5201_v16  ;;  %v5215_v16 = vpack.c.bf16 %v2148_v14, %v2147_v12  ;;  %v2171_v12 = vld [vmem:[#allocation13 + $0x170] sm:$0xff]  ;;  %v2172_v14 = vld [vmem:[#allocation13 + $0x178] sm:$0xff] }
0x1069   : > { %v5169_v15 = vpack.c.bf16 %v1873_v11, %v1869_v9  ;;  %5236 = vmatprep.subr.bf16.mxu0 %v5235_v23  ;;  %v2161_v9 = vld [vmem:[#allocation13 + $0x120] sm:$0xff]  ;;  %v2163_v23 = vld [vmem:[#allocation13 + $0x130] sm:$0xff] }
0x106a   : > { %v5245_v11 = vpack.c.bf16 %v2162_v10, %v2161_v9  ;;  %v2139_v9 = vld [vmem:[#allocation13 + $0x70] sm:$0xff]  ;;  %v2140_v10 = vld [vmem:[#allocation13 + $0x78] sm:$0xff] }
0x106b   : > { %5170 = vmatpush1.bf16.msra.mxu1 %v5169_v15  ;;  %v2179_v15 = vld [vmem:[#allocation13 + $0x1b0] sm:$0xff] }
0x106c   : > { %5204 = vmatprep.subr.bf16.mxu1 %v5203_v18  ;;  %v5247_v18 = vpack.c.bf16 %v2180_v17, %v2179_v15  ;;  %v5233_v15 = vpack.c.bf16 %v2140_v10, %v2139_v9  ;;  %v1877_v17 = vld [vmem:[%s6983_s7] sm:$0xf] }
0x106d   : > { %v1882_v40 = vrot.slane %v1877_v17, %v6527_v48 }
0x10f1   : > { %v1790_v25 = vpop.xlane.xlu0 %1789 }
0x10f2   : > { %v1793_v26 = vmul.f32 0.0078125, %v1790_v25  ;;  %v2164_v25 = vld [vmem:[#allocation13 + $0x138] sm:$0xff] }
0x10f4   : > { %v1795_v27 = vadd.f32 1e-05, %v1793_v26  ;;  %v5249_v26 = vpack.c.bf16 %v2164_v25, %v2163_v23  ;;  %v1894_v23 = vrot.slane %v1877_v17, %v1893_v38 }
0x10f5   : > { %v1792_v28 = vpop.xlane.xlu0 %1791 }
0x10f6   : > { %5784 = vrsqrt.f32 %v1795_v27  ;;  %v1794_v29 = vmul.f32 0.0078125, %v1792_v28  ;;  %v2149_v27 = vld [vmem:[#allocation13 + $0xc0] sm:$0xff]  ;;  %v2150_v28 = vld [vmem:[#allocation13 + $0xc8] sm:$0xff] }
0x10f8   : > { %v1796_v30 = vadd.f32 1e-05, %v1794_v29  ;;  %v2181_v29 = vld [vmem:[#allocation13 + $0x1c0] sm:$0xff] }
0x10fa   : > { %5786 = vrsqrt.f32 %v1796_v30  ;;  %v5219_v30 = vpack.c.bf16 %v2150_v28, %v2149_v27 }
0x1100   : > { %v5785_v31 = vpop.eup %5784 }
0x1101   : > { %v1799_v34 = vmul.f32 %v5785_v31, %v6664_v1  ;;  %v2143_v1 = vld [vmem:[#allocation13 + $0x90] sm:$0xff]  ;;  %v2182_v31 = vld [vmem:[#allocation13 + $0x1c8] sm:$0xff] }
0x1102   : > { %v5207_v46 = vpack.c.bf16 %v2144_v44, %v2143_v1  ;;  %v2167_v1 = vld [vmem:[#allocation13 + $0x150] sm:$0xff] }
0x1103   : > { %v1805_v20 = vmul.f32 %v4334_v32, %v1799_v34  ;;  %v5251_v34 = vpack.c.bf16 %v2182_v31, %v2181_v29 }
0x1104   : > { %v5787_v21 = vpop.eup %5786 }
0x1105   : > { %v1811_v37 = vadd.f32 %v4335_v33, %v1805_v20  ;;  %v1800_v41 = vmul.f32 %v5787_v21, %v6667_v2  ;;  %v2127_v2 = vld [vmem:[#allocation13 + $0x10] sm:$0xff]  ;;  %v5253_v20 = vpack.c.bf16 %v2166_v19, %v2165_v8  ;;  %v2152_v21 = vld [vmem:[#allocation13 + $0xd8] sm:$0xff] }
0x1106   : > { %v5209_v53 = vpack.c.bf16 %v2128_v39, %v2127_v2  ;;  %v5257_v2 = vpack.c.bf16 %v2168_v45, %v2167_v1 }
0x1107   : > { %1964 = vmatmul.mubr.f32.vlgmr.msra.gmra.mrb[20].mxu1 %v1811_v37  ;;  %2041 = vmatmul.mubr.f32.vlgmr.msra.gmra.mrb[6].mxu0 %v1811_v37  ;;  %v1806_v43 = vmul.f32 %v4334_v32, %v1800_v41  ;;  %v2133_v32 = vld [vmem:[#allocation13 + $0x40] sm:$0xff]  ;;  %v2183_v37 = vld [vmem:[#allocation13 + $0x1d0] sm:$0xff]  ;;  %v2184_v41 = vld [vmem:[#allocation13 + $0x1d8] sm:$0xff] }
0x1108   : > { %1969 = vmatprep.mubr.f32.mxu1 %v6155_v13  ;;  %2046 = vmatprep.mubr.f32.mxu0 %v6155_v13 }
0x1109   : > { %v1812_v6 = vadd.f32 %v4335_v33, %v1806_v43  ;;  %5206 = vmatpush3.bf16.msra.mxu1 %v5205_v42  ;;  %5238 = vmatpush3.bf16.msra.mxu0 %v5237_v52  ;;  %v2134_v33 = vld [vmem:[#allocation13 + $0x48] sm:$0xff]  ;;  %v5223_v42 = vpack.c.bf16 %v2152_v21, %v2151_v4  ;;  %v5255_v52 = vpack.c.bf16 %v2184_v41, %v2183_v37  ;;  %v2135_v43 = vld [vmem:[#allocation13 + $0x50] sm:$0xff] }
0x110a   : > { %5208 = vmatprep.subr.bf16.mxu1 %v5207_v46  ;;  %5240 = vmatprep.subr.bf16.mxu0 %v5239_v51  ;;  %v5221_v36 = vpack.c.bf16 %v2134_v33, %v2133_v32  ;;  %v2153_v46 = vld [vmem:[#allocation13 + $0xe0] sm:$0xff] }
0x110b   : > { %1970 = vmatmul.mubr.f32.gmra.mrb[22].mxu1 %v1812_v6  ;;  %2047 = vmatmul.mubr.f32.gmra.mrb[8].mxu0 %v1812_v6  ;;  %v2136_v6 = vld [vmem:[#allocation13 + $0x58] sm:$0xff]  ;;  %v5227_v39 = vpack.c.bf16 %v2154_v35, %v2153_v46  ;;  %v2185_v51 = vld [vmem:[#allocation13 + $0x1e0] sm:$0xff] }
0x110c   : > { %v5225_v44 = vpack.c.bf16 %v2136_v6, %v2135_v43 }
0x110d   : > { %5210 = vmatpush3.bf16.msra.mxu1 %v5209_v53  ;;  %5242 = vmatpush3.bf16.msra.mxu0 %v5241_v56  ;;  %v2186_v53 = vld [vmem:[#allocation13 + $0x1e8] sm:$0xff] }
0x110e   : > { %5212 = vmatprep.subr.bf16.mxu1 %v5211_v59  ;;  %5244 = vmatprep.subr.bf16.mxu0 %v5243_v63  ;;  %v5259_v55 = vpack.c.bf16 %v2186_v53, %v2185_v51  ;;  %v2138_v56 = vld [vmem:[#allocation13 + $0x68] sm:$0xff]  ;;  %v2155_v59 = vld [vmem:[#allocation13 + $0xf0] sm:$0xff] }
0x110f   : > { %v5229_v58 = vpack.c.bf16 %v2138_v56, %v2137_v54  ;;  %v5231_v63 = vpack.c.bf16 %v2156_v60, %v2155_v59 }
0x1111   : > { %5214 = vmatpush3.bf16.msra.mxu1 %v5213_v7  ;;  %5246 = vmatpush3.bf16.msra.mxu0 %v5245_v11  ;;  %v2188_v7 = vld [vmem:[#allocation13 + $0x1f8] sm:$0xff] }
0x1112   : > { %5216 = vmatprep.subr.bf16.mxu1 %v5215_v16  ;;  %5248 = vmatprep.subr.bf16.mxu0 %v5247_v18  ;;  %v5263_v11 = vpack.c.bf16 %v2188_v7, %v2187_v61  ;;  %v5265_v16 = vpack.c.bf16 %v2172_v14, %v2171_v12  ;;  %v1890_v18 = vrot.slane %v1877_v17, %v6534_v49 }
0x1115   : > { %5218 = vmatpush3.bf16.msra.mxu1 %v5217_v22  ;;  %5250 = vmatpush3.bf16.msra.mxu0 %v5249_v26  ;;  %v1886_v22 = vrot.slane %v1877_v17, %v6537_v50 }
0x1116   : > { %5220 = vmatprep.subr.bf16.mxu1 %v5219_v30  ;;  %5252 = vmatprep.subr.bf16.mxu0 %v5251_v34 }
0x1119   : > { %5222 = vmatpush3.bf16.msra.mxu1 %v5221_v36  ;;  %5254 = vmatpush3.bf16.msra.mxu0 %v5253_v20 }
0x111a   : > { %5224 = vmatprep.subr.bf16.mxu1 %v5223_v42  ;;  %5256 = vmatprep.subr.bf16.mxu0 %v5255_v52 }
0x111d   : > { %5226 = vmatpush3.bf16.msra.mxu1 %v5225_v44  ;;  %5258 = vmatpush3.bf16.msra.mxu0 %v5257_v2 }
0x111e   : > { %5228 = vmatprep.subr.bf16.mxu1 %v5227_v39  ;;  %5260 = vmatprep.subr.bf16.mxu0 %v5259_v55 }
0x1121   : > { %5230 = vmatpush3.bf16.msra.mxu1 %v5229_v58  ;;  %5262 = vmatpush3.bf16.msra.mxu0 %v5261_v62 }
0x1122   : > { %5232 = vmatprep.subr.bf16.mxu1 %v5231_v63  ;;  %5264 = vmatprep.subr.bf16.mxu0 %v5263_v11 }
0x1125   : > { %5234 = vmatpush3.bf16.msra.mxu1 %v5233_v15  ;;  %5266 = vmatpush3.bf16.msra.mxu0 %v5265_v16 }
0x11da   : > { %v1965_v25 = vpop.f32.mrb[20].mxu1  ;;  %v2042_v26 = vpop.f32.mrb[6].mxu0 }
0x11db   : > { %v6686_v27 = vadd.f32 %v1965_v25, %v1882_v40  ;;  %v6688_v28 = vadd.f32 %v2042_v26, %v1890_v18  ;;  %v1967_v29 = vpop.f32.mrb[21].mxu1  ;;  %v2044_v30 = vpop.f32.mrb[7].mxu0 }
0x11dc   : > { %v1968_v31 = vadd.f32 %v1967_v29, %v1886_v22  ;;  %v6690_v32 = vadd.f32 %v2044_v30, %v1894_v23 }
0x11dd   : > { %v2061_v33 = vmul.f32 0.044715, %v6686_v27  ;;  %v2063_v34 = vmul.f32 0.044715, %v6688_v28 }
0x11de   : > { %v2062_v36 = vmul.f32 0.044715, %v1968_v31  ;;  %v2064_v8 = vmul.f32 0.044715, %v6690_v32  ;;  %v1971_v19 = vpop.f32.mrb[22].mxu1  ;;  %v2048_v4 = vpop.f32.mrb[8].mxu0 }
0x11df   : > { %v2069_v20 = vmul.f32 %v2061_v33, %v6686_v27  ;;  %v2071_v21 = vmul.f32 %v2063_v34, %v6688_v28  ;;  %v6697_v37 = vadd.f32 %v1971_v19, %v1882_v40  ;;  %v6699_v41 = vadd.f32 %v2048_v4, %v1890_v18  ;;  %v1973_v42 = vpop.f32.mrb[23].mxu1  ;;  %v2050_v52 = vpop.f32.mrb[9].mxu0 }
0x11e0   : > { %v2070_v43 = vmul.f32 %v2062_v36, %v1968_v31  ;;  %v2072_v6 = vmul.f32 %v2064_v8, %v6690_v32  ;;  %v1974_v1 = vadd.f32 %v1973_v42, %v1886_v22  ;;  %v2051_v44 = vadd.f32 %v2050_v52, %v1894_v23 }
0x11e1   : > { %v2077_v45 = vmul.f32 %v2069_v20, %v6686_v27  ;;  %v2079_v46 = vmul.f32 %v2071_v21, %v6688_v28  ;;  %v2065_v35 = vmul.f32 0.044715, %v6697_v37  ;;  %v2067_v2 = vmul.f32 0.044715, %v6699_v41 }
0x11e2   : > { %v2066_v39 = vmul.f32 0.044715, %v1974_v1  ;;  %v2068_v51 = vmul.f32 0.044715, %v2051_v44  ;;  %v2078_v53 = vmul.f32 %v2070_v43, %v1968_v31  ;;  %v2080_v62 = vmul.f32 %v2072_v6, %v6690_v32 }
0x11e3   : > { %v2085_v54 = vadd.f32 %v2077_v45, %v6686_v27  ;;  %v2087_v55 = vadd.f32 %v2079_v46, %v6688_v28  ;;  %v2073_v56 = vmul.f32 %v2065_v35, %v6697_v37  ;;  %v2075_v61 = vmul.f32 %v2067_v2, %v6699_v41 }
0x11e4   : > { %v2074_v57 = vmul.f32 %v2066_v39, %v1974_v1  ;;  %v2076_v3 = vmul.f32 %v2068_v51, %v2051_v44  ;;  %v2086_v58 = vadd.f32 %v2078_v53, %v1968_v31  ;;  %v2088_v10 = vadd.f32 %v2080_v62, %v6690_v32 }
0x11e5   : > { %v2093_v59 = vmul.f32 0.7978846, %v2085_v54  ;;  %v2095_v60 = vmul.f32 0.7978846, %v2087_v55  ;;  %v2081_v11 = vmul.f32 %v2073_v56, %v6697_v37  ;;  %v2083_v17 = vmul.f32 %v2075_v61, %v6699_v41 }
0x11e6   : > { %v2094_v63 = vmul.f32 0.7978846, %v2086_v58  ;;  %v2082_v7 = vmul.f32 %v2074_v57, %v1974_v1  ;;  %v2084_v9 = vmul.f32 %v2076_v3, %v2051_v44  ;;  %v2096_v15 = vmul.f32 0.7978846, %v2088_v10  ;;  %v4336_v58 = vld [vmem:[#allocation7 + $0xa] ss:$0 sm:$0xff] }
0x11e7   : > { %5788 = vtanh.f32 %v2093_v59  ;;  %v2089_v16 = vadd.f32 %v2081_v11, %v6697_v37  ;;  %v2091_v23 = vadd.f32 %v2083_v17, %v6699_v41  ;;  %v2054_v34 = vmul.f32 0.5, %v1968_v31 }
0x11e8   : > { %5790 = vtanh.f32 %v2095_v60  ;;  %v2090_v12 = vadd.f32 %v2082_v7, %v1974_v1  ;;  %v2092_v14 = vadd.f32 %v2084_v9, %v2051_v44  ;;  %v2053_v19 = vmul.f32 0.5, %v6686_v27 }
0x11e9   : > { %5792 = vtanh.f32 %v2094_v63  ;;  %v2097_v22 = vmul.f32 0.7978846, %v2089_v16  ;;  %v2099_v25 = vmul.f32 0.7978846, %v2091_v23  ;;  %v2056_v42 = vmul.f32 0.5, %v6690_v32  ;;  %v2386_v23 = vld [vmem:[#allocation8 + $0x180] sm:$0xff] }
0x11ea   : > { %v2098_v40 = vmul.f32 0.7978846, %v2090_v12  ;;  %v2100_v18 = vmul.f32 0.7978846, %v2092_v14  ;;  %5794 = vtanh.f32 %v2096_v15  ;;  %v2055_v6 = vmul.f32 0.5, %v6688_v28 }
0x11eb   : > { %v2058_v46 = vmul.f32 0.5, %v1974_v1  ;;  %v2060_v31 = vmul.f32 0.5, %v2051_v44  ;;  %v2057_v55 = vmul.f32 0.5, %v6697_v37  ;;  %v2059_v1 = vmul.f32 0.5, %v6699_v41 }
0x11ec   : > { %5796 = vtanh.f32 %v2098_v40 }
0x11ed   : > { %5798 = vtanh.f32 %v2100_v18  ;;  %v2387_v18 = vld [vmem:[#allocation8 + $0x188] sm:$0xff] }
0x11ee   : > { %5800 = vtanh.f32 %v2097_v22  ;;  %v2390_v22 = vld [vmem:[#allocation8 + $0x1a0] sm:$0xff] }
0x11ef   : > { %5802 = vtanh.f32 %v2099_v25  ;;  %v5267_v25 = vpack.c.bf16 %v2390_v22, %v2387_v18  ;;  %v2416_v18 = vld [vmem:[#allocation8 + $0x270] sm:$0xff]  ;;  %v2419_v22 = vld [vmem:[#allocation8 + $0x288] sm:$0xff] }
0x11f1   : > { %v5789_v26 = vpop.eup %5788  ;;  %5268 = vmatprep.subr.bf16.mxu1 %v5267_v25  ;;  %v5289_v25 = vpack.c.bf16 %v2419_v22, %v2416_v18 }
0x11f2   : > { %v5791_v29 = vpop.eup %5790  ;;  %v2109_v33 = vadd.f32 1.0, %v5789_v26  ;;  %v2389_v26 = vld [vmem:[#allocation8 + $0x198] sm:$0xff] }
0x11f3   : > { %v5793_v30 = vpop.eup %5792  ;;  %v2111_v4 = vadd.f32 1.0, %v5791_v29  ;;  %v2393_v29 = vld [vmem:[#allocation8 + $0x1b8] sm:$0xff] }
0x11f4   : > { %v2110_v36 = vadd.f32 1.0, %v5793_v30  ;;  %v5795_v8 = vpop.eup %5794  ;;  %v2117_v45 = vmul.f32 %v2109_v33, %v2053_v19  ;;  %v2396_v30 = vld [vmem:[#allocation8 + $0x1d0] sm:$0xff]  ;;  %v5269_v33 = vpack.c.bf16 %v2389_v26, %v2386_v23  ;;  %v2423_v26 = vld [vmem:[#allocation8 + $0x2a8] sm:$0xff] }
0x11f5   : > { %v2112_v52 = vadd.f32 1.0, %v5795_v8  ;;  %v2119_v27 = vmul.f32 %v2111_v4, %v2055_v6  ;;  %v2392_v8 = vld [vmem:[#allocation8 + $0x1b0] sm:$0xff]  ;;  %v2395_v4 = vld [vmem:[#allocation8 + $0x1c8] sm:$0xff] }
0x11f6   : > { %v5797_v20 = vpop.eup %5796  ;;  %v2118_v21 = vmul.f32 %v2110_v36, %v2054_v34  ;;  %v5271_v34 = vpack.c.bf16 %v2396_v30, %v2393_v29  ;;  %v2388_v36 = vld [vmem:[#allocation8 + $0x190] sm:$0xff]  ;;  %v2426_v29 = vld [vmem:[#allocation8 + $0x2c0] sm:$0xff] }
0x11f7   : > { %v5799_v43 = vpop.eup %5798  ;;  %v2114_v35 = vadd.f32 1.0, %v5797_v20  ;;  %v2120_v39 = vmul.f32 %v2112_v52, %v2056_v42  ;;  %v2399_v20 = vld [vmem:[#allocation8 + $0x1e8] sm:$0xff]  ;;  %v2394_v42 = vld [vmem:[#allocation8 + $0x1c0] sm:$0xff]  ;;  %v2397_v52 = vld [vmem:[#allocation8 + $0x1d8] sm:$0xff] }
0x11f8   : > { %v5801_v2 = vpop.eup %5800  ;;  %2257 = vmatprep.mubr.f32.mxu1 %v2118_v21  ;;  %v2116_v51 = vadd.f32 1.0, %v5799_v43  ;;  %v5273_v21 = vpack.c.bf16 %v2395_v4, %v2392_v8  ;;  %v5303_v6 = vpack.c.bf16 %v2397_v52, %v2394_v42  ;;  %v2418_v30 = vld [vmem:[#allocation8 + $0x280] sm:$0xff]  ;;  %v2429_v4 = vld [vmem:[#allocation8 + $0x2d8] sm:$0xff]  ;;  %v2427_v42 = vld [vmem:[#allocation8 + $0x2c8] sm:$0xff] }
0x11f9   : > { %v5803_v53 = vpop.eup %5802  ;;  %2258 = vmatmul.mubr.f32.vlgmr.msra.gmra.mrb[24].mxu1 %v2117_v45  ;;  %v2122_v54 = vmul.f32 %v2114_v35, %v2058_v46  ;;  %v2113_v56 = vadd.f32 1.0, %v5801_v2  ;;  %2332 = vmatprep.mubr.f32.mxu0 %v2120_v39  ;;  %v2398_v45 = vld [vmem:[#allocation8 + $0x1e0] sm:$0xff]  ;;  %v2401_v46 = vld [vmem:[#allocation8 + $0x1f8] sm:$0xff]  ;;  %v2428_v52 = vld [vmem:[#allocation8 + $0x2d0] sm:$0xff] }
0x11fa   : > { %v2124_v32 = vmul.f32 %v2116_v51, %v2060_v31  ;;  %v2115_v57 = vadd.f32 1.0, %v5803_v53  ;;  %2333 = vmatmul.mubr.f32.vlgmr.msra.gmra.mrb[10].mxu0 %v2119_v27  ;;  %5270 = vmatpush1.bf16.msra.mxu1 %v5269_v33  ;;  %v5277_v35 = vpack.c.bf16 %v2401_v46, %v2398_v45  ;;  %v5291_v33 = vpack.c.bf16 %v2426_v29, %v2423_v26  ;;  %v2430_v46 = vld [vmem:[#allocation8 + $0x2e0] sm:$0xff] }
0x11fb   : > { %2262 = vmatprep.mubr.f32.mxu1 %v2122_v54  ;;  %v2121_v28 = vmul.f32 %v2113_v56, %v2057_v55  ;;  %5272 = vmatprep.subr.bf16.mxu1 %v5271_v34  ;;  %v2405_v56 = vld [vmem:[#allocation8 + $0x218] sm:$0xff] }
0x11fc   : > { %2337 = vmatprep.mubr.f32.mxu0 %v2124_v32  ;;  %v2123_v3 = vmul.f32 %v2115_v57, %v2059_v1  ;;  %v2408_v32 = vld [vmem:[#allocation8 + $0x230] sm:$0xff]  ;;  %v2403_v1 = vld [vmem:[#allocation8 + $0x208] sm:$0xff]  ;;  %v2421_v34 = vld [vmem:[#allocation8 + $0x298] sm:$0xff] }
0x11fd   : > { %2263 = vmatmul.mubr.f32.gmra.mrb[26].mxu1 %v2121_v28  ;;  %v2400_v57 = vld [vmem:[#allocation8 + $0x1f0] sm:$0xff]  ;;  %v5279_v28 = vpack.c.bf16 %v2408_v32, %v2405_v56  ;;  %v5319_v8 = vpack.c.bf16 %v2421_v34, %v2418_v30 }
0x11fe   : > { %2516 = vmatprep.mubr.f32.mxu1 %v6155_v13  ;;  %2338 = vmatmul.mubr.f32.gmra.mrb[12].mxu0 %v2123_v3  ;;  %v2404_v3 = vld [vmem:[#allocation8 + $0x210] sm:$0xff] }
0x11ff   : > { %5274 = vmatpush1.bf16.msra.mxu1 %v5273_v21 }
0x12cc   : > { %v4496_v44 = vpop.f32.mrb[24].mxu1 }
0x12cd   : > { %v4497_v59 = vpop.f32.mrb[25].mxu1  ;;  %v4534_v60 = vpop.f32.mrb[10].mxu0 }
0x12ce   : > { %v4498_v37 = vadd.f32 %v4497_v59, %v4496_v44  ;;  %v4535_v61 = vpop.f32.mrb[11].mxu0  ;;  %v2407_v44 = vld [vmem:[#allocation8 + $0x228] sm:$0xff] }
0x12cf   : > { %v4536_v63 = vadd.f32 %v4535_v61, %v4534_v60  ;;  %v5281_v59 = vpack.c.bf16 %v2407_v44, %v2404_v3  ;;  %v2411_v60 = vld [vmem:[#allocation8 + $0x248] sm:$0xff]  ;;  %v2406_v61 = vld [vmem:[#allocation8 + $0x220] sm:$0xff] }
0x12d0   : > { %v2260_v62 = vadd.f32 %v4498_v37, %v4336_v58  ;;  %v4499_v7 = vpop.f32.mrb[26].mxu1  ;;  %v2414_v37 = vld [vmem:[#allocation8 + $0x260] sm:$0xff] }
0x12d1   : > { %v4500_v9 = vpop.f32.mrb[27].mxu1  ;;  %v4537_v11 = vpop.f32.mrb[12].mxu0 }
0x12d2   : > { %v2335_v10 = vadd.f32 %v4536_v63, %v2260_v62  ;;  %v4501_v12 = vadd.f32 %v4500_v9, %v4499_v7  ;;  %v4538_v41 = vpop.f32.mrb[13].mxu0  ;;  %v5283_v62 = vpack.c.bf16 %v2414_v37, %v2411_v60  ;;  %v2409_v63 = vld [vmem:[#allocation8 + $0x238] sm:$0xff]  ;;  %v2410_v7 = vld [vmem:[#allocation8 + $0x240] sm:$0xff] }
0x12d3   : > { %v4539_v15 = vadd.f32 %v4538_v41, %v4537_v11  ;;  %v2413_v9 = vld [vmem:[#allocation8 + $0x258] sm:$0xff]  ;;  %v2420_v41 = vld [vmem:[#allocation8 + $0x290] sm:$0xff] }
0x12d4   : > { %v2265_v14 = vadd.f32 %v4501_v12, %v4336_v58  ;;  %v6723_v16 = vadd.f32 %v2335_v10, %v6659_v5  ;;  %v2391_v5 = vld [vmem:[#allocation8 + $0x1a8] sm:$0xff]  ;;  %v5307_v58 = vpack.c.bf16 %v2403_v1, %v2400_v57  ;;  %v5311_v10 = vpack.c.bf16 %v2409_v63, %v2406_v61  ;;  %v2417_v12 = vld [vmem:[#allocation8 + $0x278] sm:$0xff]  ;;  %v4337_v57 = vld [vmem:[#allocation7 + $0xb] ss:$0 sm:$0xff] }
0x12d5   : > { %v5299_v19 = vpack.c.bf16 %v2391_v5, %v2388_v36  ;;  %v5285_v11 = vpack.c.bf16 %v2413_v9, %v2410_v7  ;;  %v2422_v36 = vld [vmem:[#allocation8 + $0x2a0] sm:$0xff]  ;;  %v2425_v5 = vld [vmem:[#allocation8 + $0x2b8] sm:$0xff]  ;;  %v4338_v1 = vld [vmem:[#allocation7 + $0xc] ss:$0 sm:$0xff] }
0x12d6   : > { %v2340_v17 = vadd.f32 %v4539_v15, %v2265_v14  ;;  %2351 = vadd.xlane.f32.xlu1 %v6723_v16  ;;  %v2412_v14 = vld [vmem:[#allocation8 + $0x250] sm:$0xff]  ;;  %v5287_v15 = vpack.c.bf16 %v2420_v41, %v2417_v12  ;;  %v4339_v61 = vld [vmem:[%s6980_s4 + $0x3] sm:$0x7] }
0x12d7   : > { %5300 = vmatprep.subr.bf16.mxu0 %v5299_v19  ;;  %v2444_v9 = vrot.slane %v4339_v61, %v6537_v50 }
0x12d8   : > { %v6727_v40 = vadd.f32 %v2340_v17, %v6656_v24  ;;  %v2402_v24 = vld [vmem:[#allocation8 + $0x200] sm:$0xff]  ;;  %5302 = vmatpush3.bf16.msra.mxu0 %v5299_v19  ;;  %v2415_v17 = vld [vmem:[#allocation8 + $0x268] sm:$0xff]  ;;  %v5293_v19 = vpack.c.bf16 %v2425_v5, %v2422_v36 }
0x12d9   : > { %v5275_v43 = vpack.c.bf16 %v2402_v24, %v2399_v20  ;;  %5304 = vmatprep.subr.bf16.mxu0 %v5303_v6  ;;  %v5315_v23 = vpack.c.bf16 %v2415_v17, %v2412_v14  ;;  %v2432_v20 = vld [vmem:[#allocation8 + $0x2f0] sm:$0xff] }
0x12da   : > { %2353 = vadd.xlane.f32.xlu0 %v6727_v40  ;;  %v2424_v24 = vld [vmem:[#allocation8 + $0x2b0] sm:$0xff]  ;;  %v5295_v21 = vpack.c.bf16 %v2432_v20, %v2429_v4 }
0x12db   : > { %5276 = vmatprep.subr.bf16.mxu1 %v5275_v43  ;;  %v2431_v43 = vld [vmem:[#allocation8 + $0x2e8] sm:$0xff] }
0x12dc   : > { %5306 = vmatpush3.bf16.msra.mxu0 %v5303_v6  ;;  %5278 = vmatpush1.bf16.msra.mxu1 %v5277_v35  ;;  %v5323_v6 = vpack.c.bf16 %v2427_v42, %v2424_v24  ;;  %v5297_v45 = vpack.c.bf16 %v2431_v43, %v2428_v52  ;;  %v2433_v35 = vld [vmem:[#allocation8 + $0x2f8] sm:$0xff] }
0x12dd   : > { %5280 = vmatprep.subr.bf16.mxu1 %v5279_v28  ;;  %5308 = vmatprep.subr.bf16.mxu0 %v5307_v58 }
0x12e0   : > { %5282 = vmatpush1.bf16.msra.mxu1 %v5281_v59  ;;  %5310 = vmatpush3.bf16.msra.mxu0 %v5307_v58 }
0x12e1   : > { %5284 = vmatprep.subr.bf16.mxu1 %v5283_v62  ;;  %5312 = vmatprep.subr.bf16.mxu0 %v5311_v10 }
0x12e4   : > { %5286 = vmatpush1.bf16.msra.mxu1 %v5285_v11  ;;  %5314 = vmatpush3.bf16.msra.mxu0 %v5311_v10 }
0x12e5   : > { %5288 = vmatprep.subr.bf16.mxu1 %v5287_v15  ;;  %5316 = vmatprep.subr.bf16.mxu0 %v5315_v23 }
0x12e8   : > { %5290 = vmatpush1.bf16.msra.mxu1 %v5289_v25  ;;  %5318 = vmatpush3.bf16.msra.mxu0 %v5315_v23 }
0x12e9   : > { %5292 = vmatprep.subr.bf16.mxu1 %v5291_v33  ;;  %5320 = vmatprep.subr.bf16.mxu0 %v5319_v8 }
0x12ec   : > { %5294 = vmatpush1.bf16.msra.mxu1 %v5293_v19  ;;  %5322 = vmatpush3.bf16.msra.mxu0 %v5319_v8 }
0x12ed   : > { %5296 = vmatprep.subr.bf16.mxu1 %v5295_v21  ;;  %5324 = vmatprep.subr.bf16.mxu0 %v5323_v6 }
0x12f0   : > { %5298 = vmatpush1.bf16.msra.mxu1 %v5297_v45  ;;  %5326 = vmatpush3.bf16.msra.mxu0 %v5323_v6 }
0x1363   : > { %v2352_v2 = vpop.xlane.xlu1 %2351 }
0x1364   : > { %v2355_v39 = vmul.f32 0.0078125, %v2352_v2  ;;  %v5327_v2 = vpack.c.bf16 %v2433_v35, %v2430_v46 }
0x1366   : > { %v6731_v31 = vsub.f32 %v6723_v16, %v2355_v39  ;;  %5328 = vmatprep.subr.bf16.mxu0 %v5327_v2 }
0x1367   : > { %v2354_v51 = vpop.xlane.xlu0 %2353  ;;  %5330 = vmatpush3.bf16.msra.mxu0 %v5327_v2 }
0x1368   : > { %v2356_v53 = vmul.f32 0.0078125, %v2354_v51  ;;  %v2359_v27 = vmul.f32 %v6731_v31, %v6731_v31 }
0x136a   : > { %v6736_v54 = vsub.f32 %v6727_v40, %v2356_v53  ;;  %2361 = vadd.xlane.f32.xlu1 %v2359_v27 }
0x136c   : > { %v2360_v55 = vmul.f32 %v6736_v54, %v6736_v54 }
0x136e   : > { %2363 = vadd.xlane.f32.xlu0 %v2360_v55 }
0x13f7   : > { %v2362_v39 = vpop.xlane.xlu1 %2361 }
0x13f8   : > { %v2365_v51 = vmul.f32 0.0078125, %v2362_v39 }
0x13fa   : > { %v2367_v53 = vadd.f32 1e-05, %v2365_v51 }
0x13fb   : > { %v2364_v27 = vpop.xlane.xlu0 %2363 }
0x13fc   : > { %5804 = vrsqrt.f32 %v2367_v53  ;;  %v2366_v55 = vmul.f32 0.0078125, %v2364_v27 }
0x13fe   : > { %v2368_v56 = vadd.f32 1e-05, %v2366_v55 }
0x1400   : > { %5806 = vrsqrt.f32 %v2368_v56 }
0x1406   : > { %v5805_v32 = vpop.eup %5804 }
0x1407   : > { %v2371_v28 = vmul.f32 %v5805_v32, %v6731_v31  ;;  %v2440_v31 = vrot.slane %v4339_v61, %v6527_v48 }
0x1409   : > { %v2377_v3 = vmul.f32 %v4337_v57, %v2371_v28 }
0x140a   : > { %v5807_v44 = vpop.eup %5806 }
0x140b   : > { %v2383_v58 = vadd.f32 %v4338_v1, %v2377_v3  ;;  %v2372_v59 = vmul.f32 %v5807_v44, %v6736_v54  ;;  %v2448_v54 = vrot.slane %v4339_v61, %v6534_v49 }
0x140d   : > { %2517 = vmatmul.mubr.f32.vlgmr.msra.gmra.mrb[28].mxu1 %v2383_v58  ;;  %4877 = vmatprep.mubr.f32.mxu0 %v2383_v58  ;;  %v2378_v60 = vmul.f32 %v4337_v57, %v2372_v59 }
0x140e   : > { %2522 = vmatprep.mubr.f32.mxu1 %v6155_v13 }
0x140f   : > { %v2384_v37 = vadd.f32 %v4338_v1, %v2378_v60 }
0x1411   : > { %2523 = vmatmul.mubr.f32.gmra.mrb[30].mxu1 %v2384_v37  ;;  %4878 = vmatmul.mubr.f32.vlgmr.msra.gmra.mrb[14].mxu0 %v2384_v37 }
0x14e0   : > { %v2518_v62 = vpop.f32.mrb[28].mxu1 }
0x14e1   : > { %v6747_v63 = vadd.f32 %v2518_v62, %v2440_v31  ;;  %v2520_v7 = vpop.f32.mrb[29].mxu1 }
0x14e2   : > { %v2521_v15 = vadd.f32 %v2520_v7, %v2444_v9 }
0x14e3   : > { %4884 = vmatprep.mubr.msk.f32.mxu1 %vm848_vm0, %v6747_v63 }
0x14e4   : > { %v2524_v10 = vpop.f32.mrb[30].mxu1  ;;  %v4879_v11 = vpop.f32.mrb[14].mxu0 }
0x14e5   : > { %v2601_v12 = vadd.f32 %v4879_v11, %v2448_v54  ;;  %v2526_v41 = vpop.f32.mrb[31].mxu1  ;;  %v2595_v14 = vpop.f32.mrb[15].mxu0  ;;  %v6761_v29 = vadd.f32 %v2524_v10, %v2440_v31 }
0x14e6   : > { %v2527_v17 = vadd.f32 %v2526_v41, %v2444_v9  ;;  %v2596_v18 = vadd.f32 %v2595_v14, %v2448_v54 }
0x14e8   : > { %v5331_v22 = vpack.c.bf16 %v2527_v17, %v2521_v15  ;;  %v5337_v23 = vpack.c.bf16 %v2601_v12, %v2596_v18  ;;  %v6753_v25 = vpack.i.bf16 %v2527_v17, %v2521_v15  ;;  %v6755_v26 = vpack.i.bf16 %v2601_v12, %v2596_v18 }
0x14ea   : > { %5333 = vmatprep.subr.msk.bf16.mxu1 %vm6547_vm1, %v5331_v22 }
0x14eb   : > { %5336 = vmatpush3.bf16.xpose.msk.msra.mxu1 %vm6547_vm1, %v5331_v22 }
0x14ec   : > { %5338 = vmatprep.subr.bf16.mxu1 %v5337_v23 }
0x14f2   : > { %4885 = vmatmul.mubr.msk.f32.vlgmr.msra.gmra.mrb[32].mxu1 %vm848_vm0, %v6761_v29 }
0x14f3   : > { %5340 = vmatpush3.bf16.msra.mxu1 %v5337_v23 }
0x15c5   : > { %v4886_v30 = vpop.f32.mrb[32].mxu1 }
0x15c6   : > { %v2692_v33 = vmul.f32 0.17677669, %v4886_v30  ;;  %v2682_v34 = vpop.f32.mrb[33].mxu1 }
0x15c7   : > { %v2691_v36 = vmul.f32 0.17677669, %v2682_v34 }
0x15c8   : > { %v2696_v5 = vsel %vm938_vm2, %v2692_v33, -inf }
0x15c9   : > { %2697 = vmax.xlane.f32.xlu0 %v2696_v5  ;;  %v2693_v8 = vsel %vm938_vm2, %v2691_v36, -inf }
0x15ca   : > { %2694 = vmax.xlane.f32.xlu1 %v2693_v8 }
0x15db   : > { %5696 = vrot.lane.b32.xlu1 %v6753_v25, %s6156_s18 }
0x1656   : > { %v2698_v19 = vpop.xlane.xlu0 %2697 }
0x1657   : > { %v2700_v4 = vsub.f32 %v2692_v33, %v2698_v19  ;;  %v2695_v20 = vpop.xlane.xlu1 %2694 }
0x1658   : > { %v2699_v24 = vsub.f32 %v2691_v36, %v2695_v20 }
0x1659   : > { %v2703_v21 = vmul.f32 1.442695, %v2700_v4 }
0x165a   : > { %v2701_v42 = vmul.f32 1.442695, %v2699_v24 }
0x165b   : > { %5808 = vpow2.f32 %v2703_v21  ;;  %v5697_v52 = vpop.permute.xlu1 %5696 }
0x165c   : > { %5810 = vpow2.f32 %v2701_v42  ;;  %v5699_v43 = vunpack.i.h.bf16 %v5697_v52  ;;  %v5698_v6 = vunpack.i.l.bf16 %v5697_v52 }
0x165e   : > { %v5341_v45 = vpack.c.bf16 %v5699_v43, %v5698_v6 }
0x1660   : > { %5343 = vmatprep.subr.msk.bf16.mxu1 %vm6547_vm1, %v5341_v45 }
0x1665   : > { %v5809_v46 = vpop.eup %5808 }
0x1666   : > { %v5811_v35 = vpop.eup %5810  ;;  %v2708_v2 = vsel %vm938_vm2, %v5809_v46, 0.0 }
0x1667   : > { %2709 = vadd.xlane.f32.xlu0 %v2708_v2  ;;  %v2705_v39 = vsel %vm938_vm2, %v5811_v35, 0.0 }
0x1668   : > { %2706 = vadd.xlane.f32.xlu1 %v2705_v39 }
0x1679   : > { %2798 = vrot.lane.b32.xlu1 %v6761_v29, %s6156_s18 }
0x167d   : > { %2796 = vrot.lane.b32.xlu0 %v6747_v63, %s6156_s18 }
0x16f4   : > { %v2710_v51 = vpop.xlane.xlu0 %2709 }
0x16f5   : > { %5812 = vrcp.f32 %v2710_v51  ;;  %v2707_v53 = vpop.xlane.xlu1 %2706 }
0x16f6   : > { %5814 = vrcp.f32 %v2707_v53 }
0x16f8   : > { %v2797_v57 = vpop.permute.xlu0 %2796 }
0x16f9   : > { %v2799_v28 = vpop.permute.xlu1 %2798 }
0x16ff   : > { %v5813_v27 = vpop.eup %5812 }
0x1700   : > { %v5815_v55 = vpop.eup %5814  ;;  %v2714_v32 = vmul.f32 %v5813_v27, %v5809_v46 }
0x1701   : > { %v2713_v56 = vmul.f32 %v5815_v55, %v5811_v35 }
0x1703   : > { %4891 = vmatprep.mubr.msk.f32.mxu1 %vm938_vm2, %v2713_v56 }
0x1704   : > { %4892 = vmatmul.mubr.msk.f32.vlgmr.msra.gmra.mrb[34].mxu1 %vm938_vm2, %v2714_v32 }
0x1705   : > { %5346 = vmatpush3.bf16.xpose.msk.msra.mxu1 %vm6547_vm1, %v5341_v45  ;;  %4898 = vmatprep.mubr.msk.f32.mxu1 %vm848_vm0, %v2797_v57 }
0x170c   : > { %4899 = vmatmul.mubr.msk.f32.vlgmr.msra.gmra.mrb[36].mxu1 %vm848_vm0, %v2799_v28 }
0x17d7   : > { %v6783_v1 = vpop.f32.mrb[34].mxu1 }
0x17d8   : > { %v6785_v3 = vpop.f32.mrb[35].mxu1 }
0x17df   : > { %v4900_v44 = vpop.f32.mrb[36].mxu1 }
0x17e0   : > { %v2888_v58 = vmul.f32 0.17677669, %v4900_v44  ;;  %v2878_v59 = vpop.f32.mrb[37].mxu1 }
0x17e1   : > { %v2887_v60 = vmul.f32 0.17677669, %v2878_v59 }
0x17e2   : > { %v2892_v37 = vsel %vm938_vm2, %v2888_v58, -inf }
0x17e3   : > { %2893 = vmax.xlane.f32.xlu0 %v2892_v37  ;;  %v2889_v61 = vsel %vm938_vm2, %v2887_v60, -inf }
0x17e4   : > { %2890 = vmax.xlane.f32.xlu1 %v2889_v61 }
0x1870   : > { %v2894_v31 = vpop.xlane.xlu0 %2893 }
0x1871   : > { %v2896_v62 = vsub.f32 %v2888_v58, %v2894_v31  ;;  %v2891_v7 = vpop.xlane.xlu1 %2890 }
0x1872   : > { %v2895_v54 = vsub.f32 %v2887_v60, %v2891_v7 }
0x1873   : > { %v2899_v9 = vmul.f32 1.442695, %v2896_v62 }
0x1874   : > { %v2897_v10 = vmul.f32 1.442695, %v2895_v54 }
0x1875   : > { %5816 = vpow2.f32 %v2899_v9 }
0x1876   : > { %5818 = vpow2.f32 %v2897_v10 }
0x187f   : > { %v5817_v11 = vpop.eup %5816 }
0x1880   : > { %v5819_v12 = vpop.eup %5818  ;;  %v2904_v41 = vsel %vm938_vm2, %v5817_v11, 0.0 }
0x1881   : > { %2905 = vadd.xlane.f32.xlu1 %v2904_v41  ;;  %v2901_v14 = vsel %vm938_vm2, %v5819_v12, 0.0 }
0x1882   : > { %2902 = vadd.xlane.f32.xlu0 %v2901_v14 }
0x1892   : > { %5706 = vrot.lane.b32.xlu1 %v6753_v25, %s6157_s1 }
0x1896   : > { %3000 = vrot.lane.b32.xlu1 %v6747_v63, %s6157_s1 }
0x1898   : > { %5701 = vrot.lane.b32.xlu0 %v6755_v26, %s6156_s18 }
0x189a   : > { %3002 = vrot.lane.b32.xlu1 %v6761_v29, %s6157_s1 }
0x190e   : > { %v2906_v15 = vpop.xlane.xlu1 %2905 }
0x190f   : > { %5820 = vrcp.f32 %v2906_v15  ;;  %v2903_v17 = vpop.xlane.xlu0 %2902 }
0x1910   : > { %5822 = vrcp.f32 %v2903_v17 }
0x1912   : > { %v5707_v18 = vpop.permute.xlu1 %5706 }
0x1913   : > { %v5702_v22 = vpop.permute.xlu0 %5701  ;;  %v5709_v23 = vunpack.i.h.bf16 %v5707_v18  ;;  %v5708_v30 = vunpack.i.l.bf16 %v5707_v18 }
0x1914   : > { %v5704_v33 = vunpack.i.h.bf16 %v5702_v22  ;;  %v5703_v34 = vunpack.i.l.bf16 %v5702_v22 }
0x1915   : > { %v5351_v5 = vpack.c.bf16 %v5709_v23, %v5708_v30 }
0x1916   : > { %v5347_v36 = vpack.c.bf16 %v5704_v33, %v5703_v34  ;;  %v3001_v24 = vpop.permute.xlu1 %3000 }
0x1918   : > { %5348 = vmatprep.subr.bf16.mxu1 %v5347_v36 }
0x1919   : > { %v5821_v8 = vpop.eup %5820  ;;  %5350 = vmatpush3.bf16.msra.mxu1 %v5347_v36 }
0x191a   : > { %v5823_v19 = vpop.eup %5822  ;;  %5353 = vmatprep.subr.msk.bf16.mxu1 %vm6547_vm1, %v5351_v5  ;;  %v2910_v20 = vmul.f32 %v5821_v8, %v5817_v11  ;;  %v3003_v21 = vpop.permute.xlu1 %3002 }
0x191b   : > { %v2909_v4 = vmul.f32 %v5823_v19, %v5819_v12 }
0x191d   : > { %4905 = vmatprep.mubr.msk.f32.mxu1 %vm938_vm2, %v2909_v4 }
0x191e   : > { %4906 = vmatmul.mubr.msk.f32.vlgmr.msra.gmra.mrb[38].mxu1 %vm938_vm2, %v2910_v20 }
0x191f   : > { %4912 = vmatprep.mubr.msk.f32.mxu1 %vm848_vm0, %v3001_v24 }
0x1922   : > { %5356 = vmatpush3.bf16.xpose.msk.msra.mxu1 %vm6547_vm1, %v5351_v5 }
0x1929   : > { %4913 = vmatmul.mubr.msk.f32.vlgmr.msra.gmra.mrb[40].mxu1 %vm848_vm0, %v3003_v21 }
0x19f1   : > { %v6807_v42 = vpop.f32.mrb[38].mxu1 }
0x19f2   : > { %v6809_v52 = vpop.f32.mrb[39].mxu1 }
0x19f3   : > { %v5725_v43 = vpack.i.bf16 %v6807_v42, %v6809_v52 }
0x19fc   : > { %v4914_v6 = vpop.f32.mrb[40].mxu1 }
0x19fd   : > { %v3092_v45 = vmul.f32 0.17677669, %v4914_v6  ;;  %v3082_v46 = vpop.f32.mrb[41].mxu1 }
0x19fe   : > { %v3091_v35 = vmul.f32 0.17677669, %v3082_v46 }
0x19ff   : > { %v3096_v2 = vsel %vm938_vm2, %v3092_v45, -inf }
0x1a00   : > { %3097 = vmax.xlane.f32.xlu1 %v3096_v2  ;;  %v3093_v39 = vsel %vm938_vm2, %v3091_v35, -inf }
0x1a01   : > { %3094 = vmax.xlane.f32.xlu0 %v3093_v39 }
0x1a11   : > { %5716 = vrot.lane.b32.xlu1 %v6753_v25, %s6158_s13 }
0x1a15   : > { %3202 = vrot.lane.b32.xlu1 %v6747_v63, %s6158_s13 }
0x1a19   : > { %3204 = vrot.lane.b32.xlu1 %v6761_v29, %s6158_s13 }
0x1a8d   : > { %v3098_v51 = vpop.xlane.xlu1 %3097 }
0x1a8e   : > { %v3100_v53 = vsub.f32 %v3092_v45, %v3098_v51  ;;  %v3095_v27 = vpop.xlane.xlu0 %3094 }
0x1a8f   : > { %v3099_v55 = vsub.f32 %v3091_v35, %v3095_v27  ;;  %v3436_v27 = vld [vmem:[#allocation10 + $0x88] sm:$0xff] }
0x1a90   : > { %v3103_v56 = vmul.f32 1.442695, %v3100_v53 }
0x1a91   : > { %v3101_v32 = vmul.f32 1.442695, %v3099_v55  ;;  %v5717_v58 = vpop.permute.xlu1 %5716  ;;  %v3437_v55 = vld [vmem:[#allocation10 + $0x90] sm:$0xff] }
0x1a92   : > { %5824 = vpow2.f32 %v3103_v56  ;;  %v5719_v60 = vunpack.i.h.bf16 %v5717_v58  ;;  %v5718_v37 = vunpack.i.l.bf16 %v5717_v58 }
0x1a93   : > { %5826 = vpow2.f32 %v3101_v32  ;;  %v3438_v32 = vld [vmem:[#allocation10 + $0x98] sm:$0xff] }
0x1a94   : > { %v5361_v7 = vpack.c.bf16 %v5719_v60, %v5718_v37  ;;  %v3444_v60 = vld [vmem:[#allocation10 + $0xc8] sm:$0xff] }
0x1a95   : > { %v3203_v12 = vpop.permute.xlu1 %3202 }
0x1a99   : > { %v3205_v41 = vpop.permute.xlu1 %3204 }
0x1a9c   : > { %v5825_v57 = vpop.eup %5824 }
0x1a9d   : > { %v3108_v28 = vsel %vm938_vm2, %v5825_v57, 0.0  ;;  %v5827_v44 = vpop.eup %5826 }
0x1a9e   : > { %3109 = vadd.xlane.f32.xlu0 %v3108_v28  ;;  %v3105_v25 = vsel %vm938_vm2, %v5827_v44, 0.0  ;;  %v3439_v28 = vld [vmem:[#allocation10 + $0xa0] sm:$0xff] }
0x1aa2   : > { %3106 = vadd.xlane.f32.xlu0 %v3105_v25 }
0x1ab8   : > { %5711 = vrot.lane.b32.xlu0 %v6755_v26, %s6157_s1 }
0x1b2b   : > { %v3110_v63 = vpop.xlane.xlu0 %3109 }
0x1b2c   : > { %5828 = vrcp.f32 %v3110_v63  ;;  %v3441_v63 = vld [vmem:[#allocation10 + $0xb0] sm:$0xff] }
0x1b2f   : > { %v3107_v29 = vpop.xlane.xlu0 %3106 }
0x1b30   : > { %5830 = vrcp.f32 %v3107_v29  ;;  %v3442_v29 = vld [vmem:[#allocation10 + $0xb8] sm:$0xff] }
0x1b31   : > { %v5383_v58 = vpack.c.bf16 %v3442_v29, %v3441_v63  ;;  %v3575_v63 = vld [vmem:[#allocation11 + $0x240] sm:$0xff] }
0x1b32   : > { %v3579_v29 = vld [vmem:[#allocation11 + $0x260] sm:$0xff] }
0x1b33   : > { %v5712_v59 = vpop.permute.xlu0 %5711 }
0x1b34   : > { %v5714_v61 = vunpack.i.h.bf16 %v5712_v59  ;;  %v5713_v31 = vunpack.i.l.bf16 %v5712_v59  ;;  %v3443_v59 = vld [vmem:[#allocation10 + $0xc0] sm:$0xff] }
0x1b35   : > { %v5387_v37 = vpack.c.bf16 %v3444_v60, %v3443_v59  ;;  %v5409_v59 = vpack.c.bf16 %v3579_v29, %v3575_v63  ;;  %v3581_v60 = vld [vmem:[#allocation11 + $0x270] sm:$0xff]  ;;  %v3607_v63 = vld [vmem:[#allocation11 + $0x340] sm:$0xff] }
0x1b36   : > { %v5357_v62 = vpack.c.bf16 %v5714_v61, %v5713_v31  ;;  %v5829_v54 = vpop.eup %5828  ;;  %v3445_v61 = vld [vmem:[#allocation10 + $0xd0] sm:$0xff]  ;;  %v3446_v31 = vld [vmem:[#allocation10 + $0xd8] sm:$0xff]  ;;  %v3611_v29 = vld [vmem:[#allocation11 + $0x360] sm:$0xff] }
0x1b37   : > { %v3114_v11 = vmul.f32 %v5829_v54, %v5825_v57  ;;  %v5375_v57 = vpack.c.bf16 %v3438_v32, %v3437_v55  ;;  %v3448_v54 = vld [vmem:[#allocation10 + $0xe8] sm:$0xff]  ;;  %v3569_v55 = vld [vmem:[#allocation11 + $0x210] sm:$0xff] }
0x1b38   : > { %5358 = vmatprep.subr.bf16.mxu1 %v5357_v62 }
0x1b39   : > { %5360 = vmatpush3.bf16.msra.mxu1 %v5357_v62  ;;  %v5391_v62 = vpack.c.bf16 %v3446_v31, %v3445_v61  ;;  %v3588_v61 = vld [vmem:[#allocation11 + $0x2a8] sm:$0xff] }
0x1b3a   : > { %v5831_v9 = vpop.eup %5830  ;;  %5363 = vmatprep.subr.msk.bf16.mxu1 %vm6547_vm1, %v5361_v7 }
0x1b3b   : > { %v3113_v10 = vmul.f32 %v5831_v9, %v5827_v44  ;;  %v3440_v44 = vld [vmem:[#allocation10 + $0xa8] sm:$0xff] }
0x1b3c   : > { %v5379_v25 = vpack.c.bf16 %v3440_v44, %v3439_v28  ;;  %v3582_v28 = vld [vmem:[#allocation11 + $0x278] sm:$0xff] }
0x1b3d   : > { %4919 = vmatprep.mubr.msk.f32.mxu1 %vm938_vm2, %v3113_v10  ;;  %v3449_v10 = vld [vmem:[#allocation10 + $0xf0] sm:$0xff] }
0x1b3e   : > { %4920 = vmatmul.mubr.msk.f32.vlgmr.msra.gmra.mrb[42].mxu1 %vm938_vm2, %v3114_v11  ;;  %v3450_v11 = vld [vmem:[#allocation10 + $0xf8] sm:$0xff] }
0x1b3f   : > { %4926 = vmatprep.mubr.msk.f32.mxu1 %vm848_vm0, %v3203_v12  ;;  %v5399_v12 = vpack.c.bf16 %v3450_v11, %v3449_v10  ;;  %v3587_v11 = vld [vmem:[#allocation11 + $0x2a0] sm:$0xff] }
0x1b42   : > { %5366 = vmatpush3.bf16.xpose.msk.msra.mxu1 %vm6547_vm1, %v5361_v7  ;;  %v3447_v7 = vld [vmem:[#allocation10 + $0xe0] sm:$0xff] }
0x1b43   : > { %v5395_v9 = vpack.c.bf16 %v3448_v54, %v3447_v7  ;;  %v3586_v7 = vld [vmem:[#allocation11 + $0x298] sm:$0xff] }
0x1b44   : > { %v3590_v54 = vld [vmem:[#allocation11 + $0x2b8] sm:$0xff] }
0x1b45   : > { %v5443_v10 = vpack.c.bf16 %v3590_v54, %v3586_v7  ;;  %v3618_v7 = vld [vmem:[#allocation11 + $0x398] sm:$0xff] }
0x1b46   : > { %v3622_v54 = vld [vmem:[#allocation11 + $0x3b8] sm:$0xff] }
0x1b49   : > { %4927 = vmatmul.mubr.msk.f32.vlgmr.msra.gmra.mrb[44].mxu1 %vm848_vm0, %v3205_v41 }
0x1c11   : > { %v4921_v14 = vpop.f32.mrb[42].mxu1 }
0x1c12   : > { %v3193_v15 = vpop.f32.mrb[43].mxu1 }
0x1c13   : > { %v5730_v17 = vpack.i.bf16 %v4921_v14, %v3193_v15 }
0x1c1c   : > { %v4928_v18 = vpop.f32.mrb[44].mxu1 }
0x1c1d   : > { %v3294_v22 = vmul.f32 0.17677669, %v4928_v18  ;;  %v3284_v23 = vpop.f32.mrb[45].mxu1 }
0x1c1e   : > { %v3293_v30 = vmul.f32 0.17677669, %v3284_v23 }
0x1c1f   : > { %v3298_v33 = vsel %vm938_vm2, %v3294_v22, -inf }
0x1c20   : > { %3299 = vmax.xlane.f32.xlu1 %v3298_v33  ;;  %v3295_v34 = vsel %vm938_vm2, %v3293_v30, -inf }
0x1c21   : > { %3296 = vmax.xlane.f32.xlu0 %v3295_v34 }
0x1c31   : > { %5726 = vrot.lane.b32.xlu1 %v5725_v43, %s6158_s13 }
0x1c35   : > { %5731 = vrot.lane.b32.xlu1 %v5730_v17, %s6157_s1  ;;  %s7019_s1 = sld [smem:[#allocation22_spill]] }
0x1cad   : > { %v3300_v0 = vpop.xlane.xlu1 %3299 }
0x1cae   : > { %v3302_v36 = vsub.f32 %v3294_v22, %v3300_v0  ;;  %v3297_v5 = vpop.xlane.xlu0 %3296 }
0x1caf   : > { %v3301_v8 = vsub.f32 %v3293_v30, %v3297_v5 }
0x1cb0   : > { %v3305_v19 = vmul.f32 1.442695, %v3302_v36 }
0x1cb1   : > { %v3303_v4 = vmul.f32 1.442695, %v3301_v8  ;;  %v5727_v17 = vpop.permute.xlu1 %5726 }
0x1cb2   : > { %5832 = vpow2.f32 %v3305_v19  ;;  %v5729_v22 = vunpack.i.h.bf16 %v5727_v17  ;;  %v5728_v23 = vunpack.i.l.bf16 %v5727_v17 }
0x1cb3   : > { %5834 = vpow2.f32 %v3303_v4 }
0x1cb4   : > { %v3429_v0 = vsel %vm848_vm0, %v6783_v1, %v5729_v22  ;;  %v3428_v8 = vsel %vm848_vm0, %v6785_v3, %v5728_v23 }
0x1cb5   : > { %v5732_v18 = vpop.permute.xlu1 %5731 }
0x1cb6   : > { %v5734_v30 = vunpack.i.h.bf16 %v5732_v18  ;;  %v5733_v33 = vunpack.i.l.bf16 %v5732_v18 }
0x1cb8   : > { %v3430_v19 = vsel %vm1676_vm3, %v3428_v8, %v5733_v33  ;;  %v3431_v4 = vsel %vm1676_vm3, %v3429_v0, %v5734_v30  ;;  %v3594_v8 = vld [vmem:[#allocation11 + $0x2d8] sm:$0xff] }
0x1cbc   : > { %v5833_v20 = vpop.eup %5832 }
0x1cbd   : > { %v3310_v24 = vsel %vm938_vm2, %v5833_v20, 0.0  ;;  %v5835_v21 = vpop.eup %5834 }
0x1cbe   : > { %3311 = vadd.xlane.f32.xlu0 %v3310_v24  ;;  %v3307_v6 = vsel %vm938_vm2, %v5835_v21, 0.0 }
0x1cc2   : > { %3308 = vadd.xlane.f32.xlu0 %v3307_v6 }
0x1cd8   : > { %5721 = vrot.lane.b32.xlu0 %v6755_v26, %s6158_s13  ;;  %v3435_v26 = vld [vmem:[#allocation10 + $0x80] sm:$0xff]  ;;  %s6930_s13 = scalar_lea.hbm %s7019_s1, %s4377_s14 }
0x1cd9   : > { %v5371_v56 = vpack.c.bf16 %v3436_v27, %v3435_v26 }
0x1cdb   : > { %5372 = vmatprep.subr.bf16.mxu0 %v5371_v56 }
0x1cdc   : > { %5374 = vmatpush3.bf16.msra.mxu0 %v5371_v56  ;;  %v3573_v56 = vld [vmem:[#allocation11 + $0x230] sm:$0xff] }
0x1cdd   : > { %5376 = vmatprep.subr.bf16.mxu0 %v5375_v57  ;;  %v5437_v32 = vpack.c.bf16 %v3573_v56, %v3569_v55  ;;  %v3601_v55 = vld [vmem:[#allocation11 + $0x310] sm:$0xff] }
0x1cde   : > { %v3605_v56 = vld [vmem:[#allocation11 + $0x330] sm:$0xff] }
0x1ce0   : > { %5378 = vmatpush3.bf16.msra.mxu0 %v5375_v57  ;;  %v3578_v57 = vld [vmem:[#allocation11 + $0x258] sm:$0xff] }
0x1ce1   : > { %5380 = vmatprep.subr.bf16.mxu0 %v5379_v25 }
0x1ce4   : > { %5382 = vmatpush3.bf16.msra.mxu0 %v5379_v25  ;;  %v5439_v25 = vpack.c.bf16 %v3582_v28, %v3578_v57  ;;  %v3610_v57 = vld [vmem:[#allocation11 + $0x358] sm:$0xff] }
0x1ce5   : > { %5384 = vmatprep.subr.bf16.mxu0 %v5383_v58  ;;  %v3614_v28 = vld [vmem:[#allocation11 + $0x378] sm:$0xff] }
0x1ce8   : > { %5386 = vmatpush3.bf16.msra.mxu0 %v5383_v58  ;;  %v3577_v58 = vld [vmem:[#allocation11 + $0x250] sm:$0xff] }
0x1ce9   : > { %5388 = vmatprep.subr.bf16.mxu0 %v5387_v37  ;;  %v5441_v31 = vpack.c.bf16 %v3581_v60, %v3577_v58  ;;  %v3609_v58 = vld [vmem:[#allocation11 + $0x350] sm:$0xff] }
0x1cea   : > { %v3613_v60 = vld [vmem:[#allocation11 + $0x370] sm:$0xff] }
0x1cec   : > { %5390 = vmatpush3.bf16.msra.mxu0 %v5387_v37  ;;  %v3584_v37 = vld [vmem:[#allocation11 + $0x288] sm:$0xff] }
0x1ced   : > { %5392 = vmatprep.subr.bf16.mxu0 %v5391_v62 }
0x1cf0   : > { %5394 = vmatpush3.bf16.msra.mxu0 %v5391_v62  ;;  %v5411_v62 = vpack.c.bf16 %v3588_v61, %v3584_v37  ;;  %v3616_v37 = vld [vmem:[#allocation11 + $0x388] sm:$0xff] }
0x1cf1   : > { %5396 = vmatprep.subr.bf16.mxu0 %v5395_v9  ;;  %v3620_v61 = vld [vmem:[#allocation11 + $0x3a8] sm:$0xff] }
0x1cf4   : > { %5398 = vmatpush3.bf16.msra.mxu0 %v5395_v9  ;;  %v3583_v9 = vld [vmem:[#allocation11 + $0x280] sm:$0xff] }
0x1cf5   : > { %5400 = vmatprep.subr.bf16.mxu0 %v5399_v12 }
0x1cf8   : > { %5402 = vmatpush3.bf16.msra.mxu0 %v5399_v12  ;;  %v3585_v12 = vld [vmem:[#allocation11 + $0x290] sm:$0xff] }
0x1d4b   : > { %v3312_v42 = vpop.xlane.xlu0 %3311 }
0x1d4c   : > { %5836 = vrcp.f32 %v3312_v42 }
0x1d4f   : > { %v3309_v52 = vpop.xlane.xlu0 %3308 }
0x1d50   : > { %5838 = vrcp.f32 %v3309_v52 }
0x1d53   : > { %v5722_v43 = vpop.permute.xlu0 %5721 }
0x1d54   : > { %v5724_v45 = vunpack.i.h.bf16 %v5722_v43  ;;  %v5723_v46 = vunpack.i.l.bf16 %v5722_v43 }
0x1d56   : > { %v5367_v35 = vpack.c.bf16 %v5724_v45, %v5723_v46  ;;  %v5837_v2 = vpop.eup %5836  ;;  %v3568_v45 = vld [vmem:[#allocation11 + $0x208] sm:$0xff] }
0x1d57   : > { %v3316_v53 = vmul.f32 %v5837_v2, %v5833_v20  ;;  %v3572_v46 = vld [vmem:[#allocation11 + $0x228] sm:$0xff] }
0x1d58   : > { %5368 = vmatprep.subr.bf16.mxu1 %v5367_v35  ;;  %v5403_v2 = vpack.c.bf16 %v3572_v46, %v3568_v45  ;;  %v3600_v45 = vld [vmem:[#allocation11 + $0x308] sm:$0xff] }
0x1d59   : > { %5370 = vmatpush3.bf16.msra.mxu1 %v5367_v35  ;;  %v3570_v35 = vld [vmem:[#allocation11 + $0x218] sm:$0xff]  ;;  %v3604_v46 = vld [vmem:[#allocation11 + $0x328] sm:$0xff] }
0x1d5a   : > { %v5839_v39 = vpop.eup %5838  ;;  %5404 = vmatprep.subr.bf16.mxu1 %v5403_v2  ;;  %v5419_v2 = vpack.c.bf16 %v3604_v46, %v3600_v45 }
0x1d5b   : > { %v3315_v51 = vmul.f32 %v5839_v39, %v5835_v21  ;;  %v4364_v21 = vld [vmem:[#allocation7 + $0xd] ss:$0 sm:$0xff]  ;;  %v3574_v39 = vld [vmem:[#allocation11 + $0x238] sm:$0xff] }
0x1d5c   : > { %v5435_v26 = vpack.c.bf16 %v3574_v39, %v3570_v35  ;;  %v3602_v35 = vld [vmem:[#allocation11 + $0x318] sm:$0xff] }
0x1d5d   : > { %4933 = vmatprep.mubr.msk.f32.mxu1 %vm938_vm2, %v3315_v51  ;;  %v3567_v51 = vld [vmem:[#allocation11 + $0x200] sm:$0xff]  ;;  %v3606_v39 = vld [vmem:[#allocation11 + $0x338] sm:$0xff] }
0x1d5e   : > { %4934 = vmatmul.mubr.msk.f32.vlgmr.msra.gmra.mrb[46].mxu1 %vm938_vm2, %v3316_v53  ;;  %v3571_v53 = vld [vmem:[#allocation11 + $0x220] sm:$0xff]  ;;  %5436 = vmatprep.subr.bf16.mxu0 %v5435_v26  ;;  %v5451_v26 = vpack.c.bf16 %v3606_v39, %v3602_v35 }
0x1d5f   : > { %3718 = vmatprep.mubr.f32.mxu1 %v6155_v13  ;;  %v5405_v27 = vpack.c.bf16 %v3571_v53, %v3567_v51  ;;  %v3599_v51 = vld [vmem:[#allocation11 + $0x300] sm:$0xff] }
0x1d60   : > { %v3603_v53 = vld [vmem:[#allocation11 + $0x320] sm:$0xff] }
0x1d61   : > { %5406 = vmatpush1.bf16.msra.mxu1 %v5405_v27  ;;  %v5421_v27 = vpack.c.bf16 %v3603_v53, %v3599_v51 }
0x1e31   : > { %v4935_v41 = vpop.f32.mrb[46].mxu1 }
0x1e32   : > { %v3395_v14 = vpop.f32.mrb[47].mxu1 }
0x1e33   : > { %v5735_v15 = vpack.i.bf16 %v4935_v41, %v3395_v14  ;;  %v3589_v41 = vld [vmem:[#allocation11 + $0x2b0] sm:$0xff]  ;;  %v5413_v14 = vpack.c.bf16 %v3587_v11, %v3583_v9  ;;  %v3615_v9 = vld [vmem:[#allocation11 + $0x380] sm:$0xff] }
0x1e34   : > { %v3619_v11 = vld [vmem:[#allocation11 + $0x3a0] sm:$0xff] }
0x1e35   : > { %5736 = vrot.lane.b32.xlu1 %v5735_v15, %s6156_s18  ;;  %v5445_v15 = vpack.c.bf16 %v3589_v41, %v3585_v12  ;;  %v3617_v12 = vld [vmem:[#allocation11 + $0x390] sm:$0xff] }
0x1e36   : > { %v3621_v41 = vld [vmem:[#allocation11 + $0x3b0] sm:$0xff] }
0x1ea7   : > { %v5737_v34 = vpop.permute.xlu1 %5736 }
0x1ea8   : > { %v5739_v36 = vunpack.i.h.bf16 %v5737_v34  ;;  %v5738_v5 = vunpack.i.l.bf16 %v5737_v34 }
0x1eaa   : > { %v3432_v20 = vsel %vm1679_vm4, %v3430_v19, %v5738_v5  ;;  %v3433_v24 = vsel %vm1679_vm4, %v3431_v4, %v5739_v36  ;;  %v3592_v36 = vld [vmem:[#allocation11 + $0x2c8] sm:$0xff]  ;;  %v3598_v4 = vld [vmem:[#allocation11 + $0x2f8] sm:$0xff] }
0x1eab   : > { %4968 = vmatprep.mubr.f32.mxu0 %v3432_v20  ;;  %v3596_v5 = vld [vmem:[#allocation11 + $0x2e8] sm:$0xff]  ;;  %v3591_v20 = vld [vmem:[#allocation11 + $0x2c0] sm:$0xff] }
0x1eac   : > { %4969 = vmatmul.mubr.f32.vlgmr.msra.gmra.mrb[16].mxu0 %v3433_v24  ;;  %v5415_v19 = vpack.c.bf16 %v3596_v5, %v3592_v36  ;;  %v3595_v24 = vld [vmem:[#allocation11 + $0x2e0] sm:$0xff] }
0x1ead   : > { %3795 = vmatprep.mubr.f32.mxu0 %v6155_v13  ;;  %5438 = vmatpush1.bf16.msra.mxu0 %v5437_v32  ;;  %v5453_v32 = vpack.c.bf16 %v3605_v56, %v3601_v55  ;;  %v3627_v36 = vld [vmem:[#allocation11 + $0x3e0] sm:$0xff] }
0x1eae   : > { %5440 = vmatprep.subr.bf16.mxu0 %v5439_v25  ;;  %v5455_v25 = vpack.c.bf16 %v3614_v28, %v3610_v57  ;;  %v3881_v56 = vld [vmem:[#allocation13 + $0x200] sm:$0xff] }
0x1eb1   : > { %5442 = vmatpush1.bf16.msra.mxu0 %v5441_v31  ;;  %v5457_v31 = vpack.c.bf16 %v3613_v60, %v3609_v58  ;;  %v3900_v60 = vld [vmem:[#allocation13 + $0x298] sm:$0xff] }
0x1eb2   : > { %5444 = vmatprep.subr.bf16.mxu0 %v5443_v10  ;;  %v5459_v10 = vpack.c.bf16 %v3622_v54, %v3618_v7 }
0x1eb5   : > { %5446 = vmatpush1.bf16.msra.mxu0 %v5445_v15  ;;  %v3624_v15 = vld [vmem:[#allocation11 + $0x3c8] sm:$0xff] }
0x1f7f   : > { %v4970_v6 = vpop.f32.mrb[16].mxu0 }
0x1f80   : > { %v3527_v1 = vadd.f32 %v4970_v6, %v4364_v21  ;;  %v3521_v42 = vpop.f32.mrb[17].mxu0  ;;  %v5417_v6 = vpack.c.bf16 %v3595_v24, %v3591_v20  ;;  %v3897_v24 = vld [vmem:[#allocation13 + $0x280] sm:$0xff] }
0x1f81   : > { %v3522_v52 = vadd.f32 %v4364_v21, %v3521_v42  ;;  %v5447_v21 = vpack.c.bf16 %v3598_v4, %v3594_v8  ;;  %v3597_v42 = vld [vmem:[#allocation11 + $0x2f0] sm:$0xff] }
0x1f82   : > { %v6858_v43 = vadd.f32 %v3527_v1, %v6727_v40  ;;  %v3576_v40 = vld [vmem:[#allocation11 + $0x248] sm:$0xff]  ;;  %v3593_v1 = vld [vmem:[#allocation11 + $0x2d0] sm:$0xff] }
0x1f83   : > { %v6861_v3 = vadd.f32 %v3522_v52, %v6723_v16  ;;  %v3580_v16 = vld [vmem:[#allocation11 + $0x268] sm:$0xff]  ;;  %v5449_v52 = vpack.c.bf16 %v3597_v42, %v3593_v1  ;;  %5448 = vmatprep.subr.bf16.mxu0 %v5447_v21  ;;  %v3625_v8 = vld [vmem:[#allocation11 + $0x3d0] sm:$0xff] }
0x1f84   : > { %3534 = vadd.xlane.f32.xlu1 %v6858_v43  ;;  %v5407_v44 = vpack.c.bf16 %v3580_v16, %v3576_v40  ;;  %v3608_v40 = vld [vmem:[#allocation11 + $0x348] sm:$0xff] }
0x1f85   : > { %3532 = vadd.xlane.f32.xlu0 %v6861_v3  ;;  %5450 = vmatpush1.bf16.msra.mxu0 %v5449_v52  ;;  %v3612_v16 = vld [vmem:[#allocation11 + $0x368] sm:$0xff] }
0x1f86   : > { %5408 = vmatprep.subr.bf16.mxu1 %v5407_v44  ;;  %5452 = vmatprep.subr.bf16.mxu0 %v5451_v26  ;;  %v5423_v44 = vpack.c.bf16 %v3612_v16, %v3608_v40  ;;  %v3898_v21 = vld [vmem:[#allocation13 + $0x288] sm:$0xff]  ;;  %v4365_v26 = vld [vmem:[#allocation7 + $0xe] ss:$0 sm:$0xff] }
0x1f87   : > { %5410 = vmatpush1.bf16.msra.mxu1 %v5409_v59  ;;  %v5425_v59 = vpack.c.bf16 %v3611_v29, %v3607_v63  ;;  %v5467_v1 = vpack.c.bf16 %v3898_v21, %v3897_v24  ;;  %v3930_v42 = vld [vmem:[#allocation13 + $0x388] sm:$0xff]  ;;  %v3887_v24 = vld [vmem:[#allocation13 + $0x230] sm:$0xff]  ;;  %v3888_v21 = vld [vmem:[#allocation13 + $0x238] sm:$0xff] }
0x1f88   : > { %5412 = vmatprep.subr.bf16.mxu1 %v5411_v62  ;;  %v5427_v62 = vpack.c.bf16 %v3620_v61, %v3616_v37  ;;  %v3882_v40 = vld [vmem:[#allocation13 + $0x208] sm:$0xff]  ;;  %v3931_v37 = vld [vmem:[#allocation13 + $0x390] sm:$0xff] }
0x1f89   : > { %5454 = vmatpush1.bf16.msra.mxu0 %v5453_v32  ;;  %v3913_v32 = vld [vmem:[#allocation13 + $0x300] sm:$0xff]  ;;  %v3914_v16 = vld [vmem:[#allocation13 + $0x308] sm:$0xff]  ;;  %v5469_v63 = vpack.c.bf16 %v3882_v40, %v3881_v56 }
0x1f8a   : > { %5456 = vmatprep.subr.bf16.mxu0 %v5455_v25  ;;  %v5501_v29 = vpack.c.bf16 %v3914_v16, %v3913_v32  ;;  %v3922_v40 = vld [vmem:[#allocation13 + $0x348] sm:$0xff]  ;;  %v3907_v32 = vld [vmem:[#allocation13 + $0x2d0] sm:$0xff]  ;;  %v3908_v16 = vld [vmem:[#allocation13 + $0x2d8] sm:$0xff] }
0x1f8b   : > { %5414 = vmatpush1.bf16.msra.mxu1 %v5413_v14  ;;  %v5429_v14 = vpack.c.bf16 %v3619_v11, %v3615_v9  ;;  %v3915_v9 = vld [vmem:[#allocation13 + $0x310] sm:$0xff] }
0x1f8c   : > { %5416 = vmatprep.subr.bf16.mxu1 %v5415_v19  ;;  %v3629_v19 = vld [vmem:[#allocation11 + $0x3f0] sm:$0xff] }
0x1f8d   : > { %5458 = vmatpush1.bf16.msra.mxu0 %v5457_v31  ;;  %v5465_v20 = vpack.c.bf16 %v3629_v19, %v3625_v8  ;;  %v3932_v31 = vld [vmem:[#allocation13 + $0x398] sm:$0xff]  ;;  %v3935_v19 = vld [vmem:[#allocation13 + $0x3b0] sm:$0xff] }
0x1f8e   : > { %5460 = vmatprep.subr.bf16.mxu0 %v5459_v10  ;;  %v5503_v7 = vpack.c.bf16 %v3932_v31, %v3931_v37  ;;  %v3916_v10 = vld [vmem:[#allocation13 + $0x318] sm:$0xff]  ;;  %v3909_v37 = vld [vmem:[#allocation13 + $0x2e0] sm:$0xff] }
0x1f8f   : > { %5418 = vmatpush1.bf16.msra.mxu1 %v5417_v6  ;;  %v3929_v6 = vld [vmem:[#allocation13 + $0x380] sm:$0xff]  ;;  %v5505_v11 = vpack.c.bf16 %v3916_v10, %v3915_v9  ;;  %v3904_v8 = vld [vmem:[#allocation13 + $0x2b8] sm:$0xff]  ;;  %v3894_v9 = vld [vmem:[#allocation13 + $0x268] sm:$0xff] }
0x1f90   : > { %5420 = vmatprep.subr.bf16.mxu1 %v5419_v2  ;;  %v5499_v52 = vpack.c.bf16 %v3930_v42, %v3929_v6  ;;  %v3919_v42 = vld [vmem:[#allocation13 + $0x330] sm:$0xff]  ;;  %v3941_v31 = vld [vmem:[#allocation13 + $0x3e0] sm:$0xff] }
0x1f93   : > { %5422 = vmatpush1.bf16.msra.mxu1 %v5421_v27  ;;  %v4366_v27 = vld [vmem:[#allocation7 + $0xf] ss:$0 sm:$0xff] }
0x1f94   : > { %5424 = vmatprep.subr.bf16.mxu1 %v5423_v44 }
0x1f97   : > { %5426 = vmatpush1.bf16.msra.mxu1 %v5425_v59 }
0x1f98   : > { %5428 = vmatprep.subr.bf16.mxu1 %v5427_v62  ;;  %v3884_v62 = vld [vmem:[#allocation13 + $0x218] sm:$0xff] }
0x1f9b   : > { %5430 = vmatpush1.bf16.msra.mxu1 %v5429_v14 }
0x2011   : > { %v3535_v17 = vpop.xlane.xlu1 %3534 }
0x2012   : > { %v3533_v18 = vpop.xlane.xlu0 %3532  ;;  %v3537_v22 = vmul.f32 0.0078125, %v3535_v17  ;;  %v3628_v17 = vld [vmem:[#allocation11 + $0x3e8] sm:$0xff] }
0x2013   : > { %v3536_v23 = vmul.f32 0.0078125, %v3533_v18  ;;  %v3626_v18 = vld [vmem:[#allocation11 + $0x3d8] sm:$0xff] }
0x2014   : > { %v6869_v33 = vsub.f32 %v6858_v43, %v3537_v22  ;;  %v5461_v22 = vpack.c.bf16 %v3621_v41, %v3617_v12  ;;  %v3902_v12 = vld [vmem:[#allocation13 + $0x2a8] sm:$0xff]  ;;  %v3933_v41 = vld [vmem:[#allocation13 + $0x3a0] sm:$0xff] }
0x2015   : > { %v6866_v30 = vsub.f32 %v6861_v3, %v3536_v23  ;;  %v5431_v23 = vpack.c.bf16 %v3628_v17, %v3624_v15  ;;  %v3934_v15 = vld [vmem:[#allocation13 + $0x3a8] sm:$0xff]  ;;  %v3885_v17 = vld [vmem:[#allocation13 + $0x220] sm:$0xff] }
0x2016   : > { %v3541_v0 = vmul.f32 %v6869_v33, %v6869_v33  ;;  %5462 = vmatpush1.bf16.msra.mxu0 %v5461_v22  ;;  %v5507_v22 = vpack.c.bf16 %v3934_v15, %v3933_v41  ;;  %v3912_v41 = vld [vmem:[#allocation13 + $0x2f8] sm:$0xff] }
0x2017   : > { %v3540_v34 = vmul.f32 %v6866_v30, %v6866_v30  ;;  %5432 = vmatprep.subr.bf16.mxu1 %v5431_v23  ;;  %v3944_v15 = vld [vmem:[#allocation13 + $0x3f8] sm:$0xff] }
0x2019   : > { %3542 = vadd.xlane.f32.xlu0 %v3540_v34  ;;  %v3630_v34 = vld [vmem:[#allocation11 + $0x3f8] sm:$0xff] }
0x201a   : > { %v5463_v5 = vpack.c.bf16 %v3630_v34, %v3626_v18  ;;  %v3886_v18 = vld [vmem:[#allocation13 + $0x228] sm:$0xff]  ;;  %v3917_v34 = vld [vmem:[#allocation13 + $0x320] sm:$0xff] }
0x201b   : > { %v5477_v23 = vpack.c.bf16 %v3886_v18, %v3885_v17 }
0x201c   : > { %5464 = vmatprep.subr.bf16.mxu0 %v5463_v5  ;;  %v3903_v5 = vld [vmem:[#allocation13 + $0x2b0] sm:$0xff] }
0x201d   : > { %3544 = vadd.xlane.f32.xlu0 %v3541_v0  ;;  %v3623_v0 = vld [vmem:[#allocation11 + $0x3c0] sm:$0xff]  ;;  %5466 = vmatpush1.bf16.msra.mxu0 %v5465_v20  ;;  %v3936_v20 = vld [vmem:[#allocation13 + $0x3b8] sm:$0xff] }
0x201e   : > { %v5433_v4 = vpack.c.bf16 %v3627_v36, %v3623_v0  ;;  %5500 = vmatprep.subr.bf16.mxu0 %v5499_v52  ;;  %v3918_v0 = vld [vmem:[#allocation13 + $0x328] sm:$0xff]  ;;  %v5511_v6 = vpack.c.bf16 %v3936_v20, %v3935_v19  ;;  %v3920_v52 = vld [vmem:[#allocation13 + $0x338] sm:$0xff] }
0x201f   : > { %v5509_v36 = vpack.c.bf16 %v3918_v0, %v3917_v34  ;;  %v3896_v34 = vld [vmem:[#allocation13 + $0x278] sm:$0xff] }
0x2020   : > { %5434 = vmatpush1.bf16.msra.mxu1 %v5433_v4  ;;  %v5479_v4 = vpack.c.bf16 %v3904_v8, %v3903_v5  ;;  %v3928_v5 = vld [vmem:[#allocation13 + $0x378] sm:$0xff] }
0x2021   : > { %5468 = vmatprep.subr.bf16.mxu1 %v5467_v1  ;;  %v5481_v1 = vpack.c.bf16 %v3888_v21, %v3887_v24 }
0x20a6   : > { %v3543_v45 = vpop.xlane.xlu0 %3542 }
0x20a7   : > { %v3546_v46 = vmul.f32 0.0078125, %v3543_v45  ;;  %v3905_v45 = vld [vmem:[#allocation13 + $0x2c0] sm:$0xff] }
0x20a9   : > { %v3548_v35 = vadd.f32 1e-05, %v3546_v46  ;;  %v5513_v46 = vpack.c.bf16 %v3920_v52, %v3919_v42 }
0x20aa   : > { %v3545_v2 = vpop.xlane.xlu0 %3544 }
0x20ab   : > { %5840 = vrsqrt.f32 %v3548_v35  ;;  %v3547_v39 = vmul.f32 0.0078125, %v3545_v2  ;;  %v3906_v35 = vld [vmem:[#allocation13 + $0x2c8] sm:$0xff]  ;;  %v3937_v2 = vld [vmem:[#allocation13 + $0x3c0] sm:$0xff] }
0x20ad   : > { %v3549_v51 = vadd.f32 1e-05, %v3547_v39  ;;  %v3938_v39 = vld [vmem:[#allocation13 + $0x3c8] sm:$0xff] }
0x20af   : > { %5842 = vrsqrt.f32 %v3549_v51  ;;  %v5483_v51 = vpack.c.bf16 %v3906_v35, %v3905_v45 }
0x20b5   : > { %v5841_v53 = vpop.eup %5840 }
0x20b6   : > { %v3552_v55 = vmul.f32 %v5841_v53, %v6866_v30  ;;  %v3899_v30 = vld [vmem:[#allocation13 + $0x290] sm:$0xff]  ;;  %v5515_v53 = vpack.c.bf16 %v3938_v39, %v3937_v2 }
0x20b7   : > { %v5471_v61 = vpack.c.bf16 %v3900_v60, %v3899_v30  ;;  %v3924_v30 = vld [vmem:[#allocation13 + $0x358] sm:$0xff] }
0x20b8   : > { %v3558_v57 = vmul.f32 %v4365_v26, %v3552_v55  ;;  %v3921_v55 = vld [vmem:[#allocation13 + $0x340] sm:$0xff] }
0x20b9   : > { %v5843_v28 = vpop.eup %5842 }
0x20ba   : > { %v3564_v44 = vadd.f32 %v4366_v27, %v3558_v57  ;;  %v3553_v25 = vmul.f32 %v5843_v28, %v6869_v33  ;;  %v3883_v33 = vld [vmem:[#allocation13 + $0x210] sm:$0xff]  ;;  %v5517_v57 = vpack.c.bf16 %v3922_v40, %v3921_v55  ;;  %v5487_v28 = vpack.c.bf16 %v3908_v16, %v3907_v32 }
0x20bb   : > { %v5473_v54 = vpack.c.bf16 %v3884_v62, %v3883_v33 }
0x20bc   : > { %3719 = vmatmul.mubr.f32.vlgmr.msra.gmra.mrb[48].mxu1 %v3564_v44  ;;  %3796 = vmatmul.mubr.f32.vlgmr.msra.gmra.mrb[18].mxu0 %v3564_v44  ;;  %v3559_v58 = vmul.f32 %v4365_v26, %v3553_v25  ;;  %v3889_v26 = vld [vmem:[#allocation13 + $0x240] sm:$0xff]  ;;  %v3939_v44 = vld [vmem:[#allocation13 + $0x3d0] sm:$0xff]  ;;  %v3940_v25 = vld [vmem:[#allocation13 + $0x3d8] sm:$0xff] }
0x20bd   : > { %3724 = vmatprep.mubr.f32.mxu1 %v6155_v13  ;;  %3801 = vmatprep.mubr.f32.mxu0 %v6155_v13  ;;  %v3901_v13 = vld [vmem:[#allocation13 + $0x2a0] sm:$0xff] }
0x20be   : > { %v3565_v59 = vadd.f32 %v4366_v27, %v3559_v58  ;;  %5470 = vmatpush3.bf16.msra.mxu1 %v5469_v63  ;;  %5502 = vmatpush3.bf16.msra.mxu0 %v5501_v29  ;;  %v5475_v14 = vpack.c.bf16 %v3902_v12, %v3901_v13  ;;  %v3890_v27 = vld [vmem:[#allocation13 + $0x248] sm:$0xff]  ;;  %v3891_v63 = vld [vmem:[#allocation13 + $0x250] sm:$0xff]  ;;  %v5519_v29 = vpack.c.bf16 %v3940_v25, %v3939_v44  ;;  %v3892_v58 = vld [vmem:[#allocation13 + $0x258] sm:$0xff] }
0x20bf   : > { %5472 = vmatprep.subr.bf16.mxu1 %v5471_v61  ;;  %5504 = vmatprep.subr.bf16.mxu0 %v5503_v7  ;;  %v5485_v56 = vpack.c.bf16 %v3890_v27, %v3889_v26  ;;  %v5489_v60 = vpack.c.bf16 %v3892_v58, %v3891_v63  ;;  %v3910_v61 = vld [vmem:[#allocation13 + $0x2e8] sm:$0xff]  ;;  %v3911_v12 = vld [vmem:[#allocation13 + $0x2f0] sm:$0xff] }
0x20c0   : > { %3725 = vmatmul.mubr.f32.gmra.mrb[50].mxu1 %v3565_v59  ;;  %3802 = vmatmul.mubr.f32.gmra.mrb[20].mxu0 %v3565_v59  ;;  %v3923_v59 = vld [vmem:[#allocation13 + $0x350] sm:$0xff]  ;;  %v5491_v62 = vpack.c.bf16 %v3910_v61, %v3909_v37  ;;  %v3942_v7 = vld [vmem:[#allocation13 + $0x3e8] sm:$0xff] }
0x20c1   : > { %v5521_v33 = vpack.c.bf16 %v3924_v30, %v3923_v59  ;;  %v5523_v10 = vpack.c.bf16 %v3942_v7, %v3941_v31  ;;  %v3926_v13 = vld [vmem:[#allocation13 + $0x368] sm:$0xff] }
0x20c2   : > { %5474 = vmatpush3.bf16.msra.mxu1 %v5473_v54  ;;  %5506 = vmatpush3.bf16.msra.mxu0 %v5505_v11  ;;  %v3893_v54 = vld [vmem:[#allocation13 + $0x260] sm:$0xff] }
0x20c3   : > { %5476 = vmatprep.subr.bf16.mxu1 %v5475_v14  ;;  %5508 = vmatprep.subr.bf16.mxu0 %v5507_v22  ;;  %v3925_v11 = vld [vmem:[#allocation13 + $0x360] sm:$0xff]  ;;  %v3943_v14 = vld [vmem:[#allocation13 + $0x3f0] sm:$0xff]  ;;  %v5493_v17 = vpack.c.bf16 %v3894_v9, %v3893_v54  ;;  %v5495_v22 = vpack.c.bf16 %v3912_v41, %v3911_v12 }
0x20c4   : > { %v5525_v18 = vpack.c.bf16 %v3926_v13, %v3925_v11  ;;  %v5527_v0 = vpack.c.bf16 %v3944_v15, %v3943_v14 }
0x20c6   : > { %5478 = vmatpush3.bf16.msra.mxu1 %v5477_v23  ;;  %5510 = vmatpush3.bf16.msra.mxu0 %v5509_v36  ;;  %v3895_v23 = vld [vmem:[#allocation13 + $0x270] sm:$0xff] }
0x20c7   : > { %5480 = vmatprep.subr.bf16.mxu1 %v5479_v4  ;;  %5512 = vmatprep.subr.bf16.mxu0 %v5511_v6  ;;  %v3927_v36 = vld [vmem:[#allocation13 + $0x370] sm:$0xff]  ;;  %v5497_v8 = vpack.c.bf16 %v3896_v34, %v3895_v23  ;;  %v4367_v4 = vld [vmem:[%s6983_s7 + $0x4] sm:$0xf] }
0x20c8   : > { %v5529_v19 = vpack.c.bf16 %v3928_v5, %v3927_v36  ;;  %v3637_v20 = vrot.slane %v4367_v4, %v6527_v48  ;;  %v3645_v24 = vrot.slane %v4367_v4, %v6534_v49  ;;  %v3641_v21 = vrot.slane %v4367_v4, %v6537_v50 }
0x20c9   : > { %v3649_v6 = vrot.slane %v4367_v4, %v1893_v38 }
0x20ca   : > { %5482 = vmatpush3.bf16.msra.mxu1 %v5481_v1  ;;  %5514 = vmatpush3.bf16.msra.mxu0 %v5513_v46 }
0x20cb   : > { %5484 = vmatprep.subr.bf16.mxu1 %v5483_v51  ;;  %5516 = vmatprep.subr.bf16.mxu0 %v5515_v53 }
0x20ce   : > { %5486 = vmatpush3.bf16.msra.mxu1 %v5485_v56  ;;  %5518 = vmatpush3.bf16.msra.mxu0 %v5517_v57 }
0x20cf   : > { %5488 = vmatprep.subr.bf16.mxu1 %v5487_v28  ;;  %5520 = vmatprep.subr.bf16.mxu0 %v5519_v29 }
0x20d2   : > { %5490 = vmatpush3.bf16.msra.mxu1 %v5489_v60  ;;  %5522 = vmatpush3.bf16.msra.mxu0 %v5521_v33 }
0x20d3   : > { %5492 = vmatprep.subr.bf16.mxu1 %v5491_v62  ;;  %5524 = vmatprep.subr.bf16.mxu0 %v5523_v10 }
0x20d6   : > { %5494 = vmatpush3.bf16.msra.mxu1 %v5493_v17  ;;  %5526 = vmatpush3.bf16.msra.mxu0 %v5525_v18 }
0x20d7   : > { %5496 = vmatprep.subr.bf16.mxu1 %v5495_v22  ;;  %5528 = vmatprep.subr.bf16.mxu0 %v5527_v0 }
0x20da   : > { %5498 = vmatpush3.bf16.msra.mxu1 %v5497_v8  ;;  %5530 = vmatpush3.bf16.msra.mxu0 %v5529_v19 }
0x218f   : > { %v3720_v1 = vpop.f32.mrb[48].mxu1  ;;  %v3797_v42 = vpop.f32.mrb[18].mxu0 }
0x2190   : > { %v6887_v52 = vadd.f32 %v3720_v1, %v3637_v20  ;;  %v6889_v45 = vadd.f32 %v3797_v42, %v3645_v24  ;;  %v3722_v46 = vpop.f32.mrb[49].mxu1  ;;  %v3799_v35 = vpop.f32.mrb[19].mxu0 }
0x2191   : > { %v3723_v2 = vadd.f32 %v3722_v46, %v3641_v21  ;;  %v6891_v39 = vadd.f32 %v3799_v35, %v3649_v6 }
0x2192   : > { %v3816_v48 = vmul.f32 0.044715, %v6887_v52  ;;  %v3818_v49 = vmul.f32 0.044715, %v6889_v45  ;;  %v3808_v42 = vmul.f32 0.5, %v6887_v52 }
0x2193   : > { %v3817_v51 = vmul.f32 0.044715, %v3723_v2  ;;  %v3819_v50 = vmul.f32 0.044715, %v6891_v39  ;;  %v3726_v47 = vpop.f32.mrb[50].mxu1  ;;  %v3803_v38 = vpop.f32.mrb[20].mxu0 }
0x2194   : > { %v3824_v53 = vmul.f32 %v3816_v48, %v6887_v52  ;;  %v3826_v26 = vmul.f32 %v3818_v49, %v6889_v45  ;;  %v6898_v27 = vadd.f32 %v3726_v47, %v3637_v20  ;;  %v6900_v55 = vadd.f32 %v3803_v38, %v3645_v24  ;;  %v3728_v56 = vpop.f32.mrb[51].mxu1  ;;  %v3805_v40 = vpop.f32.mrb[21].mxu0 }
0x2195   : > { %v3825_v32 = vmul.f32 %v3817_v51, %v3723_v2  ;;  %v3827_v16 = vmul.f32 %v3819_v50, %v6891_v39  ;;  %v3729_v57 = vadd.f32 %v3728_v56, %v3641_v21  ;;  %v3806_v28 = vadd.f32 %v3805_v40, %v3649_v6 }
0x2196   : > { %v3832_v44 = vmul.f32 %v3824_v53, %v6887_v52  ;;  %v3834_v25 = vmul.f32 %v3826_v26, %v6889_v45  ;;  %v3820_v63 = vmul.f32 0.044715, %v6898_v27  ;;  %v3822_v29 = vmul.f32 0.044715, %v6900_v55 }
0x2197   : > { %v3821_v58 = vmul.f32 0.044715, %v3729_v57  ;;  %v3823_v59 = vmul.f32 0.044715, %v3806_v28  ;;  %v3833_v30 = vmul.f32 %v3825_v32, %v3723_v2  ;;  %v3835_v10 = vmul.f32 %v3827_v16, %v6891_v39 }
0x2198   : > { %v3840_v60 = vadd.f32 %v3832_v44, %v6887_v52  ;;  %v3842_v37 = vadd.f32 %v3834_v25, %v6889_v45  ;;  %v3828_v61 = vmul.f32 %v3820_v63, %v6898_v27  ;;  %v3830_v9 = vmul.f32 %v3822_v29, %v6900_v55 }
0x2199   : > { %v3829_v31 = vmul.f32 %v3821_v58, %v3729_v57  ;;  %v3831_v33 = vmul.f32 %v3823_v59, %v3806_v28  ;;  %v3841_v62 = vadd.f32 %v3833_v30, %v3723_v2  ;;  %v3843_v41 = vadd.f32 %v3835_v10, %v6891_v39  ;;  %v4368_v59 = vld [vmem:[#allocation7 + $0x10] ss:$0 sm:$0xff] }
0x219a   : > { %v3848_v7 = vmul.f32 0.7978846, %v3840_v60  ;;  %v3850_v54 = vmul.f32 0.7978846, %v3842_v37  ;;  %v3836_v14 = vmul.f32 %v3828_v61, %v6898_v27  ;;  %v3838_v23 = vmul.f32 %v3830_v9, %v6900_v55 }
0x219b   : > { %v3849_v11 = vmul.f32 0.7978846, %v3841_v62  ;;  %v3837_v13 = vmul.f32 %v3829_v31, %v3729_v57  ;;  %v3839_v12 = vmul.f32 %v3831_v33, %v3806_v28  ;;  %v3851_v18 = vmul.f32 0.7978846, %v3843_v41 }
0x219c   : > { %5844 = vtanh.f32 %v3848_v7  ;;  %v3844_v22 = vadd.f32 %v3836_v14, %v6898_v27  ;;  %v3846_v5 = vadd.f32 %v3838_v23, %v6900_v55  ;;  %v3809_v21 = vmul.f32 0.5, %v3723_v2 }
0x219d   : > { %5846 = vtanh.f32 %v3850_v54  ;;  %v3845_v15 = vadd.f32 %v3837_v13, %v3729_v57  ;;  %v3847_v17 = vadd.f32 %v3839_v12, %v3806_v28  ;;  %v3811_v49 = vmul.f32 0.5, %v6891_v39 }
0x219e   : > { %5848 = vtanh.f32 %v3849_v11  ;;  %v3852_v36 = vmul.f32 0.7978846, %v3844_v22  ;;  %v3854_v8 = vmul.f32 0.7978846, %v3846_v5  ;;  %v3810_v47 = vmul.f32 0.5, %v6889_v45 }
0x219f   : > { %v3853_v34 = vmul.f32 0.7978846, %v3845_v15  ;;  %v3855_v0 = vmul.f32 0.7978846, %v3847_v17  ;;  %5850 = vtanh.f32 %v3851_v18  ;;  %v3813_v53 = vmul.f32 0.5, %v3729_v57 }
0x21a0   : > { %v3815_v2 = vmul.f32 0.5, %v3806_v28  ;;  %v3812_v25 = vmul.f32 0.5, %v6898_v27  ;;  %v3814_v57 = vmul.f32 0.5, %v6900_v55 }
0x21a1   : > { %5852 = vtanh.f32 %v3853_v34 }
0x21a2   : > { %5854 = vtanh.f32 %v3855_v0 }
0x21a3   : > { %5856 = vtanh.f32 %v3852_v36 }
0x21a4   : > { %5858 = vtanh.f32 %v3854_v8 }
0x21a6   : > { %v5845_v19 = vpop.eup %5844 }
0x21a7   : > { %v5847_v4 = vpop.eup %5846  ;;  %v3864_v24 = vadd.f32 1.0, %v5845_v19 }
0x21a8   : > { %v5849_v20 = vpop.eup %5848  ;;  %v3866_v46 = vadd.f32 1.0, %v5847_v4 }
0x21a9   : > { %v3865_v6 = vadd.f32 1.0, %v5849_v20  ;;  %v5851_v1 = vpop.eup %5850  ;;  %v3872_v38 = vmul.f32 %v3864_v24, %v3808_v42  ;;  %v4369_v20 = vld [vmem:[#allocation7 + $0x3] ss:$0 sm:$0xff] }
0x21aa   : > { %v3867_v51 = vadd.f32 1.0, %v5851_v1  ;;  %v3874_v52 = vmul.f32 %v3866_v46, %v3810_v47 }
0x21ab   : > { %v5853_v35 = vpop.eup %5852  ;;  %v3873_v48 = vmul.f32 %v3865_v6, %v3809_v21  ;;  %v4370_v21 = vld [vmem:[#allocation7 + $0x4] ss:$0 sm:$0xff] }
0x21ac   : > { %v5855_v50 = vpop.eup %5854  ;;  %v3869_v26 = vadd.f32 1.0, %v5853_v35  ;;  %v3875_v40 = vmul.f32 %v3867_v51, %v3811_v49 }
0x21ad   : > { %v5857_v56 = vpop.eup %5856  ;;  %4013 = vmatprep.mubr.f32.mxu1 %v3873_v48  ;;  %v3871_v32 = vadd.f32 1.0, %v5855_v50 }
0x21ae   : > { %v5859_v16 = vpop.eup %5858  ;;  %4014 = vmatmul.mubr.f32.vlgmr.msra.gmra.mrb[52].mxu1 %v3872_v38  ;;  %v3877_v44 = vmul.f32 %v3869_v26, %v3813_v53  ;;  %v3868_v63 = vadd.f32 1.0, %v5857_v56  ;;  %4088 = vmatprep.mubr.f32.mxu0 %v3875_v40 }
0x21af   : > { %v3879_v39 = vmul.f32 %v3871_v32, %v3815_v2  ;;  %v3870_v29 = vadd.f32 1.0, %v5859_v16  ;;  %4089 = vmatmul.mubr.f32.vlgmr.msra.gmra.mrb[22].mxu0 %v3874_v52 }
0x21b0   : > { %4018 = vmatprep.mubr.f32.mxu1 %v3877_v44  ;;  %v3876_v45 = vmul.f32 %v3868_v63, %v3812_v25 }
0x21b1   : > { %4093 = vmatprep.mubr.f32.mxu0 %v3879_v39  ;;  %v3878_v58 = vmul.f32 %v3870_v29, %v3814_v57 }
0x21b2   : > { %4019 = vmatmul.mubr.f32.gmra.mrb[54].mxu1 %v3876_v45 }
0x21b3   : > { %4094 = vmatmul.mubr.f32.gmra.mrb[24].mxu0 %v3878_v58 }
0x2281   : > { %v4640_v28 = vpop.f32.mrb[52].mxu1 }
0x2282   : > { %v4641_v30 = vpop.f32.mrb[53].mxu1  ;;  %v4678_v60 = vpop.f32.mrb[22].mxu0 }
0x2283   : > { %v4642_v37 = vadd.f32 %v4641_v30, %v4640_v28  ;;  %v4679_v61 = vpop.f32.mrb[23].mxu0 }
0x2284   : > { %v4680_v31 = vadd.f32 %v4679_v61, %v4678_v60 }
0x2285   : > { %v4016_v27 = vadd.f32 %v4642_v37, %v4368_v59  ;;  %v4643_v33 = vpop.f32.mrb[54].mxu1 }
0x2286   : > { %v4644_v62 = vpop.f32.mrb[55].mxu1  ;;  %v4681_v54 = vpop.f32.mrb[24].mxu0 }
0x2287   : > { %v4091_v7 = vadd.f32 %v4680_v31, %v4016_v27  ;;  %v4645_v9 = vadd.f32 %v4644_v62, %v4643_v33  ;;  %v4682_v10 = vpop.f32.mrb[25].mxu0 }
0x2288   : > { %v4683_v55 = vadd.f32 %v4682_v10, %v4681_v54 }
0x2289   : > { %v4021_v11 = vadd.f32 %v4645_v9, %v4368_v59  ;;  %v4099_v13 = vadd.f32 %v4091_v7, %v6861_v3 }
0x228b   : > { %v4096_v12 = vadd.f32 %v4683_v55, %v4021_v11  ;;  %4103 = vadd.xlane.f32.xlu0 %v4099_v13 }
0x228d   : > { %v4100_v41 = vadd.f32 %v4096_v12, %v6858_v43 }
0x228f   : > { %4105 = vadd.xlane.f32.xlu1 %v4100_v41 }
0x2318   : > { %v4104_v14 = vpop.xlane.xlu0 %4103 }
0x2319   : > { %v4107_v15 = vmul.f32 0.0078125, %v4104_v14 }
0x231b   : > { %v4109_v17 = vsub.f32 %v4099_v13, %v4107_v15 }
0x231c   : > { %v4106_v18 = vpop.xlane.xlu1 %4105 }
0x231d   : > { %v4108_v22 = vmul.f32 0.0078125, %v4106_v18  ;;  %v4111_v23 = vmul.f32 %v4109_v17, %v4109_v17 }
0x231f   : > { %v4110_v34 = vsub.f32 %v4100_v41, %v4108_v22  ;;  %4113 = vadd.xlane.f32.xlu0 %v4111_v23 }
0x2321   : > { %v4112_v0 = vmul.f32 %v4110_v34, %v4110_v34 }
0x2323   : > { %4115 = vadd.xlane.f32.xlu1 %v4112_v0 }
0x23ac   : > { %v4114_v36 = vpop.xlane.xlu0 %4113 }
0x23ad   : > { %v4117_v5 = vmul.f32 0.0078125, %v4114_v36 }
0x23af   : > { %v4119_v3 = vadd.f32 1e-05, %v4117_v5 }
0x23b0   : > { %v4116_v8 = vpop.xlane.xlu1 %4115 }
0x23b1   : > { %5860 = vrsqrt.f32 %v4119_v3  ;;  %v4118_v19 = vmul.f32 0.0078125, %v4116_v8 }
0x23b3   : > { %v4120_v43 = vadd.f32 1e-05, %v4118_v19 }
0x23b5   : > { %5862 = vrsqrt.f32 %v4120_v43 }
0x23bb   : > { %v5861_v4 = vpop.eup %5860 }
0x23bc   : > { %v4123_v24 = vmul.f32 %v5861_v4, %v4109_v17 }
0x23be   : > { %v4129_v6 = vmul.f32 %v4369_v20, %v4123_v24 }
0x23bf   : > { %v5863_v1 = vpop.eup %5862 }
0x23c0   : > { %v4135_v42 = vadd.f32 %v4370_v21, %v4129_v6  ;;  %v4124_v46 = vmul.f32 %v5863_v1, %v4110_v34 }
0x23c2   : > { %v4130_v35 = vmul.f32 %v4369_v20, %v4124_v46  ;;  %4137 = vst [vmem:[%s437_s25] sm:$0xff] %v4135_v42 }
0x23c4   : > { %v4136_v48 = vadd.f32 %v4370_v21, %v4130_v35 }
0x23c6   : > { %4138 = vst [vmem:[%s437_s25 + $0x8] sm:$0xff] %v4136_v48 }
0x23c7   : > { %6075 = shalt.err (!%p6072_p8)
}
0x23c8   : > { %s6076_s24 = scalar_lea.hbm %s6930_s13, 256  ;;  %s6080_s14 = scalar_lea.hbm %s7019_s1, 512 }
0x23c9   : > { %p6077_p7 = scmp.ne.s32.totalorder %s6930_s13, %s6076_s24  ;;  %p6081_p3 = scmp.lt.u32.totalorder %s6930_s13, %s7019_s1 }
0x23ca   : > { %p6082_p0 = scmp.lt.u32.totalorder %s6080_s14, %s6076_s24  ;;  %p6084_p6 = scmp.lt.u32.totalorder %s6076_s24, %s6930_s13 }
0x23cb   : > { %p6078_p9 = pnand %p6077_p7, %p7020_p5 }
0x23cc   : > { %p6083_p2 = por %p6082_p0, %p6081_p3 }
0x23cd   : > { %p6079_p4 = pneg %p6078_p9 }
0x23ce   : > { %p6085_p10 = por %p6084_p6, %p6083_p2 }
0x23d0   : > { %p6086_p1 = pnand %p6085_p10, %p6079_p4 }
0x23d2   : > { %6089 = shalt.err (!%p6086_p1)
}
0x23d3   : > { %s6160_s18 = smov 128   ;;  %s6161_s23 = smov 8  }
0x23d4   : > { %5557 = dma.vmem_to_hbm [thread:$0]  (%p7020_p5), %s6932_s16, 256, %s6930_s13, %s4140_s19, %s6160_s18, %s6160_s18, %s6161_s23  }
0x23d5 PF: > { %s4168_s15 = sand.u32 1, %s6128_s30   ;;  %p7021_p11 = scmp.ne.s32.totalorder %s7008_s9, 0 }
0x23d6   : > { %p7022_p12 = scmp.ge.s32.totalorder %s6140_s12, 2  ;;  %s4169_s3 = scalar_lea.sflag [#allocation4], %s4168_s15 }
0x23d8   : > { %p5583_p13 = pnand %p7022_p12, %p7021_p11 }
0x23da   : > { %6123 = dma.done.wait (!%p5583_p13), %s4169_s3, 256  }
0x23db   : > { %6125 = vsyncadd (!%p5583_p13), %s4169_s3, 4294967040  ;;  %p25_p8 = scmp.ge.s32.totalorder %s6396_s27, 4   ;;  %s7023_s30 = smov %s6132_s10 }
0x23dc   : > { %s7024_s10 = smov %s6136_s11  ;;  %s7025_s11 = smov %s6407_s21 }
0x23dd   : > { %s7026_s12 = smov %s6396_s27  ;;  %27 = sbr.rel (!%p25_p8) target bundleno = 12 (0xc), region = 131 }
0x23e4   :  { %4174 = vsyncpa [#allocation3], 1 }
0x23e5   :  { %4176 = vsyncpa [#allocation3 + $0x1], 1 }
0x23e6   :  { %4177 = vsyncpa [#allocation6], 1 }
0x23e7   :  { %4178 = vsyncpa [#allocation9], 1 }
0x23e8   :  { %4179 = vsyncpa [#allocation12], 1 }
0x23e9   :  { %4180 = vsyncpa [#allocation4], 1 }
0x23ea   :  { %4182 = vsyncpa [#allocation4 + $0x1], 1 }

</bundles_post_ra>
